<compile_context>
chip_gen: v5e
topology: v5e:2x2
jax: 0.10.0
libtpu: 0.0.40
codegen_flags: <defaults>
</compile_context>

<pallas_src>
import functools

import jax
import jax.numpy as jnp
from jax import lax
from jax.experimental import pallas as pl
from jax.experimental.pallas import tpu as pltpu


def _make_encoder_kernel(n_layers, seq_len, batch_p, hid_dim, chunk):
    """Fused multi-layer LSTM kernel. All refs are whole arrays resident in VMEM."""
    T, B, H, Tc = seq_len, batch_p, hid_dim, chunk

    def kernel(*refs):
        x_ref = refs[0]                                  # [T, B, E]        bf16
        w_refs = refs[1:1 + 3 * n_layers]                # per layer: w_ih^T, w_hh^T, bias
        h_out_ref = refs[1 + 3 * n_layers]               # [n_layers, B, H] f32
        c_out_ref = refs[2 + 3 * n_layers]               # [n_layers, B, H] f32
        act_scr = refs[3 + 3 * n_layers]                 # [T, B, H]        bf16 inter-layer acts
        gx_scr = refs[4 + 3 * n_layers]                  # [Tc, B, 4H]      f32 hoisted gates

        for layer in range(n_layers):
            wih_t = w_refs[3 * layer + 0][...]           # [in_dim, 4H] bf16
            whh_t = w_refs[3 * layer + 1][...]           # [H, 4H]      bf16
            bias = w_refs[3 * layer + 2][...]            # [1, 4H]      f32
            in_dim = wih_t.shape[0]
            is_last = layer == n_layers - 1

            h = jnp.zeros((B, H), jnp.float32)
            c = jnp.zeros((B, H), jnp.float32)

            # TODO(synk): hold W_hh^T resident in the MXU across the T steps via
            # pltpu.matmul_push_rhs / matmul_acc_lhs / matmul_pop (needs 128/256 tiling);
            # only worth it after the bf16 + gate-slicing wins, at real H.
            for t0 in range(0, T, Tc):
                tc = min(Tc, T - t0)

                # Hoisted input projection for this chunk: one [tc*B, in] x [in, 4H] MXU
                # matmul (bf16 operands, f32 accumulation), bias folded in here.
                if layer == 0:
                    x_chunk = x_ref[t0:t0 + tc]          # [tc, B, E]  bf16
                else:
                    x_chunk = act_scr[t0:t0 + tc]        # [tc, B, H]  bf16
                gx = jnp.dot(x_chunk.reshape(tc * B, in_dim), wih_t,
                             preferred_element_type=jnp.float32) + bias
                gx_scr[0:tc] = gx.reshape(tc, B, 4 * H)

                # Serial recurrence: only h @ W_hh^T + gate math is on the critical path.
                def step(t, hc, t0=t0, is_last=is_last):
                    h, c = hc
                    gates = gx_scr[t] + jnp.dot(h.astype(jnp.bfloat16), whh_t,
                                                preferred_element_type=jnp.float32)
                    # Gate columns pre-permuted to [i, f, o | g]: one sigmoid + one tanh.
                    # (At real H, multiples of 128, the 3H split is lane-aligned and free.)
                    sg = jax.nn.sigmoid(gates[:, :3 * H])
                    g = jnp.tanh(gates[:, 3 * H:])
                    i = sg[:, 0 * H:1 * H]
                    f = sg[:, 1 * H:2 * H]
                    o = sg[:, 2 * H:3 * H]
                    c_new = f * c + i * g                       # f32 cell state
                    h_new = o * jnp.tanh(c_new)
                    if not is_last:
                        act_scr[t0 + t] = h_new.astype(jnp.bfloat16)
                    return h_new, c_new

                h, c = lax.fori_loop(0, tc, step, (h, c), unroll=min(8, tc))

            h_out_ref[layer] = h
            c_out_ref[layer] = c

    return kernel


def encoder_lstm(embedded, lstm_params, *, chunk=16):
    """Fused multi-layer LSTM over the full sequence in a single Pallas call.

    embedded: [T, B, E] float
    lstm_params: list of dicts with PyTorch-layout w_ih [4H, in], w_hh [4H, H],
                 b_ih/b_hh [4H] (gate order i, f, g, o).
    returns: (hidden [n_layers, B, H], cell [n_layers, B, H]) float32
    """
    T, B, E = embedded.shape
    n_layers = len(lstm_params)
    H = lstm_params[0]["w_hh"].shape[1]

    # Pad batch to a multiple of 16 (bf16 sublane packing); padded rows carry independent,
    # bounded garbage and are stripped after the call.
    Bp = max(16, ((B + 15) // 16) * 16)
    x = embedded.astype(jnp.bfloat16)
    if Bp != B:
        x = jnp.pad(x, ((0, 0), (0, Bp - B), (0, 0)))

    Tc = min(chunk, T)            # gx scratch is bounded by Tc, not T

    def _reorder(m):
        # PyTorch gate order (i, f, g, o) -> (i, f, o, g) so sigmoid/tanh split cleanly at 3H.
        return jnp.concatenate([m[:2 * H], m[3 * H:4 * H], m[2 * H:3 * H]], axis=0)

    args = [x]
    # grid=(1,): nothing to pipeline, so keep whole arrays single-buffered in VMEM.
    in_specs = [pl.BlockSpec(memory_space=pltpu.MemorySpace.VMEM)]
    for lp in lstm_params:
        wih_t = _reorder(jnp.asarray(lp["w_ih"], jnp.float32)).T.astype(jnp.bfloat16)
        whh_t = _reorder(jnp.asarray(lp["w_hh"], jnp.float32)).T.astype(jnp.bfloat16)
        bias = _reorder(jnp.asarray(lp["b_ih"], jnp.float32)
                        + jnp.asarray(lp["b_hh"], jnp.float32)).reshape(1, 4 * H)
        args += [wih_t, whh_t, bias]
        in_specs += [pl.BlockSpec(memory_space=pltpu.MemorySpace.VMEM)] * 3

    out_shapes = (
        jax.ShapeDtypeStruct((n_layers, Bp, H), jnp.float32),   # final hidden per layer
        jax.ShapeDtypeStruct((n_layers, Bp, H), jnp.float32),   # final cell per layer
    )
    out_specs = [pl.BlockSpec(memory_space=pltpu.MemorySpace.VMEM)] * 2

    # Explicit VMEM budget: everything is single-buffered, so size it from the actual
    # buffers with 2x headroom (stays well under v7x's 64 MiB physical VMEM).
    est = sum(int(a.size) * a.dtype.itemsize for a in args)
    est += 2 * n_layers * Bp * H * 4                       # h/c outputs (f32)
    est += T * Bp * H * 2 + Tc * Bp * 4 * H * 4            # act_scr (bf16) + gx_scr (f32)
    vmem_limit = int(min(96 * 2 ** 20, max(32 * 2 ** 20, 2 * est)))

    grid_spec = pltpu.PrefetchScalarGridSpec(
        num_scalar_prefetch=0,
        grid=(1,),                       # whole recurrence runs inside one grid step
        in_specs=in_specs,
        out_specs=out_specs,
        scratch_shapes=[
            pltpu.VMEM((T, Bp, H), jnp.bfloat16),          # inter-layer activations
            pltpu.VMEM((Tc, Bp, 4 * H), jnp.float32),      # per-chunk input-projection gates
        ],
    )

    # TODO(synk): on v7x, split Bp across the two TensorCores (leading "parallel" grid axis
    # over batch halves) for ~2x; neutral on single-TC v5e/v6e.
    hidden_p, cell_p = pl.pallas_call(
        _make_encoder_kernel(n_layers, T, Bp, H, Tc),
        out_shape=out_shapes,
        grid_spec=grid_spec,
        compiler_params=pltpu.CompilerParams(
            dimension_semantics=("arbitrary",),
            vmem_limit_bytes=vmem_limit),
    )(*args)
    return hidden_p[:, :B, :], cell_p[:, :B, :]


def init_encoder_params(key, input_dim, emb_dim, hid_dim, n_layers):
    """Deterministic parameter init (PyTorch-like uniform(-1/sqrt(H), 1/sqrt(H)))."""
    params = {}
    key, k_emb = jax.random.split(key)
    params["embedding"] = jax.random.normal(k_emb, (input_dim, emb_dim),
                                            jnp.float32) * 0.1
    bound = 1.0 / jnp.sqrt(jnp.float32(hid_dim))
    layers = []
    for layer in range(n_layers):
        in_dim = emb_dim if layer == 0 else hid_dim
        key, k1, k2, k3, k4 = jax.random.split(key, 5)
        layers.append(dict(
            w_ih=jax.random.uniform(k1, (4 * hid_dim, in_dim), jnp.float32,
                                    -bound, bound),
            w_hh=jax.random.uniform(k2, (4 * hid_dim, hid_dim), jnp.float32,
                                    -bound, bound),
            b_ih=jax.random.uniform(k3, (4 * hid_dim,), jnp.float32,
                                    -bound, bound),
            b_hh=jax.random.uniform(k4, (4 * hid_dim,), jnp.float32,
                                    -bound, bound),
        ))
    params["lstm"] = layers
    return params


@functools.partial(jax.jit, static_argnames=())
def encoder_forward(params, src):
    """src: [T, B] int32 -> (hidden [n_layers, B, H], cell [n_layers, B, H])."""
    # Embedding lookup is glue (gather) — done in plain JAX.
    embedded = jnp.take(params["embedding"], src, axis=0)   # [T, B, E]
    # TODO(synk): nn.Dropout (and nn.LSTM inter-layer dropout) is identity at inference;
    # no stochastic dropout applied.
    return encoder_lstm(embedded, params["lstm"])


def _reference_forward(params, src):
    """Pure-JAX f32 reference (lax.scan LSTM) for a correctness sanity check."""
    embedded = jnp.take(params["embedding"], src, axis=0)
    x = embedded
    hiddens, cells = [], []
    for lp in params["lstm"]:
        H = lp["w_hh"].shape[1]
        B = x.shape[1]

        def step(carry, x_t, lp=lp, H=H):
            h, c = carry
            gates = x_t @ lp["w_ih"].T + h @ lp["w_hh"].T + lp["b_ih"] + lp["b_hh"]
            i = jax.nn.sigmoid(gates[:, 0 * H:1 * H])
            f = jax.nn.sigmoid(gates[:, 1 * H:2 * H])
            g = jnp.tanh(gates[:, 2 * H:3 * H])
            o = jax.nn.sigmoid(gates[:, 3 * H:4 * H])
            c = f * c + i * g
            h = o * jnp.tanh(c)
            return (h, c), h

        init = (jnp.zeros((B, H), jnp.float32), jnp.zeros((B, H), jnp.float32))
        (h_T, c_T), out = jax.lax.scan(step, init, x)
        x = out
        hiddens.append(h_T)
        cells.append(c_T)
    return jnp.stack(hiddens, 0), jnp.stack(cells, 0)


if __name__ == "__main__":
    INPUT_DIM, EMB_DIM, HID_DIM, N_LAYERS = 30, 16, 32, 2
    SEQ_LEN, BATCH = 8, 4

    key = jax.random.PRNGKey(0)
    key, k_src = jax.random.split(key)
    src = jax.random.randint(k_src, (SEQ_LEN, BATCH), 0, INPUT_DIM, jnp.int32)

    params = init_encoder_params(key, INPUT_DIM, EMB_DIM, HID_DIM, N_LAYERS)

    hidden, cell = encoder_forward(params, src)
    jax.block_until_ready((hidden, cell))

    ref_h, ref_c = _reference_forward(params, src)
    assert hidden.shape == (N_LAYERS, BATCH, HID_DIM)
    assert cell.shape == (N_LAYERS, BATCH, HID_DIM)
    # bf16 MXU operands (f32 accumulation) -> relaxed tolerance vs the f32 reference.
    assert jnp.allclose(hidden, ref_h, atol=3e-2, rtol=3e-2)
    assert jnp.allclose(cell, ref_c, atol=3e-2, rtol=3e-2)

    print("KERNEL_OK")
</pallas_src>

<mosaic_0001>
module attributes {stable_mosaic.version = 11 : i64} {
  func.func @kernel(%arg0: i32, %arg1: memref<8x16x16xbf16, #tpu.memory_space<vmem>>, %arg2: memref<16x128xbf16, #tpu.memory_space<vmem>>, %arg3: memref<32x128xbf16, #tpu.memory_space<vmem>>, %arg4: memref<1x128xf32, #tpu.memory_space<vmem>>, %arg5: memref<32x128xbf16, #tpu.memory_space<vmem>>, %arg6: memref<32x128xbf16, #tpu.memory_space<vmem>>, %arg7: memref<1x128xf32, #tpu.memory_space<vmem>>, %arg8: memref<2x16x32xf32, #tpu.memory_space<vmem>>, %arg9: memref<2x16x32xf32, #tpu.memory_space<vmem>>, %arg10: memref<8x16x32xbf16, #tpu.memory_space<vmem>>, %arg11: memref<8x16x128xf32, #tpu.memory_space<vmem>>) attributes {dimension_semantics = [#tpu.dimension_semantics<arbitrary>], iteration_bounds = array<i64: 1>, scalar_prefetch = 0 : i64, scratch_operands = 2 : i64, tpu.core_type = #tpu.core_type<tc>, window_params = [{pipeline_mode = #tpu.pipeline_mode<synchronous>, transform_indices = @transform_0, window_bounds = array<i64: 8, 16, 16>}, {pipeline_mode = #tpu.pipeline_mode<synchronous>, transform_indices = @transform_1, window_bounds = array<i64: 16, 128>}, {pipeline_mode = #tpu.pipeline_mode<synchronous>, transform_indices = @transform_2, window_bounds = array<i64: 32, 128>}, {pipeline_mode = #tpu.pipeline_mode<synchronous>, transform_indices = @transform_3, window_bounds = array<i64: 1, 128>}, {pipeline_mode = #tpu.pipeline_mode<synchronous>, transform_indices = @transform_4, window_bounds = array<i64: 32, 128>}, {pipeline_mode = #tpu.pipeline_mode<synchronous>, transform_indices = @transform_5, window_bounds = array<i64: 32, 128>}, {pipeline_mode = #tpu.pipeline_mode<synchronous>, transform_indices = @transform_6, window_bounds = array<i64: 1, 128>}, {pipeline_mode = #tpu.pipeline_mode<synchronous>, transform_indices = @transform_7, window_bounds = array<i64: 2, 16, 32>}, {pipeline_mode = #tpu.pipeline_mode<synchronous>, transform_indices = @transform_8, window_bounds = array<i64: 2, 16, 32>}]} {
    %c0 = arith.constant 0 : index
    %c0_0 = arith.constant 0 : index
    %0 = vector.load %arg2[%c0, %c0_0] : memref<16x128xbf16, #tpu.memory_space<vmem>>, vector<16x128xbf16>
    %c0_1 = arith.constant 0 : index
    %c0_2 = arith.constant 0 : index
    %1 = vector.load %arg3[%c0_1, %c0_2] : memref<32x128xbf16, #tpu.memory_space<vmem>>, vector<32x128xbf16>
    %c0_3 = arith.constant 0 : index
    %c0_4 = arith.constant 0 : index
    %2 = vector.load %arg4[%c0_3, %c0_4] : memref<1x128xf32, #tpu.memory_space<vmem>>, vector<1x128xf32>
    %cst = arith.constant 0.000000e+00 : f32
    %3 = vector.broadcast %cst : f32 to vector<16x32xf32>
    %cst_5 = arith.constant 0.000000e+00 : f32
    %4 = vector.broadcast %cst_5 : f32 to vector<16x32xf32>
    %c0_6 = arith.constant 0 : index
    %c0_7 = arith.constant 0 : index
    %c0_8 = arith.constant 0 : index
    %5 = vector.load %arg1[%c0_6, %c0_7, %c0_8] : memref<8x16x16xbf16, #tpu.memory_space<vmem>>, vector<8x16x16xbf16>
    %6 = vector.shape_cast %5 : vector<8x16x16xbf16> to vector<128x16xbf16>
    %cst_9 = arith.constant dense<0.000000e+00> : vector<128x128xf32>
    %7 = tpu.matmul %6, %0, %cst_9 {dimension_numbers = #tpu.dot_dimension_numbers<[1], [0], [0], [1], [0, 0, 1, 1], [], []>} : vector<128x16xbf16>, vector<16x128xbf16>, vector<128x128xf32> -> vector<128x128xf32>
    %8 = vector.broadcast %2 : vector<1x128xf32> to vector<128x128xf32>
    %9 = arith.addf %7, %8 : vector<128x128xf32>
    %10 = vector.shape_cast %9 : vector<128x128xf32> to vector<8x16x128xf32>
    %c0_10 = arith.constant 0 : index
    %c0_11 = arith.constant 0 : index
    %c0_12 = arith.constant 0 : index
    %11 = vector.load %arg11[%c0_10, %c0_11, %c0_12] : memref<8x16x128xf32, #tpu.memory_space<vmem>>, vector<8x16x128xf32>
    tpu.vector_store %arg11[%c0_10, %c0_11, %c0_12], %10 {strides = array<i32>} : memref<8x16x128xf32, #tpu.memory_space<vmem>>, vector<8x16x128xf32>,
    %c0_i32 = arith.constant 0 : i32
    %12 = arith.index_cast %c0_i32 : i32 to index
    %c0_13 = arith.constant 0 : index
    %c0_14 = arith.constant 0 : index
    %13 = vector.load %arg11[%12, %c0_13, %c0_14] : memref<8x16x128xf32, #tpu.memory_space<vmem>>, vector<1x16x128xf32>
    %14 = vector.shape_cast %13 : vector<1x16x128xf32> to vector<16x128xf32>
    %15 = arith.truncf %3 : vector<16x32xf32> to vector<16x32xbf16>
    %cst_15 = arith.constant dense<0.000000e+00> : vector<16x128xf32>
    %16 = tpu.matmul %15, %1, %cst_15 {dimension_numbers = #tpu.dot_dimension_numbers<[1], [0], [0], [1], [0, 0, 1, 1], [], []>} : vector<16x32xbf16>, vector<32x128xbf16>, vector<16x128xf32> -> vector<16x128xf32>
    %17 = arith.addf %14, %16 : vector<16x128xf32>
    %18 = vector.extract_strided_slice %17 {offsets = [0, 0], sizes = [16, 96], strides = [1, 1]} : vector<16x128xf32> to vector<16x96xf32>
    %19 = arith.negf %18 : vector<16x96xf32>
    %20 = math.exp %19 : vector<16x96xf32>
    %cst_16 = arith.constant 1.000000e+00 : f32
    %21 = vector.broadcast %cst_16 : f32 to vector<16x96xf32>
    %22 = arith.addf %21, %20 : vector<16x96xf32>
    %23 = arith.divf %21, %22 : vector<16x96xf32>
    %24 = vector.extract_strided_slice %17 {offsets = [0, 96], sizes = [16, 32], strides = [1, 1]} : vector<16x128xf32> to vector<16x32xf32>
    %25 = math.tanh %24 : vector<16x32xf32>
    %26 = vector.extract_strided_slice %23 {offsets = [0, 0], sizes = [16, 32], strides = [1, 1]} : vector<16x96xf32> to vector<16x32xf32>
    %27 = vector.extract_strided_slice %23 {offsets = [0, 32], sizes = [16, 32], strides = [1, 1]} : vector<16x96xf32> to vector<16x32xf32>
    %28 = vector.extract_strided_slice %23 {offsets = [0, 64], sizes = [16, 32], strides = [1, 1]} : vector<16x96xf32> to vector<16x32xf32>
    %29 = arith.mulf %27, %4 : vector<16x32xf32>
    %30 = arith.mulf %26, %25 : vector<16x32xf32>
    %31 = arith.addf %29, %30 : vector<16x32xf32>
    %32 = math.tanh %31 : vector<16x32xf32>
    %33 = arith.mulf %28, %32 : vector<16x32xf32>
    %34 = arith.truncf %33 : vector<16x32xf32> to vector<16x32xbf16>
    %c0_i32_17 = arith.constant 0 : i32
    %35 = arith.addi %c0_i32_17, %c0_i32 : i32
    %36 = arith.index_cast %35 : i32 to index
    %c0_18 = arith.constant 0 : index
    %c0_19 = arith.constant 0 : index
    %37 = vector.load %arg10[%36, %c0_18, %c0_19] : memref<8x16x32xbf16, #tpu.memory_space<vmem>>, vector<1x16x32xbf16>
    %38 = vector.shape_cast %37 : vector<1x16x32xbf16> to vector<16x32xbf16>
    %39 = vector.shape_cast %34 : vector<16x32xbf16> to vector<1x16x32xbf16>
    tpu.vector_store %arg10[%36, %c0_18, %c0_19], %39 {strides = array<i32>} : memref<8x16x32xbf16, #tpu.memory_space<vmem>>, vector<1x16x32xbf16>,
    %c1_i32 = arith.constant 1 : i32
    %40 = arith.index_cast %c1_i32 : i32 to index
    %c0_20 = arith.constant 0 : index
    %c0_21 = arith.constant 0 : index
    %41 = vector.load %arg11[%40, %c0_20, %c0_21] : memref<8x16x128xf32, #tpu.memory_space<vmem>>, vector<1x16x128xf32>
    %42 = vector.shape_cast %41 : vector<1x16x128xf32> to vector<16x128xf32>
    %43 = arith.truncf %33 : vector<16x32xf32> to vector<16x32xbf16>
    %cst_22 = arith.constant dense<0.000000e+00> : vector<16x128xf32>
    %44 = tpu.matmul %43, %1, %cst_22 {dimension_numbers = #tpu.dot_dimension_numbers<[1], [0], [0], [1], [0, 0, 1, 1], [], []>} : vector<16x32xbf16>, vector<32x128xbf16>, vector<16x128xf32> -> vector<16x128xf32>
    %45 = arith.addf %42, %44 : vector<16x128xf32>
    %46 = vector.extract_strided_slice %45 {offsets = [0, 0], sizes = [16, 96], strides = [1, 1]} : vector<16x128xf32> to vector<16x96xf32>
    %47 = arith.negf %46 : vector<16x96xf32>
    %48 = math.exp %47 : vector<16x96xf32>
    %cst_23 = arith.constant 1.000000e+00 : f32
    %49 = vector.broadcast %cst_23 : f32 to vector<16x96xf32>
    %50 = arith.addf %49, %48 : vector<16x96xf32>
    %51 = arith.divf %49, %50 : vector<16x96xf32>
    %52 = vector.extract_strided_slice %45 {offsets = [0, 96], sizes = [16, 32], strides = [1, 1]} : vector<16x128xf32> to vector<16x32xf32>
    %53 = math.tanh %52 : vector<16x32xf32>
    %54 = vector.extract_strided_slice %51 {offsets = [0, 0], sizes = [16, 32], strides = [1, 1]} : vector<16x96xf32> to vector<16x32xf32>
    %55 = vector.extract_strided_slice %51 {offsets = [0, 32], sizes = [16, 32], strides = [1, 1]} : vector<16x96xf32> to vector<16x32xf32>
    %56 = vector.extract_strided_slice %51 {offsets = [0, 64], sizes = [16, 32], strides = [1, 1]} : vector<16x96xf32> to vector<16x32xf32>
    %57 = arith.mulf %55, %31 : vector<16x32xf32>
    %58 = arith.mulf %54, %53 : vector<16x32xf32>
    %59 = arith.addf %57, %58 : vector<16x32xf32>
    %60 = math.tanh %59 : vector<16x32xf32>
    %61 = arith.mulf %56, %60 : vector<16x32xf32>
    %62 = arith.truncf %61 : vector<16x32xf32> to vector<16x32xbf16>
    %c0_i32_24 = arith.constant 0 : i32
    %63 = arith.addi %c0_i32_24, %c1_i32 : i32
    %64 = arith.index_cast %63 : i32 to index
    %c0_25 = arith.constant 0 : index
    %c0_26 = arith.constant 0 : index
    %65 = vector.load %arg10[%64, %c0_25, %c0_26] : memref<8x16x32xbf16, #tpu.memory_space<vmem>>, vector<1x16x32xbf16>
    %66 = vector.shape_cast %65 : vector<1x16x32xbf16> to vector<16x32xbf16>
    %67 = vector.shape_cast %62 : vector<16x32xbf16> to vector<1x16x32xbf16>
    tpu.vector_store %arg10[%64, %c0_25, %c0_26], %67 {strides = array<i32>} : memref<8x16x32xbf16, #tpu.memory_space<vmem>>, vector<1x16x32xbf16>,
    %c2_i32 = arith.constant 2 : i32
    %68 = arith.index_cast %c2_i32 : i32 to index
    %c0_27 = arith.constant 0 : index
    %c0_28 = arith.constant 0 : index
    %69 = vector.load %arg11[%68, %c0_27, %c0_28] : memref<8x16x128xf32, #tpu.memory_space<vmem>>, vector<1x16x128xf32>
    %70 = vector.shape_cast %69 : vector<1x16x128xf32> to vector<16x128xf32>
    %71 = arith.truncf %61 : vector<16x32xf32> to vector<16x32xbf16>
    %cst_29 = arith.constant dense<0.000000e+00> : vector<16x128xf32>
    %72 = tpu.matmul %71, %1, %cst_29 {dimension_numbers = #tpu.dot_dimension_numbers<[1], [0], [0], [1], [0, 0, 1, 1], [], []>} : vector<16x32xbf16>, vector<32x128xbf16>, vector<16x128xf32> -> vector<16x128xf32>
    %73 = arith.addf %70, %72 : vector<16x128xf32>
    %74 = vector.extract_strided_slice %73 {offsets = [0, 0], sizes = [16, 96], strides = [1, 1]} : vector<16x128xf32> to vector<16x96xf32>
    %75 = arith.negf %74 : vector<16x96xf32>
    %76 = math.exp %75 : vector<16x96xf32>
    %cst_30 = arith.constant 1.000000e+00 : f32
    %77 = vector.broadcast %cst_30 : f32 to vector<16x96xf32>
    %78 = arith.addf %77, %76 : vector<16x96xf32>
    %79 = arith.divf %77, %78 : vector<16x96xf32>
    %80 = vector.extract_strided_slice %73 {offsets = [0, 96], sizes = [16, 32], strides = [1, 1]} : vector<16x128xf32> to vector<16x32xf32>
    %81 = math.tanh %80 : vector<16x32xf32>
    %82 = vector.extract_strided_slice %79 {offsets = [0, 0], sizes = [16, 32], strides = [1, 1]} : vector<16x96xf32> to vector<16x32xf32>
    %83 = vector.extract_strided_slice %79 {offsets = [0, 32], sizes = [16, 32], strides = [1, 1]} : vector<16x96xf32> to vector<16x32xf32>
    %84 = vector.extract_strided_slice %79 {offsets = [0, 64], sizes = [16, 32], strides = [1, 1]} : vector<16x96xf32> to vector<16x32xf32>
    %85 = arith.mulf %83, %59 : vector<16x32xf32>
    %86 = arith.mulf %82, %81 : vector<16x32xf32>
    %87 = arith.addf %85, %86 : vector<16x32xf32>
    %88 = math.tanh %87 : vector<16x32xf32>
    %89 = arith.mulf %84, %88 : vector<16x32xf32>
    %90 = arith.truncf %89 : vector<16x32xf32> to vector<16x32xbf16>
    %c0_i32_31 = arith.constant 0 : i32
    %91 = arith.addi %c0_i32_31, %c2_i32 : i32
    %92 = arith.index_cast %91 : i32 to index
    %c0_32 = arith.constant 0 : index
    %c0_33 = arith.constant 0 : index
    %93 = vector.load %arg10[%92, %c0_32, %c0_33] : memref<8x16x32xbf16, #tpu.memory_space<vmem>>, vector<1x16x32xbf16>
    %94 = vector.shape_cast %93 : vector<1x16x32xbf16> to vector<16x32xbf16>
    %95 = vector.shape_cast %90 : vector<16x32xbf16> to vector<1x16x32xbf16>
    tpu.vector_store %arg10[%92, %c0_32, %c0_33], %95 {strides = array<i32>} : memref<8x16x32xbf16, #tpu.memory_space<vmem>>, vector<1x16x32xbf16>,
    %c3_i32 = arith.constant 3 : i32
    %96 = arith.index_cast %c3_i32 : i32 to index
    %c0_34 = arith.constant 0 : index
    %c0_35 = arith.constant 0 : index
    %97 = vector.load %arg11[%96, %c0_34, %c0_35] : memref<8x16x128xf32, #tpu.memory_space<vmem>>, vector<1x16x128xf32>
    %98 = vector.shape_cast %97 : vector<1x16x128xf32> to vector<16x128xf32>
    %99 = arith.truncf %89 : vector<16x32xf32> to vector<16x32xbf16>
    %cst_36 = arith.constant dense<0.000000e+00> : vector<16x128xf32>
    %100 = tpu.matmul %99, %1, %cst_36 {dimension_numbers = #tpu.dot_dimension_numbers<[1], [0], [0], [1], [0, 0, 1, 1], [], []>} : vector<16x32xbf16>, vector<32x128xbf16>, vector<16x128xf32> -> vector<16x128xf32>
    %101 = arith.addf %98, %100 : vector<16x128xf32>
    %102 = vector.extract_strided_slice %101 {offsets = [0, 0], sizes = [16, 96], strides = [1, 1]} : vector<16x128xf32> to vector<16x96xf32>
    %103 = arith.negf %102 : vector<16x96xf32>
    %104 = math.exp %103 : vector<16x96xf32>
    %cst_37 = arith.constant 1.000000e+00 : f32
    %105 = vector.broadcast %cst_37 : f32 to vector<16x96xf32>
    %106 = arith.addf %105, %104 : vector<16x96xf32>
    %107 = arith.divf %105, %106 : vector<16x96xf32>
    %108 = vector.extract_strided_slice %101 {offsets = [0, 96], sizes = [16, 32], strides = [1, 1]} : vector<16x128xf32> to vector<16x32xf32>
    %109 = math.tanh %108 : vector<16x32xf32>
    %110 = vector.extract_strided_slice %107 {offsets = [0, 0], sizes = [16, 32], strides = [1, 1]} : vector<16x96xf32> to vector<16x32xf32>
    %111 = vector.extract_strided_slice %107 {offsets = [0, 32], sizes = [16, 32], strides = [1, 1]} : vector<16x96xf32> to vector<16x32xf32>
    %112 = vector.extract_strided_slice %107 {offsets = [0, 64], sizes = [16, 32], strides = [1, 1]} : vector<16x96xf32> to vector<16x32xf32>
    %113 = arith.mulf %111, %87 : vector<16x32xf32>
    %114 = arith.mulf %110, %109 : vector<16x32xf32>
    %115 = arith.addf %113, %114 : vector<16x32xf32>
    %116 = math.tanh %115 : vector<16x32xf32>
    %117 = arith.mulf %112, %116 : vector<16x32xf32>
    %118 = arith.truncf %117 : vector<16x32xf32> to vector<16x32xbf16>
    %c0_i32_38 = arith.constant 0 : i32
    %119 = arith.addi %c0_i32_38, %c3_i32 : i32
    %120 = arith.index_cast %119 : i32 to index
    %c0_39 = arith.constant 0 : index
    %c0_40 = arith.constant 0 : index
    %121 = vector.load %arg10[%120, %c0_39, %c0_40] : memref<8x16x32xbf16, #tpu.memory_space<vmem>>, vector<1x16x32xbf16>
    %122 = vector.shape_cast %121 : vector<1x16x32xbf16> to vector<16x32xbf16>
    %123 = vector.shape_cast %118 : vector<16x32xbf16> to vector<1x16x32xbf16>
    tpu.vector_store %arg10[%120, %c0_39, %c0_40], %123 {strides = array<i32>} : memref<8x16x32xbf16, #tpu.memory_space<vmem>>, vector<1x16x32xbf16>,
    %c4_i32 = arith.constant 4 : i32
    %124 = arith.index_cast %c4_i32 : i32 to index
    %c0_41 = arith.constant 0 : index
    %c0_42 = arith.constant 0 : index
    %125 = vector.load %arg11[%124, %c0_41, %c0_42] : memref<8x16x128xf32, #tpu.memory_space<vmem>>, vector<1x16x128xf32>
    %126 = vector.shape_cast %125 : vector<1x16x128xf32> to vector<16x128xf32>
    %127 = arith.truncf %117 : vector<16x32xf32> to vector<16x32xbf16>
    %cst_43 = arith.constant dense<0.000000e+00> : vector<16x128xf32>
    %128 = tpu.matmul %127, %1, %cst_43 {dimension_numbers = #tpu.dot_dimension_numbers<[1], [0], [0], [1], [0, 0, 1, 1], [], []>} : vector<16x32xbf16>, vector<32x128xbf16>, vector<16x128xf32> -> vector<16x128xf32>
    %129 = arith.addf %126, %128 : vector<16x128xf32>
    %130 = vector.extract_strided_slice %129 {offsets = [0, 0], sizes = [16, 96], strides = [1, 1]} : vector<16x128xf32> to vector<16x96xf32>
    %131 = arith.negf %130 : vector<16x96xf32>
    %132 = math.exp %131 : vector<16x96xf32>
    %cst_44 = arith.constant 1.000000e+00 : f32
    %133 = vector.broadcast %cst_44 : f32 to vector<16x96xf32>
    %134 = arith.addf %133, %132 : vector<16x96xf32>
    %135 = arith.divf %133, %134 : vector<16x96xf32>
    %136 = vector.extract_strided_slice %129 {offsets = [0, 96], sizes = [16, 32], strides = [1, 1]} : vector<16x128xf32> to vector<16x32xf32>
    %137 = math.tanh %136 : vector<16x32xf32>
    %138 = vector.extract_strided_slice %135 {offsets = [0, 0], sizes = [16, 32], strides = [1, 1]} : vector<16x96xf32> to vector<16x32xf32>
    %139 = vector.extract_strided_slice %135 {offsets = [0, 32], sizes = [16, 32], strides = [1, 1]} : vector<16x96xf32> to vector<16x32xf32>
    %140 = vector.extract_strided_slice %135 {offsets = [0, 64], sizes = [16, 32], strides = [1, 1]} : vector<16x96xf32> to vector<16x32xf32>
    %141 = arith.mulf %139, %115 : vector<16x32xf32>
    %142 = arith.mulf %138, %137 : vector<16x32xf32>
    %143 = arith.addf %141, %142 : vector<16x32xf32>
    %144 = math.tanh %143 : vector<16x32xf32>
    %145 = arith.mulf %140, %144 : vector<16x32xf32>
    %146 = arith.truncf %145 : vector<16x32xf32> to vector<16x32xbf16>
    %c0_i32_45 = arith.constant 0 : i32
    %147 = arith.addi %c0_i32_45, %c4_i32 : i32
    %148 = arith.index_cast %147 : i32 to index
    %c0_46 = arith.constant 0 : index
    %c0_47 = arith.constant 0 : index
    %149 = vector.load %arg10[%148, %c0_46, %c0_47] : memref<8x16x32xbf16, #tpu.memory_space<vmem>>, vector<1x16x32xbf16>
    %150 = vector.shape_cast %149 : vector<1x16x32xbf16> to vector<16x32xbf16>
    %151 = vector.shape_cast %146 : vector<16x32xbf16> to vector<1x16x32xbf16>
    tpu.vector_store %arg10[%148, %c0_46, %c0_47], %151 {strides = array<i32>} : memref<8x16x32xbf16, #tpu.memory_space<vmem>>, vector<1x16x32xbf16>,
    %c5_i32 = arith.constant 5 : i32
    %152 = arith.index_cast %c5_i32 : i32 to index
    %c0_48 = arith.constant 0 : index
    %c0_49 = arith.constant 0 : index
    %153 = vector.load %arg11[%152, %c0_48, %c0_49] : memref<8x16x128xf32, #tpu.memory_space<vmem>>, vector<1x16x128xf32>
    %154 = vector.shape_cast %153 : vector<1x16x128xf32> to vector<16x128xf32>
    %155 = arith.truncf %145 : vector<16x32xf32> to vector<16x32xbf16>
    %cst_50 = arith.constant dense<0.000000e+00> : vector<16x128xf32>
    %156 = tpu.matmul %155, %1, %cst_50 {dimension_numbers = #tpu.dot_dimension_numbers<[1], [0], [0], [1], [0, 0, 1, 1], [], []>} : vector<16x32xbf16>, vector<32x128xbf16>, vector<16x128xf32> -> vector<16x128xf32>
    %157 = arith.addf %154, %156 : vector<16x128xf32>
    %158 = vector.extract_strided_slice %157 {offsets = [0, 0], sizes = [16, 96], strides = [1, 1]} : vector<16x128xf32> to vector<16x96xf32>
    %159 = arith.negf %158 : vector<16x96xf32>
    %160 = math.exp %159 : vector<16x96xf32>
    %cst_51 = arith.constant 1.000000e+00 : f32
    %161 = vector.broadcast %cst_51 : f32 to vector<16x96xf32>
    %162 = arith.addf %161, %160 : vector<16x96xf32>
    %163 = arith.divf %161, %162 : vector<16x96xf32>
    %164 = vector.extract_strided_slice %157 {offsets = [0, 96], sizes = [16, 32], strides = [1, 1]} : vector<16x128xf32> to vector<16x32xf32>
    %165 = math.tanh %164 : vector<16x32xf32>
    %166 = vector.extract_strided_slice %163 {offsets = [0, 0], sizes = [16, 32], strides = [1, 1]} : vector<16x96xf32> to vector<16x32xf32>
    %167 = vector.extract_strided_slice %163 {offsets = [0, 32], sizes = [16, 32], strides = [1, 1]} : vector<16x96xf32> to vector<16x32xf32>
    %168 = vector.extract_strided_slice %163 {offsets = [0, 64], sizes = [16, 32], strides = [1, 1]} : vector<16x96xf32> to vector<16x32xf32>
    %169 = arith.mulf %167, %143 : vector<16x32xf32>
    %170 = arith.mulf %166, %165 : vector<16x32xf32>
    %171 = arith.addf %169, %170 : vector<16x32xf32>
    %172 = math.tanh %171 : vector<16x32xf32>
    %173 = arith.mulf %168, %172 : vector<16x32xf32>
    %174 = arith.truncf %173 : vector<16x32xf32> to vector<16x32xbf16>
    %c0_i32_52 = arith.constant 0 : i32
    %175 = arith.addi %c0_i32_52, %c5_i32 : i32
    %176 = arith.index_cast %175 : i32 to index
    %c0_53 = arith.constant 0 : index
    %c0_54 = arith.constant 0 : index
    %177 = vector.load %arg10[%176, %c0_53, %c0_54] : memref<8x16x32xbf16, #tpu.memory_space<vmem>>, vector<1x16x32xbf16>
    %178 = vector.shape_cast %177 : vector<1x16x32xbf16> to vector<16x32xbf16>
    %179 = vector.shape_cast %174 : vector<16x32xbf16> to vector<1x16x32xbf16>
    tpu.vector_store %arg10[%176, %c0_53, %c0_54], %179 {strides = array<i32>} : memref<8x16x32xbf16, #tpu.memory_space<vmem>>, vector<1x16x32xbf16>,
    %c6_i32 = arith.constant 6 : i32
    %180 = arith.index_cast %c6_i32 : i32 to index
    %c0_55 = arith.constant 0 : index
    %c0_56 = arith.constant 0 : index
    %181 = vector.load %arg11[%180, %c0_55, %c0_56] : memref<8x16x128xf32, #tpu.memory_space<vmem>>, vector<1x16x128xf32>
    %182 = vector.shape_cast %181 : vector<1x16x128xf32> to vector<16x128xf32>
    %183 = arith.truncf %173 : vector<16x32xf32> to vector<16x32xbf16>
    %cst_57 = arith.constant dense<0.000000e+00> : vector<16x128xf32>
    %184 = tpu.matmul %183, %1, %cst_57 {dimension_numbers = #tpu.dot_dimension_numbers<[1], [0], [0], [1], [0, 0, 1, 1], [], []>} : vector<16x32xbf16>, vector<32x128xbf16>, vector<16x128xf32> -> vector<16x128xf32>
    %185 = arith.addf %182, %184 : vector<16x128xf32>
    %186 = vector.extract_strided_slice %185 {offsets = [0, 0], sizes = [16, 96], strides = [1, 1]} : vector<16x128xf32> to vector<16x96xf32>
    %187 = arith.negf %186 : vector<16x96xf32>
    %188 = math.exp %187 : vector<16x96xf32>
    %cst_58 = arith.constant 1.000000e+00 : f32
    %189 = vector.broadcast %cst_58 : f32 to vector<16x96xf32>
    %190 = arith.addf %189, %188 : vector<16x96xf32>
    %191 = arith.divf %189, %190 : vector<16x96xf32>
    %192 = vector.extract_strided_slice %185 {offsets = [0, 96], sizes = [16, 32], strides = [1, 1]} : vector<16x128xf32> to vector<16x32xf32>
    %193 = math.tanh %192 : vector<16x32xf32>
    %194 = vector.extract_strided_slice %191 {offsets = [0, 0], sizes = [16, 32], strides = [1, 1]} : vector<16x96xf32> to vector<16x32xf32>
    %195 = vector.extract_strided_slice %191 {offsets = [0, 32], sizes = [16, 32], strides = [1, 1]} : vector<16x96xf32> to vector<16x32xf32>
    %196 = vector.extract_strided_slice %191 {offsets = [0, 64], sizes = [16, 32], strides = [1, 1]} : vector<16x96xf32> to vector<16x32xf32>
    %197 = arith.mulf %195, %171 : vector<16x32xf32>
    %198 = arith.mulf %194, %193 : vector<16x32xf32>
    %199 = arith.addf %197, %198 : vector<16x32xf32>
    %200 = math.tanh %199 : vector<16x32xf32>
    %201 = arith.mulf %196, %200 : vector<16x32xf32>
    %202 = arith.truncf %201 : vector<16x32xf32> to vector<16x32xbf16>
    %c0_i32_59 = arith.constant 0 : i32
    %203 = arith.addi %c0_i32_59, %c6_i32 : i32
    %204 = arith.index_cast %203 : i32 to index
    %c0_60 = arith.constant 0 : index
    %c0_61 = arith.constant 0 : index
    %205 = vector.load %arg10[%204, %c0_60, %c0_61] : memref<8x16x32xbf16, #tpu.memory_space<vmem>>, vector<1x16x32xbf16>
    %206 = vector.shape_cast %205 : vector<1x16x32xbf16> to vector<16x32xbf16>
    %207 = vector.shape_cast %202 : vector<16x32xbf16> to vector<1x16x32xbf16>
    tpu.vector_store %arg10[%204, %c0_60, %c0_61], %207 {strides = array<i32>} : memref<8x16x32xbf16, #tpu.memory_space<vmem>>, vector<1x16x32xbf16>,
    %c7_i32 = arith.constant 7 : i32
    %208 = arith.index_cast %c7_i32 : i32 to index
    %c0_62 = arith.constant 0 : index
    %c0_63 = arith.constant 0 : index
    %209 = vector.load %arg11[%208, %c0_62, %c0_63] : memref<8x16x128xf32, #tpu.memory_space<vmem>>, vector<1x16x128xf32>
    %210 = vector.shape_cast %209 : vector<1x16x128xf32> to vector<16x128xf32>
    %211 = arith.truncf %201 : vector<16x32xf32> to vector<16x32xbf16>
    %cst_64 = arith.constant dense<0.000000e+00> : vector<16x128xf32>
    %212 = tpu.matmul %211, %1, %cst_64 {dimension_numbers = #tpu.dot_dimension_numbers<[1], [0], [0], [1], [0, 0, 1, 1], [], []>} : vector<16x32xbf16>, vector<32x128xbf16>, vector<16x128xf32> -> vector<16x128xf32>
    %213 = arith.addf %210, %212 : vector<16x128xf32>
    %214 = vector.extract_strided_slice %213 {offsets = [0, 0], sizes = [16, 96], strides = [1, 1]} : vector<16x128xf32> to vector<16x96xf32>
    %215 = arith.negf %214 : vector<16x96xf32>
    %216 = math.exp %215 : vector<16x96xf32>
    %cst_65 = arith.constant 1.000000e+00 : f32
    %217 = vector.broadcast %cst_65 : f32 to vector<16x96xf32>
    %218 = arith.addf %217, %216 : vector<16x96xf32>
    %219 = arith.divf %217, %218 : vector<16x96xf32>
    %220 = vector.extract_strided_slice %213 {offsets = [0, 96], sizes = [16, 32], strides = [1, 1]} : vector<16x128xf32> to vector<16x32xf32>
    %221 = math.tanh %220 : vector<16x32xf32>
    %222 = vector.extract_strided_slice %219 {offsets = [0, 0], sizes = [16, 32], strides = [1, 1]} : vector<16x96xf32> to vector<16x32xf32>
    %223 = vector.extract_strided_slice %219 {offsets = [0, 32], sizes = [16, 32], strides = [1, 1]} : vector<16x96xf32> to vector<16x32xf32>
    %224 = vector.extract_strided_slice %219 {offsets = [0, 64], sizes = [16, 32], strides = [1, 1]} : vector<16x96xf32> to vector<16x32xf32>
    %225 = arith.mulf %223, %199 : vector<16x32xf32>
    %226 = arith.mulf %222, %221 : vector<16x32xf32>
    %227 = arith.addf %225, %226 : vector<16x32xf32>
    %228 = math.tanh %227 : vector<16x32xf32>
    %229 = arith.mulf %224, %228 : vector<16x32xf32>
    %230 = arith.truncf %229 : vector<16x32xf32> to vector<16x32xbf16>
    %c0_i32_66 = arith.constant 0 : i32
    %231 = arith.addi %c0_i32_66, %c7_i32 : i32
    %232 = arith.index_cast %231 : i32 to index
    %c0_67 = arith.constant 0 : index
    %c0_68 = arith.constant 0 : index
    %233 = vector.load %arg10[%232, %c0_67, %c0_68] : memref<8x16x32xbf16, #tpu.memory_space<vmem>>, vector<1x16x32xbf16>
    %234 = vector.shape_cast %233 : vector<1x16x32xbf16> to vector<16x32xbf16>
    %235 = vector.shape_cast %230 : vector<16x32xbf16> to vector<1x16x32xbf16>
    tpu.vector_store %arg10[%232, %c0_67, %c0_68], %235 {strides = array<i32>} : memref<8x16x32xbf16, #tpu.memory_space<vmem>>, vector<1x16x32xbf16>,
    %c8_i32 = arith.constant 8 : i32
    %c0_69 = arith.constant 0 : index
    %c0_70 = arith.constant 0 : index
    %c0_71 = arith.constant 0 : index
    %236 = vector.load %arg8[%c0_69, %c0_70, %c0_71] : memref<2x16x32xf32, #tpu.memory_space<vmem>>, vector<1x16x32xf32>
    %237 = vector.shape_cast %236 : vector<1x16x32xf32> to vector<16x32xf32>
    %238 = vector.shape_cast %229 : vector<16x32xf32> to vector<1x16x32xf32>
    tpu.vector_store %arg8[%c0_69, %c0_70, %c0_71], %238 {strides = array<i32>} : memref<2x16x32xf32, #tpu.memory_space<vmem>>, vector<1x16x32xf32>,
    %c0_72 = arith.constant 0 : index
    %c0_73 = arith.constant 0 : index
    %c0_74 = arith.constant 0 : index
    %239 = vector.load %arg9[%c0_72, %c0_73, %c0_74] : memref<2x16x32xf32, #tpu.memory_space<vmem>>, vector<1x16x32xf32>
    %240 = vector.shape_cast %239 : vector<1x16x32xf32> to vector<16x32xf32>
    %241 = vector.shape_cast %227 : vector<16x32xf32> to vector<1x16x32xf32>
    tpu.vector_store %arg9[%c0_72, %c0_73, %c0_74], %241 {strides = array<i32>} : memref<2x16x32xf32, #tpu.memory_space<vmem>>, vector<1x16x32xf32>,
    %c0_75 = arith.constant 0 : index
    %c0_76 = arith.constant 0 : index
    %242 = vector.load %arg5[%c0_75, %c0_76] : memref<32x128xbf16, #tpu.memory_space<vmem>>, vector<32x128xbf16>
    %c0_77 = arith.constant 0 : index
    %c0_78 = arith.constant 0 : index
    %243 = vector.load %arg6[%c0_77, %c0_78] : memref<32x128xbf16, #tpu.memory_space<vmem>>, vector<32x128xbf16>
    %c0_79 = arith.constant 0 : index
    %c0_80 = arith.constant 0 : index
    %244 = vector.load %arg7[%c0_79, %c0_80] : memref<1x128xf32, #tpu.memory_space<vmem>>, vector<1x128xf32>
    %cst_81 = arith.constant 0.000000e+00 : f32
    %245 = vector.broadcast %cst_81 : f32 to vector<16x32xf32>
    %cst_82 = arith.constant 0.000000e+00 : f32
    %246 = vector.broadcast %cst_82 : f32 to vector<16x32xf32>
    %c0_83 = arith.constant 0 : index
    %c0_84 = arith.constant 0 : index
    %c0_85 = arith.constant 0 : index
    %247 = vector.load %arg10[%c0_83, %c0_84, %c0_85] : memref<8x16x32xbf16, #tpu.memory_space<vmem>>, vector<8x16x32xbf16>
    %248 = vector.shape_cast %247 : vector<8x16x32xbf16> to vector<128x32xbf16>
    %cst_86 = arith.constant dense<0.000000e+00> : vector<128x128xf32>
    %249 = tpu.matmul %248, %242, %cst_86 {dimension_numbers = #tpu.dot_dimension_numbers<[1], [0], [0], [1], [0, 0, 1, 1], [], []>} : vector<128x32xbf16>, vector<32x128xbf16>, vector<128x128xf32> -> vector<128x128xf32>
    %250 = vector.broadcast %244 : vector<1x128xf32> to vector<128x128xf32>
    %251 = arith.addf %249, %250 : vector<128x128xf32>
    %252 = vector.shape_cast %251 : vector<128x128xf32> to vector<8x16x128xf32>
    %c0_87 = arith.constant 0 : index
    %c0_88 = arith.constant 0 : index
    %c0_89 = arith.constant 0 : index
    %253 = vector.load %arg11[%c0_87, %c0_88, %c0_89] : memref<8x16x128xf32, #tpu.memory_space<vmem>>, vector<8x16x128xf32>
    tpu.vector_store %arg11[%c0_87, %c0_88, %c0_89], %252 {strides = array<i32>} : memref<8x16x128xf32, #tpu.memory_space<vmem>>, vector<8x16x128xf32>,
    %c0_i32_90 = arith.constant 0 : i32
    %254 = arith.index_cast %c0_i32_90 : i32 to index
    %c0_91 = arith.constant 0 : index
    %c0_92 = arith.constant 0 : index
    %255 = vector.load %arg11[%254, %c0_91, %c0_92] : memref<8x16x128xf32, #tpu.memory_space<vmem>>, vector<1x16x128xf32>
    %256 = vector.shape_cast %255 : vector<1x16x128xf32> to vector<16x128xf32>
    %257 = arith.truncf %245 : vector<16x32xf32> to vector<16x32xbf16>
    %cst_93 = arith.constant dense<0.000000e+00> : vector<16x128xf32>
    %258 = tpu.matmul %257, %243, %cst_93 {dimension_numbers = #tpu.dot_dimension_numbers<[1], [0], [0], [1], [0, 0, 1, 1], [], []>} : vector<16x32xbf16>, vector<32x128xbf16>, vector<16x128xf32> -> vector<16x128xf32>
    %259 = arith.addf %256, %258 : vector<16x128xf32>
    %260 = vector.extract_strided_slice %259 {offsets = [0, 0], sizes = [16, 96], strides = [1, 1]} : vector<16x128xf32> to vector<16x96xf32>
    %261 = arith.negf %260 : vector<16x96xf32>
    %262 = math.exp %261 : vector<16x96xf32>
    %cst_94 = arith.constant 1.000000e+00 : f32
    %263 = vector.broadcast %cst_94 : f32 to vector<16x96xf32>
    %264 = arith.addf %263, %262 : vector<16x96xf32>
    %265 = arith.divf %263, %264 : vector<16x96xf32>
    %266 = vector.extract_strided_slice %259 {offsets = [0, 96], sizes = [16, 32], strides = [1, 1]} : vector<16x128xf32> to vector<16x32xf32>
    %267 = math.tanh %266 : vector<16x32xf32>
    %268 = vector.extract_strided_slice %265 {offsets = [0, 0], sizes = [16, 32], strides = [1, 1]} : vector<16x96xf32> to vector<16x32xf32>
    %269 = vector.extract_strided_slice %265 {offsets = [0, 32], sizes = [16, 32], strides = [1, 1]} : vector<16x96xf32> to vector<16x32xf32>
    %270 = vector.extract_strided_slice %265 {offsets = [0, 64], sizes = [16, 32], strides = [1, 1]} : vector<16x96xf32> to vector<16x32xf32>
    %271 = arith.mulf %269, %246 : vector<16x32xf32>
    %272 = arith.mulf %268, %267 : vector<16x32xf32>
    %273 = arith.addf %271, %272 : vector<16x32xf32>
    %274 = math.tanh %273 : vector<16x32xf32>
    %275 = arith.mulf %270, %274 : vector<16x32xf32>
    %c1_i32_95 = arith.constant 1 : i32
    %276 = arith.index_cast %c1_i32_95 : i32 to index
    %c0_96 = arith.constant 0 : index
    %c0_97 = arith.constant 0 : index
    %277 = vector.load %arg11[%276, %c0_96, %c0_97] : memref<8x16x128xf32, #tpu.memory_space<vmem>>, vector<1x16x128xf32>
    %278 = vector.shape_cast %277 : vector<1x16x128xf32> to vector<16x128xf32>
    %279 = arith.truncf %275 : vector<16x32xf32> to vector<16x32xbf16>
    %cst_98 = arith.constant dense<0.000000e+00> : vector<16x128xf32>
    %280 = tpu.matmul %279, %243, %cst_98 {dimension_numbers = #tpu.dot_dimension_numbers<[1], [0], [0], [1], [0, 0, 1, 1], [], []>} : vector<16x32xbf16>, vector<32x128xbf16>, vector<16x128xf32> -> vector<16x128xf32>
    %281 = arith.addf %278, %280 : vector<16x128xf32>
    %282 = vector.extract_strided_slice %281 {offsets = [0, 0], sizes = [16, 96], strides = [1, 1]} : vector<16x128xf32> to vector<16x96xf32>
    %283 = arith.negf %282 : vector<16x96xf32>
    %284 = math.exp %283 : vector<16x96xf32>
    %cst_99 = arith.constant 1.000000e+00 : f32
    %285 = vector.broadcast %cst_99 : f32 to vector<16x96xf32>
    %286 = arith.addf %285, %284 : vector<16x96xf32>
    %287 = arith.divf %285, %286 : vector<16x96xf32>
    %288 = vector.extract_strided_slice %281 {offsets = [0, 96], sizes = [16, 32], strides = [1, 1]} : vector<16x128xf32> to vector<16x32xf32>
    %289 = math.tanh %288 : vector<16x32xf32>
    %290 = vector.extract_strided_slice %287 {offsets = [0, 0], sizes = [16, 32], strides = [1, 1]} : vector<16x96xf32> to vector<16x32xf32>
    %291 = vector.extract_strided_slice %287 {offsets = [0, 32], sizes = [16, 32], strides = [1, 1]} : vector<16x96xf32> to vector<16x32xf32>
    %292 = vector.extract_strided_slice %287 {offsets = [0, 64], sizes = [16, 32], strides = [1, 1]} : vector<16x96xf32> to vector<16x32xf32>
    %293 = arith.mulf %291, %273 : vector<16x32xf32>
    %294 = arith.mulf %290, %289 : vector<16x32xf32>
    %295 = arith.addf %293, %294 : vector<16x32xf32>
    %296 = math.tanh %295 : vector<16x32xf32>
    %297 = arith.mulf %292, %296 : vector<16x32xf32>
    %c2_i32_100 = arith.constant 2 : i32
    %298 = arith.index_cast %c2_i32_100 : i32 to index
    %c0_101 = arith.constant 0 : index
    %c0_102 = arith.constant 0 : index
    %299 = vector.load %arg11[%298, %c0_101, %c0_102] : memref<8x16x128xf32, #tpu.memory_space<vmem>>, vector<1x16x128xf32>
    %300 = vector.shape_cast %299 : vector<1x16x128xf32> to vector<16x128xf32>
    %301 = arith.truncf %297 : vector<16x32xf32> to vector<16x32xbf16>
    %cst_103 = arith.constant dense<0.000000e+00> : vector<16x128xf32>
    %302 = tpu.matmul %301, %243, %cst_103 {dimension_numbers = #tpu.dot_dimension_numbers<[1], [0], [0], [1], [0, 0, 1, 1], [], []>} : vector<16x32xbf16>, vector<32x128xbf16>, vector<16x128xf32> -> vector<16x128xf32>
    %303 = arith.addf %300, %302 : vector<16x128xf32>
    %304 = vector.extract_strided_slice %303 {offsets = [0, 0], sizes = [16, 96], strides = [1, 1]} : vector<16x128xf32> to vector<16x96xf32>
    %305 = arith.negf %304 : vector<16x96xf32>
    %306 = math.exp %305 : vector<16x96xf32>
    %cst_104 = arith.constant 1.000000e+00 : f32
    %307 = vector.broadcast %cst_104 : f32 to vector<16x96xf32>
    %308 = arith.addf %307, %306 : vector<16x96xf32>
    %309 = arith.divf %307, %308 : vector<16x96xf32>
    %310 = vector.extract_strided_slice %303 {offsets = [0, 96], sizes = [16, 32], strides = [1, 1]} : vector<16x128xf32> to vector<16x32xf32>
    %311 = math.tanh %310 : vector<16x32xf32>
    %312 = vector.extract_strided_slice %309 {offsets = [0, 0], sizes = [16, 32], strides = [1, 1]} : vector<16x96xf32> to vector<16x32xf32>
    %313 = vector.extract_strided_slice %309 {offsets = [0, 32], sizes = [16, 32], strides = [1, 1]} : vector<16x96xf32> to vector<16x32xf32>
    %314 = vector.extract_strided_slice %309 {offsets = [0, 64], sizes = [16, 32], strides = [1, 1]} : vector<16x96xf32> to vector<16x32xf32>
    %315 = arith.mulf %313, %295 : vector<16x32xf32>
    %316 = arith.mulf %312, %311 : vector<16x32xf32>
    %317 = arith.addf %315, %316 : vector<16x32xf32>
    %318 = math.tanh %317 : vector<16x32xf32>
    %319 = arith.mulf %314, %318 : vector<16x32xf32>
    %c3_i32_105 = arith.constant 3 : i32
    %320 = arith.index_cast %c3_i32_105 : i32 to index
    %c0_106 = arith.constant 0 : index
    %c0_107 = arith.constant 0 : index
    %321 = vector.load %arg11[%320, %c0_106, %c0_107] : memref<8x16x128xf32, #tpu.memory_space<vmem>>, vector<1x16x128xf32>
    %322 = vector.shape_cast %321 : vector<1x16x128xf32> to vector<16x128xf32>
    %323 = arith.truncf %319 : vector<16x32xf32> to vector<16x32xbf16>
    %cst_108 = arith.constant dense<0.000000e+00> : vector<16x128xf32>
    %324 = tpu.matmul %323, %243, %cst_108 {dimension_numbers = #tpu.dot_dimension_numbers<[1], [0], [0], [1], [0, 0, 1, 1], [], []>} : vector<16x32xbf16>, vector<32x128xbf16>, vector<16x128xf32> -> vector<16x128xf32>
    %325 = arith.addf %322, %324 : vector<16x128xf32>
    %326 = vector.extract_strided_slice %325 {offsets = [0, 0], sizes = [16, 96], strides = [1, 1]} : vector<16x128xf32> to vector<16x96xf32>
    %327 = arith.negf %326 : vector<16x96xf32>
    %328 = math.exp %327 : vector<16x96xf32>
    %cst_109 = arith.constant 1.000000e+00 : f32
    %329 = vector.broadcast %cst_109 : f32 to vector<16x96xf32>
    %330 = arith.addf %329, %328 : vector<16x96xf32>
    %331 = arith.divf %329, %330 : vector<16x96xf32>
    %332 = vector.extract_strided_slice %325 {offsets = [0, 96], sizes = [16, 32], strides = [1, 1]} : vector<16x128xf32> to vector<16x32xf32>
    %333 = math.tanh %332 : vector<16x32xf32>
    %334 = vector.extract_strided_slice %331 {offsets = [0, 0], sizes = [16, 32], strides = [1, 1]} : vector<16x96xf32> to vector<16x32xf32>
    %335 = vector.extract_strided_slice %331 {offsets = [0, 32], sizes = [16, 32], strides = [1, 1]} : vector<16x96xf32> to vector<16x32xf32>
    %336 = vector.extract_strided_slice %331 {offsets = [0, 64], sizes = [16, 32], strides = [1, 1]} : vector<16x96xf32> to vector<16x32xf32>
    %337 = arith.mulf %335, %317 : vector<16x32xf32>
    %338 = arith.mulf %334, %333 : vector<16x32xf32>
    %339 = arith.addf %337, %338 : vector<16x32xf32>
    %340 = math.tanh %339 : vector<16x32xf32>
    %341 = arith.mulf %336, %340 : vector<16x32xf32>
    %c4_i32_110 = arith.constant 4 : i32
    %342 = arith.index_cast %c4_i32_110 : i32 to index
    %c0_111 = arith.constant 0 : index
    %c0_112 = arith.constant 0 : index
    %343 = vector.load %arg11[%342, %c0_111, %c0_112] : memref<8x16x128xf32, #tpu.memory_space<vmem>>, vector<1x16x128xf32>
    %344 = vector.shape_cast %343 : vector<1x16x128xf32> to vector<16x128xf32>
    %345 = arith.truncf %341 : vector<16x32xf32> to vector<16x32xbf16>
    %cst_113 = arith.constant dense<0.000000e+00> : vector<16x128xf32>
    %346 = tpu.matmul %345, %243, %cst_113 {dimension_numbers = #tpu.dot_dimension_numbers<[1], [0], [0], [1], [0, 0, 1, 1], [], []>} : vector<16x32xbf16>, vector<32x128xbf16>, vector<16x128xf32> -> vector<16x128xf32>
    %347 = arith.addf %344, %346 : vector<16x128xf32>
    %348 = vector.extract_strided_slice %347 {offsets = [0, 0], sizes = [16, 96], strides = [1, 1]} : vector<16x128xf32> to vector<16x96xf32>
    %349 = arith.negf %348 : vector<16x96xf32>
    %350 = math.exp %349 : vector<16x96xf32>
    %cst_114 = arith.constant 1.000000e+00 : f32
    %351 = vector.broadcast %cst_114 : f32 to vector<16x96xf32>
    %352 = arith.addf %351, %350 : vector<16x96xf32>
    %353 = arith.divf %351, %352 : vector<16x96xf32>
    %354 = vector.extract_strided_slice %347 {offsets = [0, 96], sizes = [16, 32], strides = [1, 1]} : vector<16x128xf32> to vector<16x32xf32>
    %355 = math.tanh %354 : vector<16x32xf32>
    %356 = vector.extract_strided_slice %353 {offsets = [0, 0], sizes = [16, 32], strides = [1, 1]} : vector<16x96xf32> to vector<16x32xf32>
    %357 = vector.extract_strided_slice %353 {offsets = [0, 32], sizes = [16, 32], strides = [1, 1]} : vector<16x96xf32> to vector<16x32xf32>
    %358 = vector.extract_strided_slice %353 {offsets = [0, 64], sizes = [16, 32], strides = [1, 1]} : vector<16x96xf32> to vector<16x32xf32>
    %359 = arith.mulf %357, %339 : vector<16x32xf32>
    %360 = arith.mulf %356, %355 : vector<16x32xf32>
    %361 = arith.addf %359, %360 : vector<16x32xf32>
    %362 = math.tanh %361 : vector<16x32xf32>
    %363 = arith.mulf %358, %362 : vector<16x32xf32>
    %c5_i32_115 = arith.constant 5 : i32
    %364 = arith.index_cast %c5_i32_115 : i32 to index
    %c0_116 = arith.constant 0 : index
    %c0_117 = arith.constant 0 : index
    %365 = vector.load %arg11[%364, %c0_116, %c0_117] : memref<8x16x128xf32, #tpu.memory_space<vmem>>, vector<1x16x128xf32>
    %366 = vector.shape_cast %365 : vector<1x16x128xf32> to vector<16x128xf32>
    %367 = arith.truncf %363 : vector<16x32xf32> to vector<16x32xbf16>
    %cst_118 = arith.constant dense<0.000000e+00> : vector<16x128xf32>
    %368 = tpu.matmul %367, %243, %cst_118 {dimension_numbers = #tpu.dot_dimension_numbers<[1], [0], [0], [1], [0, 0, 1, 1], [], []>} : vector<16x32xbf16>, vector<32x128xbf16>, vector<16x128xf32> -> vector<16x128xf32>
    %369 = arith.addf %366, %368 : vector<16x128xf32>
    %370 = vector.extract_strided_slice %369 {offsets = [0, 0], sizes = [16, 96], strides = [1, 1]} : vector<16x128xf32> to vector<16x96xf32>
    %371 = arith.negf %370 : vector<16x96xf32>
    %372 = math.exp %371 : vector<16x96xf32>
    %cst_119 = arith.constant 1.000000e+00 : f32
    %373 = vector.broadcast %cst_119 : f32 to vector<16x96xf32>
    %374 = arith.addf %373, %372 : vector<16x96xf32>
    %375 = arith.divf %373, %374 : vector<16x96xf32>
    %376 = vector.extract_strided_slice %369 {offsets = [0, 96], sizes = [16, 32], strides = [1, 1]} : vector<16x128xf32> to vector<16x32xf32>
    %377 = math.tanh %376 : vector<16x32xf32>
    %378 = vector.extract_strided_slice %375 {offsets = [0, 0], sizes = [16, 32], strides = [1, 1]} : vector<16x96xf32> to vector<16x32xf32>
    %379 = vector.extract_strided_slice %375 {offsets = [0, 32], sizes = [16, 32], strides = [1, 1]} : vector<16x96xf32> to vector<16x32xf32>
    %380 = vector.extract_strided_slice %375 {offsets = [0, 64], sizes = [16, 32], strides = [1, 1]} : vector<16x96xf32> to vector<16x32xf32>
    %381 = arith.mulf %379, %361 : vector<16x32xf32>
    %382 = arith.mulf %378, %377 : vector<16x32xf32>
    %383 = arith.addf %381, %382 : vector<16x32xf32>
    %384 = math.tanh %383 : vector<16x32xf32>
    %385 = arith.mulf %380, %384 : vector<16x32xf32>
    %c6_i32_120 = arith.constant 6 : i32
    %386 = arith.index_cast %c6_i32_120 : i32 to index
    %c0_121 = arith.constant 0 : index
    %c0_122 = arith.constant 0 : index
    %387 = vector.load %arg11[%386, %c0_121, %c0_122] : memref<8x16x128xf32, #tpu.memory_space<vmem>>, vector<1x16x128xf32>
    %388 = vector.shape_cast %387 : vector<1x16x128xf32> to vector<16x128xf32>
    %389 = arith.truncf %385 : vector<16x32xf32> to vector<16x32xbf16>
    %cst_123 = arith.constant dense<0.000000e+00> : vector<16x128xf32>
    %390 = tpu.matmul %389, %243, %cst_123 {dimension_numbers = #tpu.dot_dimension_numbers<[1], [0], [0], [1], [0, 0, 1, 1], [], []>} : vector<16x32xbf16>, vector<32x128xbf16>, vector<16x128xf32> -> vector<16x128xf32>
    %391 = arith.addf %388, %390 : vector<16x128xf32>
    %392 = vector.extract_strided_slice %391 {offsets = [0, 0], sizes = [16, 96], strides = [1, 1]} : vector<16x128xf32> to vector<16x96xf32>
    %393 = arith.negf %392 : vector<16x96xf32>
    %394 = math.exp %393 : vector<16x96xf32>
    %cst_124 = arith.constant 1.000000e+00 : f32
    %395 = vector.broadcast %cst_124 : f32 to vector<16x96xf32>
    %396 = arith.addf %395, %394 : vector<16x96xf32>
    %397 = arith.divf %395, %396 : vector<16x96xf32>
    %398 = vector.extract_strided_slice %391 {offsets = [0, 96], sizes = [16, 32], strides = [1, 1]} : vector<16x128xf32> to vector<16x32xf32>
    %399 = math.tanh %398 : vector<16x32xf32>
    %400 = vector.extract_strided_slice %397 {offsets = [0, 0], sizes = [16, 32], strides = [1, 1]} : vector<16x96xf32> to vector<16x32xf32>
    %401 = vector.extract_strided_slice %397 {offsets = [0, 32], sizes = [16, 32], strides = [1, 1]} : vector<16x96xf32> to vector<16x32xf32>
    %402 = vector.extract_strided_slice %397 {offsets = [0, 64], sizes = [16, 32], strides = [1, 1]} : vector<16x96xf32> to vector<16x32xf32>
    %403 = arith.mulf %401, %383 : vector<16x32xf32>
    %404 = arith.mulf %400, %399 : vector<16x32xf32>
    %405 = arith.addf %403, %404 : vector<16x32xf32>
    %406 = math.tanh %405 : vector<16x32xf32>
    %407 = arith.mulf %402, %406 : vector<16x32xf32>
    %c7_i32_125 = arith.constant 7 : i32
    %408 = arith.index_cast %c7_i32_125 : i32 to index
    %c0_126 = arith.constant 0 : index
    %c0_127 = arith.constant 0 : index
    %409 = vector.load %arg11[%408, %c0_126, %c0_127] : memref<8x16x128xf32, #tpu.memory_space<vmem>>, vector<1x16x128xf32>
    %410 = vector.shape_cast %409 : vector<1x16x128xf32> to vector<16x128xf32>
    %411 = arith.truncf %407 : vector<16x32xf32> to vector<16x32xbf16>
    %cst_128 = arith.constant dense<0.000000e+00> : vector<16x128xf32>
    %412 = tpu.matmul %411, %243, %cst_128 {dimension_numbers = #tpu.dot_dimension_numbers<[1], [0], [0], [1], [0, 0, 1, 1], [], []>} : vector<16x32xbf16>, vector<32x128xbf16>, vector<16x128xf32> -> vector<16x128xf32>
    %413 = arith.addf %410, %412 : vector<16x128xf32>
    %414 = vector.extract_strided_slice %413 {offsets = [0, 0], sizes = [16, 96], strides = [1, 1]} : vector<16x128xf32> to vector<16x96xf32>
    %415 = arith.negf %414 : vector<16x96xf32>
    %416 = math.exp %415 : vector<16x96xf32>
    %cst_129 = arith.constant 1.000000e+00 : f32
    %417 = vector.broadcast %cst_129 : f32 to vector<16x96xf32>
    %418 = arith.addf %417, %416 : vector<16x96xf32>
    %419 = arith.divf %417, %418 : vector<16x96xf32>
    %420 = vector.extract_strided_slice %413 {offsets = [0, 96], sizes = [16, 32], strides = [1, 1]} : vector<16x128xf32> to vector<16x32xf32>
    %421 = math.tanh %420 : vector<16x32xf32>
    %422 = vector.extract_strided_slice %419 {offsets = [0, 0], sizes = [16, 32], strides = [1, 1]} : vector<16x96xf32> to vector<16x32xf32>
    %423 = vector.extract_strided_slice %419 {offsets = [0, 32], sizes = [16, 32], strides = [1, 1]} : vector<16x96xf32> to vector<16x32xf32>
    %424 = vector.extract_strided_slice %419 {offsets = [0, 64], sizes = [16, 32], strides = [1, 1]} : vector<16x96xf32> to vector<16x32xf32>
    %425 = arith.mulf %423, %405 : vector<16x32xf32>
    %426 = arith.mulf %422, %421 : vector<16x32xf32>
    %427 = arith.addf %425, %426 : vector<16x32xf32>
    %428 = math.tanh %427 : vector<16x32xf32>
    %429 = arith.mulf %424, %428 : vector<16x32xf32>
    %c8_i32_130 = arith.constant 8 : i32
    %c1 = arith.constant 1 : index
    %c0_131 = arith.constant 0 : index
    %c0_132 = arith.constant 0 : index
    %430 = vector.load %arg8[%c1, %c0_131, %c0_132] : memref<2x16x32xf32, #tpu.memory_space<vmem>>, vector<1x16x32xf32>
    %431 = vector.shape_cast %430 : vector<1x16x32xf32> to vector<16x32xf32>
    %432 = vector.shape_cast %429 : vector<16x32xf32> to vector<1x16x32xf32>
    tpu.vector_store %arg8[%c1, %c0_131, %c0_132], %432 {strides = array<i32>} : memref<2x16x32xf32, #tpu.memory_space<vmem>>, vector<1x16x32xf32>,
    %c1_133 = arith.constant 1 : index
    %c0_134 = arith.constant 0 : index
    %c0_135 = arith.constant 0 : index
    %433 = vector.load %arg9[%c1_133, %c0_134, %c0_135] : memref<2x16x32xf32, #tpu.memory_space<vmem>>, vector<1x16x32xf32>
    %434 = vector.shape_cast %433 : vector<1x16x32xf32> to vector<16x32xf32>
    %435 = vector.shape_cast %427 : vector<16x32xf32> to vector<1x16x32xf32>
    tpu.vector_store %arg9[%c1_133, %c0_134, %c0_135], %435 {strides = array<i32>} : memref<2x16x32xf32, #tpu.memory_space<vmem>>, vector<1x16x32xf32>,
    return
  }
  func.func @transform_0(%arg0: i32) -> (i32, i32, i32) {
    %c0_i32 = arith.constant 0 : i32
    %c0_i32_0 = arith.constant 0 : i32
    %c0_i32_1 = arith.constant 0 : i32
    %c0_i32_2 = arith.constant 0 : i32
    return %c0_i32, %c0_i32_0, %c0_i32_1 : i32, i32, i32
  }
  func.func @transform_1(%arg0: i32) -> (i32, i32) {
    %c0_i32 = arith.constant 0 : i32
    %c0_i32_0 = arith.constant 0 : i32
    %c0_i32_1 = arith.constant 0 : i32
    return %c0_i32, %c0_i32_0 : i32, i32
  }
  func.func @transform_2(%arg0: i32) -> (i32, i32) {
    %c0_i32 = arith.constant 0 : i32
    %c0_i32_0 = arith.constant 0 : i32
    %c0_i32_1 = arith.constant 0 : i32
    return %c0_i32, %c0_i32_0 : i32, i32
  }
  func.func @transform_3(%arg0: i32) -> (i32, i32) {
    %c0_i32 = arith.constant 0 : i32
    %c0_i32_0 = arith.constant 0 : i32
    %c0_i32_1 = arith.constant 0 : i32
    return %c0_i32, %c0_i32_0 : i32, i32
  }
  func.func @transform_4(%arg0: i32) -> (i32, i32) {
    %c0_i32 = arith.constant 0 : i32
    %c0_i32_0 = arith.constant 0 : i32
    %c0_i32_1 = arith.constant 0 : i32
    return %c0_i32, %c0_i32_0 : i32, i32
  }
  func.func @transform_5(%arg0: i32) -> (i32, i32) {
    %c0_i32 = arith.constant 0 : i32
    %c0_i32_0 = arith.constant 0 : i32
    %c0_i32_1 = arith.constant 0 : i32
    return %c0_i32, %c0_i32_0 : i32, i32
  }
  func.func @transform_6(%arg0: i32) -> (i32, i32) {
    %c0_i32 = arith.constant 0 : i32
    %c0_i32_0 = arith.constant 0 : i32
    %c0_i32_1 = arith.constant 0 : i32
    return %c0_i32, %c0_i32_0 : i32, i32
  }
  func.func @transform_7(%arg0: i32) -> (i32, i32, i32) {
    %c0_i32 = arith.constant 0 : i32
    %c0_i32_0 = arith.constant 0 : i32
    %c0_i32_1 = arith.constant 0 : i32
    %c0_i32_2 = arith.constant 0 : i32
    return %c0_i32, %c0_i32_0, %c0_i32_1 : i32, i32, i32
  }
  func.func @transform_8(%arg0: i32) -> (i32, i32, i32) {
    %c0_i32 = arith.constant 0 : i32
    %c0_i32_0 = arith.constant 0 : i32
    %c0_i32_1 = arith.constant 0 : i32
    %c0_i32_2 = arith.constant 0 : i32
    return %c0_i32, %c0_i32_0, %c0_i32_1 : i32, i32, i32
  }
}

</mosaic_0001>

<bundles_post_ra>
// kernel: encoder_forward.1
= control target key start
LH: loop header
LB: loop body
LE: loop exit
PB: predicated region body
PF: predicated region fallthrough
CT: control target
= control target key end

     0   :  { %vm101_vm0 = vcmask 130048   ;;  %v2572_v4 = vmov 0   ;;  %s2573_s13 = smov 32   ;;  %s2574_s16 = smov 64   ;;  %vm205_vm9 = vcmask 261120   ;;  %s3186_s1 = inlined_call_operand.vmem [shape: bf16[16,128], index: 1, kind: input, shape index: {}]   ;;  %s3187_s2 = inlined_call_operand.vmem [shape: bf16[32,128], index: 2, kind: input, shape index: {}]   ;;  %s3188_s0 = inlined_call_operand.vmem [shape: bf16[8,16,16], index: 0, kind: input, shape index: {}]   ;;  %s3189_s3 = inlined_call_operand.vmem [shape: f32[1,128], index: 3, kind: input, shape index: {}]   ;;  %s3190_s4 = inlined_call_operand.vmem [shape: bf16[32,128], index: 4, kind: input, shape index: {}]   ;;  %s3191_s6 = inlined_call_operand.vmem [shape: f32[1,128], index: 6, kind: input, shape index: {}]   ;;  %s3192_s5 = inlined_call_operand.vmem [shape: bf16[32,128], index: 5, kind: input, shape index: {}]   ;;  %s3193_s7 = inlined_call_operand.vmem [shape: f32[2,16,32], index: 7, kind: output, shape index: {0}]   ;;  %s3194_s8 = inlined_call_operand.vmem [shape: f32[2,16,32], index: 8, kind: output, shape index: {1}]  }
   0x1   :  { %v2284_v0 = vld [vmem:[%s3186_s1] sm:$0xff]  ;;  %v2627_v1 = vld [vmem:[%s3187_s2 + $0x8] sm:$0xff] }
   0x2   :  { %v2287_v2 = vld [vmem:[%s3188_s0] sm:$0xff]  ;;  %133 = vmatpush.bf16.msra.mxu0 %v2284_v0  ;;  %215 = vmatpush.bf16.msra.mxu1 %v2627_v1  ;;  %v2288_v54 = vld [vmem:[%s3188_s0 + $0x8] sm:$0xff] }
   0x3   :  { %v2636_v3 = vld [vmem:[%s3187_s2] sm:$0xff]  ;;  %329 = vmatpush.bf16.msra.mxu2 %v2627_v1 }
   0x4   :  { %v2652_v5 = vld [vmem:[%s3189_s3] ss:$0 sm:$0xff] }
   0x5   :  { %2162 = vmatmul.msk.bf16.vlgmr.msra.gmra.mxu0 %vm101_vm0, %v2287_v2 }
   0x6   :  { %216 = vmatpush.bf16.msra.mxu1 %v2636_v3 }
   0x7   :  { %330 = vmatpush.bf16.msra.mxu2 %v2636_v3 }
   0x9   :  { %217 = vmatmul.bf16.vlgmr.msra.gmra.mxu1 %v2572_v4 }
   0xa   :  { %443 = vmatpush.bf16.msrb.mxu1 %v2627_v1 }
   0xb   :  { %671 = vmatpush.bf16.msrb.mxu2 %v2627_v1 }
   0xe   :  { %444 = vmatpush.bf16.msrb.mxu1 %v2636_v3 }
   0xf   :  { %672 = vmatpush.bf16.msrb.mxu2 %v2636_v3 }
  0x12   :  { %557 = vmatpush.bf16.msra.mxu1 %v2627_v1 }
  0x15   :  { %2163 = vmatmul.msk.bf16.gmra.mxu0 %vm101_vm0, %v2288_v54 }
  0x16   :  { %558 = vmatpush.bf16.msra.mxu1 %v2636_v3 }
  0x82   :  { %v135_v6 = vpop.f32.mrf.mxu0 }
  0x83   :  { %v136_v7 = vadd.f32 %v2652_v5, %v135_v6 }
  0x86   :  { %v218_v8 = vpop.f32.mrf.mxu1 }
  0x87   :  { %v223_v9 = vadd.f32 %v218_v8, %v136_v7 }
  0x89   :  { %2313 = vtanh.f32 %v223_v9  ;;  %v2178_v16 = vmul.f32 -1.442695, %v223_v9 }
  0x8a   :  { %v137_v10 = vpop.f32.mrf.mxu0 }
  0x8b   :  { %v138_v11 = vadd.f32 %v2652_v5, %v137_v10 }
  0x8e   :  { %v220_v12 = vpop.f32.mrf.mxu1 }
  0x8f   :  { %v2314_v13 = vpop.eup %2313  ;;  %v224_v14 = vadd.f32 %v220_v12, %v138_v11 }
  0x90   :  { %269 = vrot.lane.b32.xlu0 %v2314_v13, %s2573_s13 }
  0x91   :  { %2315 = vtanh.f32 %v224_v14  ;;  %v2179_v17 = vmul.f32 -1.442695, %v224_v14 }
  0x92   :  { %2317 = vpow2.f32 %v2178_v16  ;;  %v140_v2 = vpop.f32.mrf.mxu0 }
  0x93   :  { %2319 = vpow2.f32 %v2179_v17  ;;  %v141_v6 = vadd.f32 %v2652_v5, %v140_v2 }
  0x97   :  { %v2316_v15 = vpop.eup %2315 }
  0x98   :  { %271 = vrot.lane.b32.xlu0 %v2316_v15, %s2573_s13  ;;  %v2318_v18 = vpop.eup %2317 }
  0x99   :  { %v231_v19 = vadd.f32 1.0, %v2318_v18  ;;  %v2320_v20 = vpop.eup %2319 }
  0x9a   :  { %v232_v21 = vadd.f32 1.0, %v2320_v20  ;;  %v142_v9 = vpop.f32.mrf.mxu0 }
  0x9b   :  { %2321 = vrcp.f32 %v231_v19  ;;  %v244_v30 = vand.u32 2147483648, %v231_v19  ;;  %vm238_vm2 = vweird.f32 %v231_v19  ;;  %v242_v31 = vand.u32 2147483647, %v231_v19 }
  0x9c   :  { %2323 = vrcp.f32 %v232_v21  ;;  %v259_v39 = vand.u32 2147483648, %v232_v21  ;;  %vm253_vm6 = vweird.f32 %v232_v21  ;;  %v257_v40 = vand.u32 2147483647, %v232_v21 }
  0x9d   :  { %v245_v34 = vor.u32 1.1754944e-38, %v244_v30  ;;  %vm243_vm4 = vcmp.eq.f32.partialorder %v242_v31, 8.507059e+37  ;;  %v143_v10 = vadd.f32 %v2652_v5, %v142_v9 }
  0x9e   :  { %v260_v42 = vor.u32 1.1754944e-38, %v259_v39  ;;  %vm258_vm8 = vcmp.eq.f32.partialorder %v257_v40, 8.507059e+37 }
  0xa1   :  { %v2322_v22 = vpop.eup %2321 }
  0xa2   :  { %v234_v23 = vmul.f32 %v2322_v22, %v231_v19  ;;  %v2324_v25 = vpop.eup %2323  ;;  %vm239_vm1 = vweird.f32 %v2322_v22 }
  0xa3   :  { %v249_v27 = vmul.f32 %v2324_v25, %v232_v21  ;;  %vm240_vm3 = vmor %vm238_vm2, %vm239_vm1  ;;  %vm254_vm5 = vweird.f32 %v2324_v25 }
  0xa4   :  { %v235_v24 = vsub.f32 1.0, %v234_v23  ;;  %vm255_vm7 = vmor %vm253_vm6, %vm254_vm5 }
  0xa5   :  { %v250_v29 = vsub.f32 1.0, %v249_v27 }
  0xa6   :  { %v236_v26 = vmul.f32 %v2322_v22, %v235_v24 }
  0xa7   :  { %v251_v33 = vmul.f32 %v2324_v25, %v250_v29 }
  0xa8   :  { %v237_v28 = vadd.f32 %v2322_v22, %v236_v26 }
  0xa9   :  { %v252_v38 = vadd.f32 %v2324_v25, %v251_v33 }
  0xaa   :  { %v241_v32 = vsel %vm240_vm3, %v2322_v22, %v237_v28 }
  0xab   :  { %v246_v36 = vsel %vm243_vm4, %v245_v34, %v241_v32  ;;  %v256_v41 = vsel %vm255_vm7, %v2324_v25, %v252_v38 }
  0xac   :  { %v261_v43 = vsel %vm258_vm8, %v260_v42, %v256_v41  ;;  %v265_v46 = vmul.f32 0.0, %v246_v36 }
  0xad   :  { %v266_v49 = vmul.f32 0.0, %v261_v43 }
 0x102   :  { %v270_v35 = vpop.permute.xlu0 %269 }
 0x103   :  { %v275_v37 = vmul.f32 %v270_v35, %v246_v36 }
 0x105   :  { %279 = vrot.lane.b32.xlu1 %v275_v37, %s2573_s13 }
 0x10a   :  { %v272_v44 = vpop.permute.xlu0 %271 }
 0x10b   :  { %v276_v45 = vmul.f32 %v272_v44, %v261_v43 }
 0x10d   :  { %281 = vrot.lane.b32.xlu1 %v276_v45, %s2573_s13 }
 0x177   :  { %v280_v47 = vpop.permute.xlu1 %279 }
 0x178   :  { %v2660_v48 = vadd.f32 %v280_v47, %v265_v46 }
 0x17a   :  { %2325 = vtanh.f32 %v2660_v48 }
 0x17f   :  { %v282_v50 = vpop.permute.xlu1 %281 }
 0x180   :  { %v2326_v51 = vpop.eup %2325  ;;  %v2663_v52 = vadd.f32 %v282_v50, %v266_v49 }
 0x181   :  { %291 = vrot.lane.b32.xlu2 %v2326_v51, %s2573_s13 }
 0x182   :  { %2327 = vtanh.f32 %v2663_v52 }
 0x188   :  { %v2328_v53 = vpop.eup %2327 }
 0x189   :  { %293 = vrot.lane.b32.xlu2 %v2328_v53, %s2573_s13 }
 0x1db   :  { %v292_v55 = vpop.permute.xlu2 %291 }
 0x1dc   :  { %v297_v56 = vmul.f32 %v292_v55, %v246_v36 }
 0x1de   :  { %v2672_v58 = vpack.c.bf16 %v297_v56, %v297_v56 }
 0x1e0   :  { %v315_v61 = vunpack.c.l.b16 %v2672_v58 }
 0x1e3   :  { %v294_v57 = vpop.permute.xlu2 %293 }
 0x1e4   :  { %v298_v59 = vmul.f32 %v294_v57, %v261_v43 }
 0x1e6   :  { %v2674_v60 = vpack.c.bf16 %v298_v59, %v298_v59 }
 0x1e8   :  { %v316_v62 = vunpack.c.l.b16 %v2674_v60 }
 0x1ea   :  { %v317_v63 = vpack.c.b16 %v316_v62, %v315_v61 }
 0x1ec   :  { %318 = vrot.lane.b32.xlu0 %v317_v63, %s2574_s16 }
 0x25e   :  { %v319_v0 = vpop.permute.xlu0 %318 }
 0x25f   :  { %2180 = vmatmul.msk.bf16.vlgmr.msra.gmra.mxu2 %vm205_vm9, %v319_v0 }
 0x260   :  { %785 = vmatpush.bf16.msra.mxu2 %v2627_v1 }
 0x264   :  { %786 = vmatpush.bf16.msra.mxu2 %v2636_v3 }
 0x2e2   :  { %v332_v7 = vpop.f32.mrf.mxu2 }
 0x2e3   :  { %v337_v8 = vadd.f32 %v332_v7, %v141_v6 }
 0x2e5   :  { %2329 = vtanh.f32 %v337_v8  ;;  %v2181_v18 = vmul.f32 -1.442695, %v337_v8 }
 0x2ea   :  { %v334_v11 = vpop.f32.mrf.mxu2 }
 0x2eb   :  { %v2330_v12 = vpop.eup %2329  ;;  %v338_v13 = vadd.f32 %v334_v11, %v143_v10 }
 0x2ec   :  { %383 = vrot.lane.b32.xlu1 %v2330_v12, %s2573_s13 }
 0x2ed   :  { %2331 = vtanh.f32 %v338_v13  ;;  %v2182_v15 = vmul.f32 -1.442695, %v338_v13 }
 0x2ef   :  { %2333 = vpow2.f32 %v2182_v15 }
 0x2f3   :  { %v2332_v14 = vpop.eup %2331 }
 0x2f4   :  { %385 = vrot.lane.b32.xlu2 %v2332_v14, %s2573_s13 }
 0x2f5   :  { %v2334_v16 = vpop.eup %2333 }
 0x2f6   :  { %v346_v17 = vadd.f32 1.0, %v2334_v16 }
 0x2f8   :  { %2335 = vrcp.f32 %v346_v17  ;;  %v373_v27 = vand.u32 2147483648, %v346_v17  ;;  %vm367_vm11 = vweird.f32 %v346_v17  ;;  %v371_v28 = vand.u32 2147483647, %v346_v17 }
 0x2f9   :  { %2337 = vpow2.f32 %v2181_v18 }
 0x2fa   :  { %v374_v31 = vor.u32 1.1754944e-38, %v373_v27  ;;  %vm372_vm13 = vcmp.eq.f32.partialorder %v371_v28, 8.507059e+37 }
 0x2fe   :  { %v2336_v19 = vpop.eup %2335 }
 0x2ff   :  { %v2338_v20 = vpop.eup %2337  ;;  %v363_v21 = vmul.f32 %v2336_v19, %v346_v17  ;;  %vm368_vm10 = vweird.f32 %v2336_v19 }
 0x300   :  { %v345_v22 = vadd.f32 1.0, %v2338_v20  ;;  %vm369_vm12 = vmor %vm367_vm11, %vm368_vm10 }
 0x301   :  { %v364_v23 = vsub.f32 1.0, %v363_v21 }
 0x302   :  { %2339 = vrcp.f32 %v345_v22  ;;  %v358_v38 = vand.u32 2147483648, %v345_v22  ;;  %vm352_vm15 = vweird.f32 %v345_v22  ;;  %v356_v39 = vand.u32 2147483647, %v345_v22 }
 0x303   :  { %v365_v24 = vmul.f32 %v2336_v19, %v364_v23 }
 0x304   :  { %v359_v41 = vor.u32 1.1754944e-38, %v358_v38  ;;  %vm357_vm2 = vcmp.eq.f32.partialorder %v356_v39, 8.507059e+37 }
 0x305   :  { %v366_v25 = vadd.f32 %v2336_v19, %v365_v24 }
 0x307   :  { %v370_v29 = vsel %vm369_vm12, %v2336_v19, %v366_v25 }
 0x308   :  { %v2340_v26 = vpop.eup %2339  ;;  %v375_v33 = vsel %vm372_vm13, %v374_v31, %v370_v29 }
 0x309   :  { %v348_v30 = vmul.f32 %v2340_v26, %v345_v22  ;;  %vm353_vm14 = vweird.f32 %v2340_v26  ;;  %v380_v45 = vmul.f32 %v375_v33, %v2663_v52  ;;  %v2289_v52 = vld [vmem:[%s3188_s0 + $0x10] sm:$0xff] }
 0x30a   :  { %vm354_vm1 = vmor %vm352_vm15, %vm353_vm14  ;;  %2164 = vmatmul.msk.bf16.gmra.mxu0 %vm101_vm0, %v2289_v52 }
 0x30b   :  { %v349_v35 = vsub.f32 1.0, %v348_v30 }
 0x30d   :  { %v350_v36 = vmul.f32 %v2340_v26, %v349_v35 }
 0x30f   :  { %v351_v37 = vadd.f32 %v2340_v26, %v350_v36 }
 0x311   :  { %v355_v40 = vsel %vm354_vm1, %v2340_v26, %v351_v37 }
 0x312   :  { %v360_v43 = vsel %vm357_vm2, %v359_v41, %v355_v40 }
 0x313   :  { %v379_v50 = vmul.f32 %v360_v43, %v2660_v48 }
 0x34e   :  { %v386_v32 = vpop.permute.xlu2 %385 }
 0x34f   :  { %v390_v34 = vmul.f32 %v386_v32, %v375_v33 }
 0x351   :  { %395 = vrot.lane.b32.xlu1 %v390_v34, %s2573_s13 }
 0x35e   :  { %v384_v42 = vpop.permute.xlu1 %383 }
 0x35f   :  { %v389_v44 = vmul.f32 %v384_v42, %v360_v43 }
 0x361   :  { %393 = vrot.lane.b32.xlu0 %v389_v44, %s2573_s13 }
 0x387   :  { %v145_v6 = vpop.f32.mrf.mxu0 }
 0x388   :  { %v146_v7 = vadd.f32 %v2652_v5, %v145_v6 }
 0x38f   :  { %v147_v10 = vpop.f32.mrf.mxu0 }
 0x390   :  { %v148_v11 = vadd.f32 %v2652_v5, %v147_v10 }
 0x3c3   :  { %v396_v46 = vpop.permute.xlu1 %395 }
 0x3c4   :  { %v2689_v47 = vadd.f32 %v396_v46, %v380_v45 }
 0x3c6   :  { %2341 = vtanh.f32 %v2689_v47 }
 0x3cc   :  { %v2342_v49 = vpop.eup %2341 }
 0x3cd   :  { %407 = vrot.lane.b32.xlu0 %v2342_v49, %s2573_s13 }
 0x3d3   :  { %v394_v51 = vpop.permute.xlu0 %393 }
 0x3d4   :  { %v2694_v53 = vadd.f32 %v394_v51, %v379_v50 }
 0x3d6   :  { %2343 = vtanh.f32 %v2694_v53 }
 0x3dc   :  { %v2344_v54 = vpop.eup %2343 }
 0x3dd   :  { %405 = vrot.lane.b32.xlu2 %v2344_v54, %s2573_s13 }
 0x437   :  { %v406_v55 = vpop.permute.xlu2 %405 }
 0x438   :  { %v411_v56 = vmul.f32 %v406_v55, %v360_v43 }
 0x43a   :  { %v2702_v59 = vpack.c.bf16 %v411_v56, %v411_v56 }
 0x43c   :  { %v429_v62 = vunpack.c.l.b16 %v2702_v59 }
 0x43f   :  { %v408_v57 = vpop.permute.xlu0 %407 }
 0x440   :  { %v412_v48 = vmul.f32 %v408_v57, %v375_v33 }
 0x442   :  { %v2704_v61 = vpack.c.bf16 %v412_v48, %v412_v48 }
 0x444   :  { %v430_v63 = vunpack.c.l.b16 %v2704_v61 }
 0x446   :  { %v431_v0 = vpack.c.b16 %v430_v63, %v429_v62 }
 0x448   :  { %432 = vrot.lane.b32.xlu1 %v431_v0, %s2574_s16 }
 0x4ba   :  { %v433_v2 = vpop.permute.xlu1 %432 }
 0x4bb   :  { %2183 = vmatmul.msk.bf16.vlgmr.msrb.gmra.mxu1 %vm205_vm9, %v433_v2 }
 0x4bc   :  { %899 = vmatpush.bf16.msrb.mxu1 %v2627_v1 }
 0x4c0   :  { %900 = vmatpush.bf16.msrb.mxu1 %v2636_v3 }
 0x538   :  { %v446_v8 = vpop.f32.mrf.mxu1 }
 0x539   :  { %v451_v9 = vadd.f32 %v446_v8, %v146_v7 }
 0x53b   :  { %2345 = vtanh.f32 %v451_v9  ;;  %v2184_v16 = vmul.f32 -1.442695, %v451_v9 }
 0x540   :  { %v448_v12 = vpop.f32.mrf.mxu1 }
 0x541   :  { %v2346_v13 = vpop.eup %2345  ;;  %v452_v14 = vadd.f32 %v448_v12, %v148_v11 }
 0x542   :  { %497 = vrot.lane.b32.xlu2 %v2346_v13, %s2573_s13 }
 0x543   :  { %2347 = vtanh.f32 %v452_v14  ;;  %v2185_v22 = vmul.f32 -1.442695, %v452_v14 }
 0x544   :  { %2349 = vpow2.f32 %v2184_v16 }
 0x549   :  { %v2348_v15 = vpop.eup %2347 }
 0x54a   :  { %499 = vrot.lane.b32.xlu0 %v2348_v15, %s2573_s13  ;;  %v2350_v17 = vpop.eup %2349 }
 0x54b   :  { %v459_v18 = vadd.f32 1.0, %v2350_v17 }
 0x54d   :  { %2351 = vrcp.f32 %v459_v18  ;;  %v472_v25 = vand.u32 2147483648, %v459_v18  ;;  %vm466_vm4 = vweird.f32 %v459_v18  ;;  %v470_v26 = vand.u32 2147483647, %v459_v18 }
 0x54e   :  { %2353 = vpow2.f32 %v2185_v22 }
 0x54f   :  { %v473_v29 = vor.u32 1.1754944e-38, %v472_v25  ;;  %vm471_vm6 = vcmp.eq.f32.partialorder %v470_v26, 8.507059e+37 }
 0x553   :  { %v2352_v19 = vpop.eup %2351 }
 0x554   :  { %v462_v20 = vmul.f32 %v2352_v19, %v459_v18  ;;  %vm467_vm3 = vweird.f32 %v2352_v19  ;;  %v2354_v27 = vpop.eup %2353 }
 0x555   :  { %vm468_vm5 = vmor %vm466_vm4, %vm467_vm3  ;;  %v460_v30 = vadd.f32 1.0, %v2354_v27 }
 0x556   :  { %v463_v21 = vsub.f32 1.0, %v462_v20 }
 0x557   :  { %2355 = vrcp.f32 %v460_v30  ;;  %v487_v39 = vand.u32 2147483648, %v460_v30  ;;  %vm481_vm8 = vweird.f32 %v460_v30  ;;  %v485_v40 = vand.u32 2147483647, %v460_v30 }
 0x558   :  { %v464_v23 = vmul.f32 %v2352_v19, %v463_v21 }
 0x559   :  { %v488_v42 = vor.u32 1.1754944e-38, %v487_v39  ;;  %vm486_vm11 = vcmp.eq.f32.partialorder %v485_v40, 8.507059e+37 }
 0x55a   :  { %v465_v24 = vadd.f32 %v2352_v19, %v464_v23 }
 0x55c   :  { %v469_v28 = vsel %vm468_vm5, %v2352_v19, %v465_v24 }
 0x55d   :  { %v474_v32 = vsel %vm471_vm6, %v473_v29, %v469_v28  ;;  %v2356_v34 = vpop.eup %2355 }
 0x55e   :  { %v477_v35 = vmul.f32 %v2356_v34, %v460_v30  ;;  %vm482_vm7 = vweird.f32 %v2356_v34  ;;  %v493_v46 = vmul.f32 %v474_v32, %v2694_v53  ;;  %v2290_v53 = vld [vmem:[%s3188_s0 + $0x18] sm:$0xff] }
 0x55f   :  { %vm483_vm10 = vmor %vm481_vm8, %vm482_vm7  ;;  %2165 = vmatmul.msk.bf16.gmra.mxu0 %vm101_vm0, %v2290_v53 }
 0x560   :  { %v478_v36 = vsub.f32 1.0, %v477_v35 }
 0x562   :  { %v479_v37 = vmul.f32 %v2356_v34, %v478_v36 }
 0x564   :  { %v480_v38 = vadd.f32 %v2356_v34, %v479_v37 }
 0x566   :  { %v484_v41 = vsel %vm483_vm10, %v2356_v34, %v480_v38 }
 0x567   :  { %v489_v44 = vsel %vm486_vm11, %v488_v42, %v484_v41 }
 0x568   :  { %v494_v51 = vmul.f32 %v489_v44, %v2689_v47 }
 0x59c   :  { %v498_v31 = vpop.permute.xlu2 %497 }
 0x59d   :  { %v503_v33 = vmul.f32 %v498_v31, %v474_v32 }
 0x59f   :  { %507 = vrot.lane.b32.xlu1 %v503_v33, %s2573_s13 }
 0x5bc   :  { %v500_v43 = vpop.permute.xlu0 %499 }
 0x5bd   :  { %v504_v45 = vmul.f32 %v500_v43, %v489_v44 }
 0x5bf   :  { %509 = vrot.lane.b32.xlu2 %v504_v45, %s2573_s13 }
 0x5dc   :  { %v150_v9 = vpop.f32.mrf.mxu0 }
 0x5dd   :  { %v151_v10 = vadd.f32 %v2652_v5, %v150_v9 }
 0x5e4   :  { %v152_v13 = vpop.f32.mrf.mxu0 }
 0x5e5   :  { %v153_v14 = vadd.f32 %v2652_v5, %v152_v13 }
 0x611   :  { %v508_v49 = vpop.permute.xlu1 %507 }
 0x612   :  { %v2719_v50 = vadd.f32 %v508_v49, %v493_v46 }
 0x614   :  { %2357 = vtanh.f32 %v2719_v50 }
 0x619   :  { %v510_v54 = vpop.permute.xlu2 %509 }
 0x61a   :  { %v2358_v52 = vpop.eup %2357  ;;  %v2723_v55 = vadd.f32 %v510_v54, %v494_v51 }
 0x61b   :  { %519 = vrot.lane.b32.xlu0 %v2358_v52, %s2573_s13 }
 0x61c   :  { %2359 = vtanh.f32 %v2723_v55 }
 0x622   :  { %v2360_v56 = vpop.eup %2359 }
 0x623   :  { %521 = vrot.lane.b32.xlu1 %v2360_v56, %s2573_s13 }
 0x68d   :  { %v520_v57 = vpop.permute.xlu0 %519 }
 0x68e   :  { %v525_v48 = vmul.f32 %v520_v57, %v474_v32 }
 0x690   :  { %v2732_v62 = vpack.c.bf16 %v525_v48, %v525_v48 }
 0x692   :  { %v543_v2 = vunpack.c.l.b16 %v2732_v62 }
 0x695   :  { %v522_v47 = vpop.permute.xlu1 %521 }
 0x696   :  { %v526_v63 = vmul.f32 %v522_v47, %v489_v44 }
 0x698   :  { %v2734_v0 = vpack.c.bf16 %v526_v63, %v526_v63 }
 0x69a   :  { %v544_v6 = vunpack.c.l.b16 %v2734_v0 }
 0x69c   :  { %v545_v7 = vpack.c.b16 %v544_v6, %v543_v2 }
 0x69e   :  { %546 = vrot.lane.b32.xlu2 %v545_v7, %s2574_s16 }
 0x6f8   :  { %v547_v8 = vpop.permute.xlu2 %546 }
 0x6f9   :  { %2186 = vmatmul.msk.bf16.vlgmr.msra.gmra.mxu1 %vm205_vm9, %v547_v8 }
 0x776   :  { %v560_v11 = vpop.f32.mrf.mxu1 }
 0x777   :  { %v565_v12 = vadd.f32 %v560_v11, %v151_v10 }
 0x779   :  { %2361 = vtanh.f32 %v565_v12  ;;  %v2187_v19 = vmul.f32 -1.442695, %v565_v12 }
 0x77e   :  { %v562_v15 = vpop.f32.mrf.mxu1 }
 0x77f   :  { %v2362_v16 = vpop.eup %2361  ;;  %v566_v17 = vadd.f32 %v562_v15, %v153_v14 }
 0x780   :  { %611 = vrot.lane.b32.xlu0 %v2362_v16, %s2573_s13 }
 0x781   :  { %2363 = vtanh.f32 %v566_v17  ;;  %v2188_v20 = vmul.f32 -1.442695, %v566_v17 }
 0x782   :  { %2365 = vpow2.f32 %v2187_v19 }
 0x783   :  { %2367 = vpow2.f32 %v2188_v20 }
 0x787   :  { %v2364_v18 = vpop.eup %2363 }
 0x788   :  { %613 = vrot.lane.b32.xlu1 %v2364_v18, %s2573_s13  ;;  %v2366_v21 = vpop.eup %2365 }
 0x789   :  { %v573_v22 = vadd.f32 1.0, %v2366_v21  ;;  %v2368_v23 = vpop.eup %2367 }
 0x78a   :  { %v574_v24 = vadd.f32 1.0, %v2368_v23 }
 0x78b   :  { %2369 = vrcp.f32 %v573_v22  ;;  %v586_v33 = vand.u32 2147483648, %v573_v22  ;;  %vm580_vm13 = vweird.f32 %v573_v22  ;;  %v584_v34 = vand.u32 2147483647, %v573_v22 }
 0x78c   :  { %2371 = vrcp.f32 %v574_v24  ;;  %v601_v42 = vand.u32 2147483648, %v574_v24  ;;  %vm595_vm2 = vweird.f32 %v574_v24  ;;  %v599_v43 = vand.u32 2147483647, %v574_v24 }
 0x78d   :  { %v587_v37 = vor.u32 1.1754944e-38, %v586_v33  ;;  %vm585_vm15 = vcmp.eq.f32.partialorder %v584_v34, 8.507059e+37 }
 0x78e   :  { %v602_v45 = vor.u32 1.1754944e-38, %v601_v42  ;;  %vm600_vm4 = vcmp.eq.f32.partialorder %v599_v43, 8.507059e+37 }
 0x791   :  { %v2370_v25 = vpop.eup %2369 }
 0x792   :  { %v576_v26 = vmul.f32 %v2370_v25, %v573_v22  ;;  %v2372_v28 = vpop.eup %2371  ;;  %vm581_vm12 = vweird.f32 %v2370_v25 }
 0x793   :  { %v591_v30 = vmul.f32 %v2372_v28, %v574_v24  ;;  %vm582_vm14 = vmor %vm580_vm13, %vm581_vm12  ;;  %vm596_vm1 = vweird.f32 %v2372_v28 }
 0x794   :  { %v577_v27 = vsub.f32 1.0, %v576_v26  ;;  %vm597_vm3 = vmor %vm595_vm2, %vm596_vm1 }
 0x795   :  { %v592_v32 = vsub.f32 1.0, %v591_v30 }
 0x796   :  { %v578_v29 = vmul.f32 %v2370_v25, %v577_v27 }
 0x797   :  { %v593_v36 = vmul.f32 %v2372_v28, %v592_v32 }
 0x798   :  { %v579_v31 = vadd.f32 %v2370_v25, %v578_v29 }
 0x799   :  { %v594_v41 = vadd.f32 %v2372_v28, %v593_v36 }
 0x79a   :  { %v583_v35 = vsel %vm582_vm14, %v2370_v25, %v579_v31 }
 0x79b   :  { %v588_v39 = vsel %vm585_vm15, %v587_v37, %v583_v35  ;;  %v598_v44 = vsel %vm597_vm3, %v2372_v28, %v594_v41 }
 0x79c   :  { %v603_v49 = vsel %vm600_vm4, %v602_v45, %v598_v44  ;;  %v607_v54 = vmul.f32 %v588_v39, %v2719_v50  ;;  %v2291_v50 = vld [vmem:[%s3188_s0 + $0x20] sm:$0xff] }
 0x79d   :  { %v608_v57 = vmul.f32 %v603_v49, %v2723_v55  ;;  %2166 = vmatmul.msk.bf16.gmra.mxu0 %vm101_vm0, %v2291_v50 }
 0x7f2   :  { %v612_v38 = vpop.permute.xlu0 %611 }
 0x7f3   :  { %v617_v40 = vmul.f32 %v612_v38, %v588_v39 }
 0x7f5   :  { %621 = vrot.lane.b32.xlu2 %v617_v40, %s2573_s13 }
 0x7fa   :  { %v614_v46 = vpop.permute.xlu1 %613 }
 0x7fb   :  { %v618_v51 = vmul.f32 %v614_v46, %v603_v49 }
 0x7fd   :  { %623 = vrot.lane.b32.xlu0 %v618_v51, %s2573_s13 }
 0x81a   :  { %v155_v14 = vpop.f32.mrf.mxu0 }
 0x81b   :  { %v156_v15 = vadd.f32 %v2652_v5, %v155_v14 }
 0x822   :  { %v157_v18 = vpop.f32.mrf.mxu0 }
 0x823   :  { %v158_v19 = vadd.f32 %v2652_v5, %v157_v18 }
 0x84f   :  { %v622_v52 = vpop.permute.xlu2 %621 }
 0x850   :  { %v2747_v56 = vadd.f32 %v622_v52, %v607_v54 }
 0x852   :  { %2373 = vtanh.f32 %v2747_v56 }
 0x858   :  { %v2374_v53 = vpop.eup %2373 }
 0x859   :  { %633 = vrot.lane.b32.xlu1 %v2374_v53, %s2573_s13 }
 0x86f   :  { %v624_v48 = vpop.permute.xlu0 %623 }
 0x870   :  { %v2752_v47 = vadd.f32 %v624_v48, %v608_v57 }
 0x872   :  { %2375 = vtanh.f32 %v2752_v47 }
 0x878   :  { %v2376_v63 = vpop.eup %2375 }
 0x879   :  { %635 = vrot.lane.b32.xlu2 %v2376_v63, %s2573_s13 }
 0x8cb   :  { %v634_v2 = vpop.permute.xlu1 %633 }
 0x8cc   :  { %v639_v6 = vmul.f32 %v634_v2, %v588_v39 }
 0x8ce   :  { %v2760_v8 = vpack.c.bf16 %v639_v6, %v639_v6 }
 0x8d0   :  { %v657_v10 = vunpack.c.l.b16 %v2760_v8 }
 0x8d3   :  { %v636_v7 = vpop.permute.xlu2 %635 }
 0x8d4   :  { %v640_v55 = vmul.f32 %v636_v7, %v603_v49 }
 0x8d6   :  { %v2762_v9 = vpack.c.bf16 %v640_v55, %v640_v55 }
 0x8d8   :  { %v658_v11 = vunpack.c.l.b16 %v2762_v9 }
 0x8da   :  { %v659_v12 = vpack.c.b16 %v658_v11, %v657_v10 }
 0x8dc   :  { %660 = vrot.lane.b32.xlu0 %v659_v12, %s2574_s16 }
 0x94e   :  { %v661_v13 = vpop.permute.xlu0 %660 }
 0x94f   :  { %2189 = vmatmul.msk.bf16.vlgmr.msrb.gmra.mxu2 %vm205_vm9, %v661_v13 }
 0x950   :  { %1013 = vmatpush.bf16.msrb.mxu2 %v2627_v1 }
 0x954   :  { %1014 = vmatpush.bf16.msrb.mxu2 %v2636_v3 }
 0x9d2   :  { %v674_v16 = vpop.f32.mrf.mxu2 }
 0x9d3   :  { %v679_v17 = vadd.f32 %v674_v16, %v156_v15 }
 0x9d5   :  { %2377 = vtanh.f32 %v679_v17  ;;  %v2190_v25 = vmul.f32 -1.442695, %v679_v17 }
 0x9da   :  { %v676_v20 = vpop.f32.mrf.mxu2 }
 0x9db   :  { %v2378_v21 = vpop.eup %2377  ;;  %v680_v22 = vadd.f32 %v676_v20, %v158_v19 }
 0x9dc   :  { %725 = vrot.lane.b32.xlu1 %v2378_v21, %s2573_s13 }
 0x9dd   :  { %2379 = vtanh.f32 %v680_v22  ;;  %v2191_v1 = vmul.f32 -1.442695, %v680_v22 }
 0x9df   :  { %2381 = vpow2.f32 %v2191_v1 }
 0x9e3   :  { %v2380_v23 = vpop.eup %2379 }
 0x9e4   :  { %727 = vrot.lane.b32.xlu2 %v2380_v23, %s2573_s13 }
 0x9e5   :  { %v2382_v3 = vpop.eup %2381 }
 0x9e6   :  { %v688_v24 = vadd.f32 1.0, %v2382_v3 }
 0x9e8   :  { %2383 = vrcp.f32 %v688_v24  ;;  %v715_v34 = vand.u32 2147483648, %v688_v24  ;;  %vm709_vm6 = vweird.f32 %v688_v24  ;;  %v713_v35 = vand.u32 2147483647, %v688_v24 }
 0x9e9   :  { %2385 = vpow2.f32 %v2190_v25 }
 0x9ea   :  { %v716_v38 = vor.u32 1.1754944e-38, %v715_v34  ;;  %vm714_vm8 = vcmp.eq.f32.partialorder %v713_v35, 8.507059e+37 }
 0x9ee   :  { %v2384_v26 = vpop.eup %2383 }
 0x9ef   :  { %v2386_v27 = vpop.eup %2385  ;;  %v705_v28 = vmul.f32 %v2384_v26, %v688_v24  ;;  %vm710_vm5 = vweird.f32 %v2384_v26 }
 0x9f0   :  { %v687_v29 = vadd.f32 1.0, %v2386_v27  ;;  %vm711_vm7 = vmor %vm709_vm6, %vm710_vm5 }
 0x9f1   :  { %v706_v30 = vsub.f32 1.0, %v705_v28 }
 0x9f2   :  { %2387 = vrcp.f32 %v687_v29  ;;  %v700_v45 = vand.u32 2147483648, %v687_v29  ;;  %vm694_vm11 = vweird.f32 %v687_v29  ;;  %v698_v46 = vand.u32 2147483647, %v687_v29 }
 0x9f3   :  { %v707_v31 = vmul.f32 %v2384_v26, %v706_v30 }
 0x9f4   :  { %v701_v51 = vor.u32 1.1754944e-38, %v700_v45  ;;  %vm699_vm13 = vcmp.eq.f32.partialorder %v698_v46, 8.507059e+37 }
 0x9f5   :  { %v708_v32 = vadd.f32 %v2384_v26, %v707_v31 }
 0x9f7   :  { %v712_v36 = vsel %vm711_vm7, %v2384_v26, %v708_v32  ;;  %vm309_vm7 = vcmask 257024  }
 0x9f8   :  { %v2388_v33 = vpop.eup %2387  ;;  %v717_v40 = vsel %vm714_vm8, %v716_v38, %v712_v36 }
 0x9f9   :  { %v690_v37 = vmul.f32 %v2388_v33, %v687_v29  ;;  %vm695_vm10 = vweird.f32 %v2388_v33  ;;  %v722_v57 = vmul.f32 %v717_v40, %v2752_v47  ;;  %v2292_v47 = vld [vmem:[%s3188_s0 + $0x28] sm:$0xff] }
 0x9fa   :  { %vm696_vm12 = vmor %vm694_vm11, %vm695_vm10  ;;  %2167 = vmatmul.msk.bf16.gmra.mxu0 %vm101_vm0, %v2292_v47 }
 0x9fb   :  { %v691_v42 = vsub.f32 1.0, %v690_v37 }
 0x9fd   :  { %v692_v43 = vmul.f32 %v2388_v33, %v691_v42 }
 0x9ff   :  { %v693_v44 = vadd.f32 %v2388_v33, %v692_v43 }
 0xa01   :  { %v697_v49 = vsel %vm696_vm12, %v2388_v33, %v693_v44 }
 0xa02   :  { %v702_v52 = vsel %vm699_vm13, %v701_v51, %v697_v49 }
 0xa03   :  { %v721_v2 = vmul.f32 %v702_v52, %v2747_v56 }
 0xa3e   :  { %v728_v39 = vpop.permute.xlu2 %727 }
 0xa3f   :  { %v732_v41 = vmul.f32 %v728_v39, %v717_v40 }
 0xa41   :  { %737 = vrot.lane.b32.xlu1 %v732_v41, %s2573_s13 }
 0xa4e   :  { %v726_v54 = vpop.permute.xlu1 %725 }
 0xa4f   :  { %v731_v53 = vmul.f32 %v726_v54, %v702_v52 }
 0xa51   :  { %735 = vrot.lane.b32.xlu0 %v731_v53, %s2573_s13 }
 0xa77   :  { %v160_v19 = vpop.f32.mrf.mxu0 }
 0xa78   :  { %v161_v20 = vadd.f32 %v2652_v5, %v160_v19 }
 0xa7f   :  { %v162_v23 = vpop.f32.mrf.mxu0 }
 0xa80   :  { %v163_v1 = vadd.f32 %v2652_v5, %v162_v23 }
 0xab3   :  { %v738_v48 = vpop.permute.xlu1 %737 }
 0xab4   :  { %v2777_v63 = vadd.f32 %v738_v48, %v722_v57 }
 0xab6   :  { %2389 = vtanh.f32 %v2777_v63 }
 0xabc   :  { %v2390_v50 = vpop.eup %2389 }
 0xabd   :  { %749 = vrot.lane.b32.xlu0 %v2390_v50, %s2573_s13 }
 0xac3   :  { %v736_v6 = vpop.permute.xlu0 %735 }
 0xac4   :  { %v2782_v7 = vadd.f32 %v736_v6, %v721_v2 }
 0xac6   :  { %2391 = vtanh.f32 %v2782_v7 }
 0xacc   :  { %v2392_v55 = vpop.eup %2391 }
 0xacd   :  { %747 = vrot.lane.b32.xlu2 %v2392_v55, %s2573_s13 }
 0xb27   :  { %v748_v10 = vpop.permute.xlu2 %747 }
 0xb28   :  { %v753_v11 = vmul.f32 %v748_v10, %v702_v52 }
 0xb2a   :  { %v2790_v13 = vpack.c.bf16 %v753_v11, %v753_v11 }
 0xb2c   :  { %v771_v15 = vunpack.c.l.b16 %v2790_v13 }
 0xb2f   :  { %v750_v12 = vpop.permute.xlu0 %749 }
 0xb30   :  { %v754_v56 = vmul.f32 %v750_v12, %v717_v40 }
 0xb32   :  { %v2792_v14 = vpack.c.bf16 %v754_v56, %v754_v56 }
 0xb34   :  { %v772_v16 = vunpack.c.l.b16 %v2792_v14 }
 0xb36   :  { %v773_v17 = vpack.c.b16 %v772_v16, %v771_v15  ;;  %v2293_v16 = vld [vmem:[%s3188_s0 + $0x30] sm:$0xff] }
 0xb37   :  { %2168 = vmatmul.msk.bf16.gmra.mxu0 %vm101_vm0, %v2293_v16 }
 0xb38   :  { %774 = vrot.lane.b32.xlu1 %v773_v17, %s2574_s16 }
 0xbaa   :  { %v775_v18 = vpop.permute.xlu1 %774 }
 0xbab   :  { %2192 = vmatmul.msk.bf16.vlgmr.msra.gmra.mxu2 %vm205_vm9, %v775_v18 }
 0xc2e   :  { %v788_v21 = vpop.f32.mrf.mxu2 }
 0xc2f   :  { %v793_v22 = vadd.f32 %v788_v21, %v161_v20 }
 0xc31   :  { %2393 = vtanh.f32 %v793_v22  ;;  %v2193_v27 = vmul.f32 -1.442695, %v793_v22 }
 0xc36   :  { %v790_v3 = vpop.f32.mrf.mxu2 }
 0xc37   :  { %v2394_v24 = vpop.eup %2393  ;;  %v794_v25 = vadd.f32 %v790_v3, %v163_v1 }
 0xc38   :  { %839 = vrot.lane.b32.xlu2 %v2394_v24, %s2573_s13 }
 0xc39   :  { %2395 = vtanh.f32 %v794_v25  ;;  %v2194_v33 = vmul.f32 -1.442695, %v794_v25  ;;  %v2841_v25 = vld [vmem:[%s3192_s5 + $0x8] sm:$0xff] }
 0xc3a   :  { %2397 = vpow2.f32 %v2193_v27  ;;  %1319 = vmatpush.bf16.msra.mxu1 %v2841_v25  ;;  %1418 = vmatpush.bf16.msra.mxu2 %v2841_v25 }
 0xc3f   :  { %v2396_v26 = vpop.eup %2395 }
 0xc40   :  { %841 = vrot.lane.b32.xlu0 %v2396_v26, %s2573_s13  ;;  %v2398_v28 = vpop.eup %2397  ;;  %v2847_v26 = vld [vmem:[%s3192_s5] sm:$0xff] }
 0xc41   :  { %v801_v29 = vadd.f32 1.0, %v2398_v28  ;;  %1320 = vmatpush.bf16.msra.mxu1 %v2847_v26  ;;  %1419 = vmatpush.bf16.msra.mxu2 %v2847_v26  ;;  %v165_v28 = vpop.f32.mrf.mxu0 }
 0xc43   :  { %2399 = vrcp.f32 %v801_v29  ;;  %v814_v35 = vand.u32 2147483648, %v801_v29  ;;  %vm808_vm15 = vweird.f32 %v801_v29  ;;  %v812_v36 = vand.u32 2147483647, %v801_v29 }
 0xc44   :  { %2401 = vpow2.f32 %v2194_v33 }
 0xc45   :  { %v815_v39 = vor.u32 1.1754944e-38, %v814_v35  ;;  %vm813_vm2 = vcmp.eq.f32.partialorder %v812_v36, 8.507059e+37 }
 0xc49   :  { %v2400_v30 = vpop.eup %2399  ;;  %v167_v33 = vpop.f32.mrf.mxu0 }
 0xc4a   :  { %v804_v31 = vmul.f32 %v2400_v30, %v801_v29  ;;  %vm809_vm14 = vweird.f32 %v2400_v30  ;;  %v2402_v37 = vpop.eup %2401  ;;  %v2569_v29 = vld [vmem:[%s3189_s3] ss:$0 sm:$0xff] }
 0xc4b   :  { %vm810_vm1 = vmor %vm808_vm15, %vm809_vm14  ;;  %v802_v40 = vadd.f32 1.0, %v2402_v37 }
 0xc4c   :  { %v805_v32 = vsub.f32 1.0, %v804_v31 }
 0xc4d   :  { %2403 = vrcp.f32 %v802_v40  ;;  %v829_v54 = vand.u32 2147483648, %v802_v40  ;;  %vm823_vm4 = vweird.f32 %v802_v40  ;;  %v827_v52 = vand.u32 2147483647, %v802_v40 }
 0xc4e   :  { %v806_v34 = vmul.f32 %v2400_v30, %v805_v32 }
 0xc4f   :  { %v830_v57 = vor.u32 1.1754944e-38, %v829_v54  ;;  %vm828_vm6 = vcmp.eq.f32.partialorder %v827_v52, 8.507059e+37 }
 0xc50   :  { %v807_v5 = vadd.f32 %v2400_v30, %v806_v34  ;;  %v168_v34 = vadd.f32 %v2569_v29, %v167_v33 }
 0xc52   :  { %v811_v38 = vsel %vm810_vm1, %v2400_v30, %v807_v5  ;;  %v166_v30 = vadd.f32 %v2569_v29, %v165_v28 }
 0xc53   :  { %v816_v42 = vsel %vm813_vm2, %v815_v39, %v811_v38  ;;  %v2404_v44 = vpop.eup %2403 }
 0xc54   :  { %v819_v45 = vmul.f32 %v2404_v44, %v802_v40  ;;  %vm824_vm3 = vweird.f32 %v2404_v44  ;;  %v835_v6 = vmul.f32 %v816_v42, %v2782_v7  ;;  %v2295_v7 = vld [vmem:[%s3190_s4] sm:$0xff] }
 0xc55   :  { %vm825_vm5 = vmor %vm823_vm4, %vm824_vm3 }
 0xc56   :  { %v820_v46 = vsub.f32 1.0, %v819_v45 }
 0xc58   :  { %v821_v49 = vmul.f32 %v2404_v44, %v820_v46 }
 0xc5a   :  { %v822_v51 = vadd.f32 %v2404_v44, %v821_v49 }
 0xc5c   :  { %v826_v53 = vsel %vm825_vm5, %v2404_v44, %v822_v51 }
 0xc5d   :  { %v831_v50 = vsel %vm828_vm6, %v830_v57, %v826_v53 }
 0xc5e   :  { %v836_v10 = vmul.f32 %v831_v50, %v2777_v63  ;;  %v2296_v63 = vld [vmem:[%s3190_s4 + $0x8] sm:$0xff] }
 0xc5f   :  { %1240 = vmatpush.bf16.msra.mxu3 %v2296_v63 }
 0xc63   :  { %1241 = vmatpush.bf16.msra.mxu3 %v2295_v7 }
 0xc92   :  { %v840_v41 = vpop.permute.xlu2 %839 }
 0xc93   :  { %v845_v43 = vmul.f32 %v840_v41, %v816_v42 }
 0xc95   :  { %849 = vrot.lane.b32.xlu1 %v845_v43, %s2573_s13 }
 0xcb2   :  { %v842_v48 = vpop.permute.xlu0 %841 }
 0xcb3   :  { %v846_v2 = vmul.f32 %v842_v48, %v831_v50 }
 0xcb5   :  { %851 = vrot.lane.b32.xlu2 %v846_v2, %s2573_s13 }
 0xd07   :  { %v850_v55 = vpop.permute.xlu1 %849 }
 0xd08   :  { %v2805_v47 = vadd.f32 %v850_v55, %v835_v6 }
 0xd0a   :  { %2405 = vtanh.f32 %v2805_v47 }
 0xd0f   :  { %v852_v11 = vpop.permute.xlu2 %851 }
 0xd10   :  { %v2406_v12 = vpop.eup %2405  ;;  %v2809_v56 = vadd.f32 %v852_v11, %v836_v10 }
 0xd11   :  { %861 = vrot.lane.b32.xlu0 %v2406_v12, %s2573_s13 }
 0xd12   :  { %2407 = vtanh.f32 %v2809_v56 }
 0xd18   :  { %v2408_v15 = vpop.eup %2407 }
 0xd19   :  { %303 = vrot.lane.b32.xlu0 %v2672_v58, %s2574_s16  ;;  %863 = vrot.lane.b32.xlu1 %v2408_v15, %s2573_s13 }
 0xd21   :  { %305 = vrot.lane.b32.xlu1 %v2674_v60, %s2574_s16 }
 0xd83   :  { %v862_v58 = vpop.permute.xlu0 %861 }
 0xd84   :  { %v867_v17 = vmul.f32 %v862_v58, %v816_v42 }
 0xd86   :  { %v2828_v19 = vpack.c.bf16 %v867_v17, %v867_v17 }
 0xd88   :  { %v885_v22 = vunpack.c.l.b16 %v2828_v19 }
 0xd8b   :  { %v304_v60 = vpop.permute.xlu0 %303  ;;  %v864_v18 = vpop.permute.xlu1 %863 }
 0xd8c   :  { %310 = vst.msk [vmem:[#allocation2] sm:$0xf] %vm309_vm7, %v304_v60  ;;  %v868_v20 = vmul.f32 %v864_v18, %v831_v50 }
 0xd8e   :  { %v2831_v21 = vpack.c.bf16 %v868_v20, %v868_v20 }
 0xd90   :  { %v886_v23 = vunpack.c.l.b16 %v2831_v21 }
 0xd92   :  { %v887_v1 = vpack.c.b16 %v886_v23, %v885_v22 }
 0xd93   :  { %v306_v3 = vpop.permute.xlu1 %305 }
 0xd94   :  { %311 = vst.msk [vmem:[#allocation2 + $0x4] sm:$0xf] %vm309_vm7, %v306_v3  ;;  %888 = vrot.lane.b32.xlu2 %v887_v1, %s2574_s16 }
 0xd9b   :  { %v2299_v24 = vld [vmem:[#allocation2] sm:$0xff] }
 0xd9c   :  { %2241 = vmatmul.msk.bf16.vlgmr.msra.gmra.mxu3 %vm205_vm9, %v2299_v24 }
 0xdee   :  { %v889_v27 = vpop.permute.xlu2 %888 }
 0xdef   :  { %2195 = vmatmul.msk.bf16.vlgmr.msrb.gmra.mxu1 %vm205_vm9, %v889_v27 }
 0xdf0   :  { %1517 = vmatpush.bf16.msrb.mxu1 %v2841_v25 }
 0xdf4   :  { %1518 = vmatpush.bf16.msrb.mxu1 %v2847_v26 }
 0xdff   :  { %1321 = vmatmul.bf16.vlgmr.msra.gmra.mxu1 %v2572_v4  ;;  %v2865_v4 = vld [vmem:[%s3191_s6] ss:$0 sm:$0xff] }
 0xe00   :  { %1715 = vmatpush.bf16.msra.mxu1 %v2841_v25 }
 0xe04   :  { %1716 = vmatpush.bf16.msra.mxu1 %v2847_v26 }
 0xe1f   :  { %v1243_v37 = vpop.f32.mrf.mxu3 }
 0xe20   :  { %v1244_v38 = vadd.f32 %v2865_v4, %v1243_v37 }
 0xe27   :  { %v1245_v42 = vpop.f32.mrf.mxu3 }
 0xe28   :  { %v1246_v43 = vadd.f32 %v2865_v4, %v1245_v42 }
 0xe6c   :  { %v902_v31 = vpop.f32.mrf.mxu1 }
 0xe6d   :  { %v907_v32 = vadd.f32 %v902_v31, %v166_v30 }
 0xe6f   :  { %2409 = vtanh.f32 %v907_v32  ;;  %v2196_v51 = vmul.f32 -1.442695, %v907_v32 }
 0xe74   :  { %v904_v5 = vpop.f32.mrf.mxu1 }
 0xe75   :  { %v2410_v35 = vpop.eup %2409  ;;  %v908_v36 = vadd.f32 %v904_v5, %v168_v34 }
 0xe76   :  { %953 = vrot.lane.b32.xlu2 %v2410_v35, %s2573_s13 }
 0xe77   :  { %2411 = vtanh.f32 %v908_v36  ;;  %v2197_v2 = vmul.f32 -1.442695, %v908_v36 }
 0xe7c   :  { %v1322_v39 = vpop.f32.mrf.mxu1 }
 0xe7d   :  { %v2412_v40 = vpop.eup %2411  ;;  %v1327_v41 = vadd.f32 %v1322_v39, %v1244_v38 }
 0xe7e   :  { %955 = vrot.lane.b32.xlu0 %v2412_v40, %s2573_s13 }
 0xe7f   :  { %2413 = vtanh.f32 %v1327_v41  ;;  %v2257_v15 = vmul.f32 -1.442695, %v1327_v41 }
 0xe84   :  { %v1324_v44 = vpop.f32.mrf.mxu1 }
 0xe85   :  { %v2414_v45 = vpop.eup %2413  ;;  %v1328_v46 = vadd.f32 %v1324_v44, %v1246_v43 }
 0xe86   :  { %1373 = vrot.lane.b32.xlu1 %v2414_v45, %s2573_s13 }
 0xe87   :  { %2415 = vtanh.f32 %v1328_v46  ;;  %v2258_v57 = vmul.f32 -1.442695, %v1328_v46 }
 0xe88   :  { %2417 = vpow2.f32 %v2196_v51 }
 0xe8d   :  { %v2416_v49 = vpop.eup %2415 }
 0xe8e   :  { %1375 = vrot.lane.b32.xlu2 %v2416_v49, %s2573_s13  ;;  %v2418_v54 = vpop.eup %2417 }
 0xe8f   :  { %v915_v52 = vadd.f32 1.0, %v2418_v54 }
 0xe91   :  { %2419 = vrcp.f32 %v915_v52  ;;  %v928_v12 = vand.u32 2147483648, %v915_v52  ;;  %vm922_vm10 = vweird.f32 %v915_v52  ;;  %v926_v63 = vand.u32 2147483647, %v915_v52 }
 0xe92   :  { %2421 = vpow2.f32 %v2258_v57 }
 0xe93   :  { %2423 = vpow2.f32 %v2197_v2  ;;  %v929_v58 = vor.u32 1.1754944e-38, %v928_v12  ;;  %vm927_vm12 = vcmp.eq.f32.partialorder %v926_v63, 8.507059e+37 }
 0xe97   :  { %v2420_v53 = vpop.eup %2419 }
 0xe98   :  { %v918_v48 = vmul.f32 %v2420_v53, %v915_v52  ;;  %v2422_v6 = vpop.eup %2421  ;;  %vm923_vm8 = vweird.f32 %v2420_v53 }
 0xe99   :  { %v1336_v10 = vadd.f32 1.0, %v2422_v6  ;;  %vm924_vm11 = vmor %vm922_vm10, %vm923_vm8  ;;  %v2424_v7 = vpop.eup %2423 }
 0xe9a   :  { %v919_v50 = vsub.f32 1.0, %v918_v48  ;;  %v916_v17 = vadd.f32 1.0, %v2424_v7 }
 0xe9b   :  { %2425 = vrcp.f32 %v1336_v10  ;;  %v1363_v33 = vand.u32 2147483648, %v1336_v10  ;;  %vm1357_vm14 = vweird.f32 %v1336_v10  ;;  %v1361_v34 = vand.u32 2147483647, %v1336_v10 }
 0xe9c   :  { %v920_v55 = vmul.f32 %v2420_v53, %v919_v50  ;;  %2427 = vpow2.f32 %v2257_v15  ;;  %v943_v43 = vand.u32 2147483648, %v916_v17  ;;  %vm937_vm3 = vweird.f32 %v916_v17 }
 0xe9d   :  { %2429 = vrcp.f32 %v916_v17  ;;  %v1364_v37 = vor.u32 1.1754944e-38, %v1363_v33  ;;  %vm1362_vm1 = vcmp.eq.f32.partialorder %v1361_v34, 8.507059e+37  ;;  %v941_v44 = vand.u32 2147483647, %v916_v17 }
 0xe9e   :  { %v921_v11 = vadd.f32 %v2420_v53, %v920_v55  ;;  %v944_v49 = vor.u32 1.1754944e-38, %v943_v43 }
 0xe9f   :  { %vm942_vm5 = vcmp.eq.f32.partialorder %v941_v44, 8.507059e+37 }
 0xea0   :  { %v925_v16 = vsel %vm924_vm11, %v2420_v53, %v921_v11 }
 0xea1   :  { %v2872_v18 = vsel %vm927_vm12, %v929_v58, %v925_v16  ;;  %v2426_v22 = vpop.eup %2425 }
 0xea2   :  { %v2428_v23 = vpop.eup %2427  ;;  %v1353_v1 = vmul.f32 %v2426_v22, %v1336_v10  ;;  %vm1358_vm13 = vweird.f32 %v2426_v22  ;;  %v949_v11 = vmul.f32 %v2872_v18, %v2805_v47 }
 0xea3   :  { %v1335_v3 = vadd.f32 1.0, %v2428_v23  ;;  %v2430_v27 = vpop.eup %2429  ;;  %vm1359_vm15 = vmor %vm1357_vm14, %vm1358_vm13 }
 0xea4   :  { %v1354_v24 = vsub.f32 1.0, %v1353_v1  ;;  %v933_v29 = vmul.f32 %v2430_v27, %v916_v17  ;;  %vm938_vm2 = vweird.f32 %v2430_v27 }
 0xea5   :  { %2431 = vrcp.f32 %v1335_v3  ;;  %vm939_vm4 = vmor %vm937_vm3, %vm938_vm2  ;;  %v1348_v57 = vand.u32 2147483648, %v1335_v3  ;;  %vm1342_vm8 = vweird.f32 %v1335_v3  ;;  %v1346_v48 = vand.u32 2147483647, %v1335_v3 }
 0xea6   :  { %v1355_v28 = vmul.f32 %v2426_v22, %v1354_v24  ;;  %v934_v31 = vsub.f32 1.0, %v933_v29 }
 0xea7   :  { %v1349_v2 = vor.u32 1.1754944e-38, %v1348_v57  ;;  %vm1347_vm11 = vcmp.eq.f32.partialorder %v1346_v48, 8.507059e+37 }
 0xea8   :  { %v1356_v30 = vadd.f32 %v2426_v22, %v1355_v28  ;;  %v935_v35 = vmul.f32 %v2430_v27, %v934_v31 }
 0xeaa   :  { %v1360_v5 = vsel %vm1359_vm15, %v2426_v22, %v1356_v30  ;;  %v936_v41 = vadd.f32 %v2430_v27, %v935_v35 }
 0xeab   :  { %v2432_v32 = vpop.eup %2431  ;;  %v2876_v39 = vsel %vm1362_vm1, %v1364_v37, %v1360_v5 }
 0xeac   :  { %v1338_v36 = vmul.f32 %v2432_v32, %v1335_v3  ;;  %v940_v45 = vsel %vm939_vm4, %v2430_v27, %v936_v41  ;;  %vm1343_vm6 = vweird.f32 %v2432_v32  ;;  %v1370_v17 = vmul.f32 0.0, %v2876_v39 }
 0xead   :  { %v945_v54 = vsel %vm942_vm5, %v944_v49, %v940_v45  ;;  %vm1344_vm10 = vmor %vm1342_vm8, %vm1343_vm6 }
 0xeae   :  { %v1339_v42 = vsub.f32 1.0, %v1338_v36  ;;  %v950_v47 = vmul.f32 %v945_v54, %v2809_v56 }
 0xeb0   :  { %v1340_v46 = vmul.f32 %v2432_v32, %v1339_v42 }
 0xeb2   :  { %v1341_v53 = vadd.f32 %v2432_v32, %v1340_v46 }
 0xeb4   :  { %v1345_v50 = vsel %vm1344_vm10, %v2432_v32, %v1341_v53 }
 0xeb5   :  { %v1350_v55 = vsel %vm1347_vm11, %v1349_v2, %v1345_v50 }
 0xeb6   :  { %v1369_v7 = vmul.f32 0.0, %v1350_v55 }
 0xed0   :  { %v954_v60 = vpop.permute.xlu2 %953 }
 0xed1   :  { %v959_v20 = vmul.f32 %v954_v60, %v2872_v18 }
 0xed3   :  { %963 = vrot.lane.b32.xlu0 %v959_v20, %s2573_s13 }
 0xee8   :  { %v1376_v38 = vpop.permute.xlu2 %1375 }
 0xee9   :  { %v1380_v40 = vmul.f32 %v1376_v38, %v2876_v39 }
 0xeeb   :  { %1385 = vrot.lane.b32.xlu0 %v1380_v40, %s2573_s13  ;;  %v2294_v40 = vld [vmem:[%s3188_s0 + $0x38] sm:$0xff] }
 0xeec   :  { %2169 = vmatmul.msk.bf16.gmra.mxu0 %vm101_vm0, %v2294_v40 }
 0xef0   :  { %v956_v51 = vpop.permute.xlu0 %955 }
 0xef1   :  { %v960_v52 = vmul.f32 %v956_v51, %v945_v54 }
 0xef3   :  { %965 = vrot.lane.b32.xlu1 %v960_v52, %s2573_s13 }
 0xef8   :  { %v1374_v6 = vpop.permute.xlu1 %1373 }
 0xef9   :  { %v1379_v10 = vmul.f32 %v1374_v6, %v1350_v55 }
 0xefb   :  { %1383 = vrot.lane.b32.xlu2 %v1379_v10, %s2573_s13 }
 0xf45   :  { %v964_v12 = vpop.permute.xlu0 %963 }
 0xf46   :  { %v2884_v15 = vadd.f32 %v964_v12, %v949_v11 }
 0xf48   :  { %2433 = vtanh.f32 %v2884_v15 }
 0xf4e   :  { %v2434_v63 = vpop.eup %2433 }
 0xf4f   :  { %975 = vrot.lane.b32.xlu1 %v2434_v63, %s2573_s13 }
 0xf55   :  { %v1384_v16 = vpop.permute.xlu2 %1383 }
 0xf56   :  { %v2888_v58 = vadd.f32 %v1384_v16, %v1369_v7 }
 0xf58   :  { %2435 = vtanh.f32 %v2888_v58 }
 0xf5d   :  { %v1386_v60 = vpop.permute.xlu0 %1385 }
 0xf5e   :  { %v2436_v20 = vpop.eup %2435  ;;  %v2892_v22 = vadd.f32 %v1386_v60, %v1370_v17 }
 0xf5f   :  { %1395 = vrot.lane.b32.xlu0 %v2436_v20, %s2573_s13 }
 0xf60   :  { %2437 = vtanh.f32 %v2892_v22 }
 0xf65   :  { %v966_v23 = vpop.permute.xlu1 %965 }
 0xf66   :  { %v2438_v1 = vpop.eup %2437  ;;  %v2897_v3 = vadd.f32 %v966_v23, %v950_v47 }
 0xf67   :  { %1397 = vrot.lane.b32.xlu1 %v2438_v1, %s2573_s13  ;;  %417 = vrot.lane.b32.xlu0 %v2702_v59, %s2574_s16 }
 0xf68   :  { %2439 = vtanh.f32 %v2897_v3 }
 0xf6e   :  { %v2440_v24 = vpop.eup %2439 }
 0xf6f   :  { %419 = vrot.lane.b32.xlu1 %v2704_v61, %s2574_s16  ;;  %977 = vrot.lane.b32.xlu2 %v2440_v24, %s2573_s13 }
 0xfc1   :  { %v976_v27 = vpop.permute.xlu1 %975 }
 0xfc2   :  { %v981_v56 = vmul.f32 %v976_v27, %v2872_v18 }
 0xfc4   :  { %v2907_v29 = vpack.c.bf16 %v981_v56, %v981_v56 }
 0xfc6   :  { %v999_v32 = vunpack.c.l.b16 %v2907_v29 }
 0xfc9   :  { %v978_v28 = vpop.permute.xlu2 %977 }
 0xfca   :  { %v982_v30 = vmul.f32 %v978_v28, %v945_v54 }
 0xfcc   :  { %v2909_v31 = vpack.c.bf16 %v982_v30, %v982_v30 }
 0xfce   :  { %v1000_v59 = vunpack.c.l.b16 %v2909_v31 }
 0xfd0   :  { %v1001_v33 = vpack.c.b16 %v1000_v59, %v999_v32 }
 0xfd1   :  { %v1396_v34 = vpop.permute.xlu0 %1395 }
 0xfd2   :  { %1002 = vrot.lane.b32.xlu2 %v1001_v33, %s2574_s16  ;;  %v1401_v35 = vmul.f32 %v1396_v34, %v1350_v55 }
 0xfd9   :  { %v1398_v61 = vpop.permute.xlu1 %1397  ;;  %v418_v5 = vpop.permute.xlu0 %417 }
 0xfda   :  { %v1402_v36 = vmul.f32 %v1398_v61, %v2876_v39  ;;  %424 = vst.msk [vmem:[#allocation2 + $0x8] sm:$0xf] %vm309_vm7, %v418_v5 }
 0xfdc   :  { %v1405_v18 = vpack.c.bf16 %v1402_v36, %v1401_v35 }
 0xfde   :  { %1407 = vrot.lane.b32.xlu2 %v1405_v18, %s2574_s16 }
 0xfe1   :  { %v420_v37 = vpop.permute.xlu1 %419 }
 0xfe2   :  { %425 = vst.msk [vmem:[#allocation2 + $0xc] sm:$0xf] %vm309_vm7, %v420_v37 }
 0xfe9   :  { %v2300_v38 = vld [vmem:[#allocation2 + $0x8] sm:$0xff] }
 0xfea   :  { %2242 = vmatmul.msk.bf16.gmra.mxu3 %vm205_vm9, %v2300_v38 }
0x102c   :  { %v1003_v41 = vpop.permute.xlu2 %1002 }
0x102d   :  { %2198 = vmatmul.msk.bf16.vlgmr.msrb.gmra.mxu2 %vm205_vm9, %v1003_v41 }
0x102e   :  { %1616 = vmatpush.bf16.msrb.mxu2 %v2841_v25 }
0x1032   :  { %1617 = vmatpush.bf16.msrb.mxu2 %v2847_v26 }
0x1038   :  { %v1408_v39 = vpop.permute.xlu2 %1407 }
0x103d   :  { %2259 = vmatmul.msk.bf16.vlgmr.msra.gmra.mxu2 %vm205_vm9, %v1408_v39 }
0x103e   :  { %1814 = vmatpush.bf16.msra.mxu2 %v2841_v25 }
0x1042   :  { %1815 = vmatpush.bf16.msra.mxu2 %v2847_v26 }
0x106d   :  { %v1248_v44 = vpop.f32.mrf.mxu3 }
0x106e   :  { %v1249_v45 = vadd.f32 %v2865_v4, %v1248_v44 }
0x1075   :  { %v1250_v51 = vpop.f32.mrf.mxu3 }
0x1076   :  { %v1251_v54 = vadd.f32 %v2865_v4, %v1250_v51 }
0x10b0   :  { %v2929_v42 = vpop.f32.mrf.mxu2 }
0x10b8   :  { %v2931_v43 = vpop.f32.mrf.mxu2 }
0x10c0   :  { %v1421_v46 = vpop.f32.mrf.mxu2 }
0x10c1   :  { %v1426_v49 = vadd.f32 %v1421_v46, %v1249_v45 }
0x10c3   :  { %2441 = vtanh.f32 %v1426_v49  ;;  %v2260_v50 = vmul.f32 -1.442695, %v1426_v49 }
0x10c8   :  { %v1423_v52 = vpop.f32.mrf.mxu2 }
0x10c9   :  { %v2442_v53 = vpop.eup %2441  ;;  %v1427_v57 = vadd.f32 %v1423_v52, %v1251_v54 }
0x10ca   :  { %1472 = vrot.lane.b32.xlu0 %v2442_v53, %s2573_s13 }
0x10cb   :  { %2443 = vtanh.f32 %v1427_v57  ;;  %v2261_v2 = vmul.f32 -1.442695, %v1427_v57 }
0x10cc   :  { %2445 = vpow2.f32 %v2260_v50 }
0x10cd   :  { %2447 = vpow2.f32 %v2261_v2 }
0x10d1   :  { %v2444_v48 = vpop.eup %2443 }
0x10d2   :  { %1474 = vrot.lane.b32.xlu1 %v2444_v48, %s2573_s13  ;;  %v2446_v6 = vpop.eup %2445 }
0x10d3   :  { %v1434_v55 = vadd.f32 1.0, %v2446_v6  ;;  %v2448_v10 = vpop.eup %2447 }
0x10d4   :  { %v1435_v11 = vadd.f32 1.0, %v2448_v10 }
0x10d5   :  { %2449 = vrcp.f32 %v1434_v55  ;;  %v1447_v23 = vand.u32 2147483648, %v1434_v55  ;;  %vm1441_vm12 = vweird.f32 %v1434_v55  ;;  %v1445_v1 = vand.u32 2147483647, %v1434_v55 }
0x10d6   :  { %2451 = vrcp.f32 %v1435_v11  ;;  %v1462_v33 = vand.u32 2147483648, %v1435_v11  ;;  %vm1456_vm1 = vweird.f32 %v1435_v11  ;;  %v1460_v34 = vand.u32 2147483647, %v1435_v11 }
0x10d7   :  { %v1448_v56 = vor.u32 1.1754944e-38, %v1447_v23  ;;  %vm1446_vm14 = vcmp.eq.f32.partialorder %v1445_v1, 8.507059e+37 }
0x10d8   :  { %v1463_v5 = vor.u32 1.1754944e-38, %v1462_v33  ;;  %vm1461_vm3 = vcmp.eq.f32.partialorder %v1460_v34, 8.507059e+37 }
0x10db   :  { %v2450_v12 = vpop.eup %2449 }
0x10dc   :  { %v1437_v63 = vmul.f32 %v2450_v12, %v1434_v55  ;;  %v2452_v16 = vpop.eup %2451  ;;  %vm1442_vm0 = vweird.f32 %v2450_v12 }
0x10dd   :  { %v1452_v60 = vmul.f32 %v2452_v16, %v1435_v11  ;;  %vm1443_vm13 = vmor %vm1441_vm12, %vm1442_vm0  ;;  %vm1457_vm15 = vweird.f32 %v2452_v16 }
0x10de   :  { %v1438_v7 = vsub.f32 1.0, %v1437_v63  ;;  %vm1458_vm2 = vmor %vm1456_vm1, %vm1457_vm15 }
0x10df   :  { %v1453_v47 = vsub.f32 1.0, %v1452_v60 }
0x10e0   :  { %v1439_v17 = vmul.f32 %v2450_v12, %v1438_v7 }
0x10e1   :  { %v1454_v27 = vmul.f32 %v2452_v16, %v1453_v47 }
0x10e2   :  { %v1440_v20 = vadd.f32 %v2450_v12, %v1439_v17 }
0x10e3   :  { %v1455_v59 = vadd.f32 %v2452_v16, %v1454_v27 }
0x10e4   :  { %v1444_v24 = vsel %vm1443_vm13, %v2450_v12, %v1440_v20 }
0x10e5   :  { %v1449_v30 = vsel %vm1446_vm14, %v1448_v56, %v1444_v24  ;;  %v1459_v61 = vsel %vm1458_vm2, %v2452_v16, %v1455_v59 }
0x10e6   :  { %v1464_v36 = vsel %vm1461_vm3, %v1463_v5, %v1459_v61  ;;  %v1468_v37 = vmul.f32 %v1449_v30, %v2888_v58 }
0x10e7   :  { %v1469_v39 = vmul.f32 %v1464_v36, %v2892_v22 }
0x113c   :  { %v1473_v28 = vpop.permute.xlu0 %1472 }
0x113d   :  { %v1478_v32 = vmul.f32 %v1473_v28, %v1449_v30 }
0x113f   :  { %1482 = vrot.lane.b32.xlu2 %v1478_v32, %s2573_s13 }
0x1144   :  { %v1475_v35 = vpop.permute.xlu1 %1474 }
0x1145   :  { %v1479_v18 = vmul.f32 %v1475_v35, %v1464_v36 }
0x1147   :  { %1484 = vrot.lane.b32.xlu0 %v1479_v18, %s2573_s13 }
0x114f   :  { %531 = vrot.lane.b32.xlu0 %v2732_v62, %s2574_s16 }
0x1199   :  { %v1483_v38 = vpop.permute.xlu2 %1482 }
0x119a   :  { %v2942_v40 = vadd.f32 %v1483_v38, %v1468_v37 }
0x119c   :  { %2453 = vtanh.f32 %v2942_v40 }
0x11a2   :  { %v2454_v41 = vpop.eup %2453 }
0x11a3   :  { %1494 = vrot.lane.b32.xlu1 %v2454_v41, %s2573_s13 }
0x11ab   :  { %533 = vrot.lane.b32.xlu1 %v2734_v0, %s2574_s16 }
0x11b9   :  { %v1485_v44 = vpop.permute.xlu0 %1484 }
0x11ba   :  { %v2949_v45 = vadd.f32 %v1485_v44, %v1469_v39 }
0x11bc   :  { %2455 = vtanh.f32 %v2949_v45 }
0x11c1   :  { %v532_v62 = vpop.permute.xlu0 %531 }
0x11c2   :  { %v2456_v58 = vpop.eup %2455  ;;  %538 = vst.msk [vmem:[#allocation2 + $0x10] sm:$0xf] %vm309_vm7, %v532_v62 }
0x11c3   :  { %1496 = vrot.lane.b32.xlu2 %v2456_v58, %s2573_s13 }
0x1215   :  { %v1495_v46 = vpop.permute.xlu1 %1494 }
0x1216   :  { %v1500_v54 = vmul.f32 %v1495_v46, %v1449_v30 }
0x121d   :  { %v1497_v49 = vpop.permute.xlu2 %1496  ;;  %v534_v51 = vpop.permute.xlu1 %533 }
0x121e   :  { %v1501_v52 = vmul.f32 %v1497_v49, %v1464_v36  ;;  %539 = vst.msk [vmem:[#allocation2 + $0x14] sm:$0xf] %vm309_vm7, %v534_v51 }
0x1220   :  { %v1504_v0 = vpack.c.bf16 %v1501_v52, %v1500_v54 }
0x1222   :  { %1506 = vrot.lane.b32.xlu2 %v1504_v0, %s2574_s16 }
0x1225   :  { %v2301_v22 = vld [vmem:[#allocation2 + $0x10] sm:$0xff] }
0x1226   :  { %2243 = vmatmul.msk.bf16.gmra.mxu3 %vm205_vm9, %v2301_v22 }
0x127c   :  { %v1507_v53 = vpop.permute.xlu2 %1506 }
0x127d   :  { %2262 = vmatmul.msk.bf16.vlgmr.msrb.gmra.mxu1 %vm205_vm9, %v1507_v53 }
0x127e   :  { %1913 = vmatpush.bf16.msrb.mxu1 %v2841_v25 }
0x1282   :  { %1914 = vmatpush.bf16.msrb.mxu1 %v2847_v26 }
0x12a9   :  { %v1253_v57 = vpop.f32.mrf.mxu3 }
0x12aa   :  { %v1254_v48 = vadd.f32 %v2865_v4, %v1253_v57 }
0x12b1   :  { %v1255_v6 = vpop.f32.mrf.mxu3 }
0x12b2   :  { %v1256_v55 = vadd.f32 %v2865_v4, %v1255_v6 }
0x12fa   :  { %v1520_v50 = vpop.f32.mrf.mxu1 }
0x12fb   :  { %v1525_v2 = vadd.f32 %v1520_v50, %v1254_v48 }
0x12fd   :  { %2457 = vtanh.f32 %v1525_v2  ;;  %v2263_v7 = vmul.f32 -1.442695, %v1525_v2 }
0x1302   :  { %v1522_v10 = vpop.f32.mrf.mxu1 }
0x1303   :  { %v2458_v11 = vpop.eup %2457  ;;  %v1526_v12 = vadd.f32 %v1522_v10, %v1256_v55 }
0x1304   :  { %1571 = vrot.lane.b32.xlu0 %v2458_v11, %s2573_s13 }
0x1305   :  { %2459 = vtanh.f32 %v1526_v12  ;;  %v2264_v16 = vmul.f32 -1.442695, %v1526_v12 }
0x1306   :  { %2461 = vpow2.f32 %v2263_v7 }
0x1307   :  { %2463 = vpow2.f32 %v2264_v16 }
0x130b   :  { %v2460_v63 = vpop.eup %2459 }
0x130c   :  { %1573 = vrot.lane.b32.xlu1 %v2460_v63, %s2573_s13  ;;  %v2462_v17 = vpop.eup %2461 }
0x130d   :  { %v1533_v60 = vadd.f32 1.0, %v2462_v17  ;;  %v2464_v20 = vpop.eup %2463 }
0x130e   :  { %v1534_v47 = vadd.f32 1.0, %v2464_v20 }
0x130f   :  { %2465 = vrcp.f32 %v1533_v60  ;;  %v1546_v59 = vand.u32 2147483648, %v1533_v60  ;;  %vm1540_vm5 = vweird.f32 %v1533_v60  ;;  %v1544_v33 = vand.u32 2147483647, %v1533_v60 }
0x1310   :  { %2467 = vrcp.f32 %v1534_v47  ;;  %v1561_v38 = vand.u32 2147483648, %v1534_v47  ;;  %vm1555_vm11 = vweird.f32 %v1534_v47  ;;  %v1559_v41 = vand.u32 2147483647, %v1534_v47 }
0x1311   :  { %v1547_v5 = vor.u32 1.1754944e-38, %v1546_v59  ;;  %vm1545_vm8 = vcmp.eq.f32.partialorder %v1544_v33, 8.507059e+37 }
0x1312   :  { %v1562_v44 = vor.u32 1.1754944e-38, %v1561_v38  ;;  %vm1560_vm12 = vcmp.eq.f32.partialorder %v1559_v41, 8.507059e+37 }
0x1315   :  { %v2466_v23 = vpop.eup %2465 }
0x1316   :  { %v1536_v1 = vmul.f32 %v2466_v23, %v1533_v60  ;;  %v2468_v27 = vpop.eup %2467  ;;  %vm1541_vm4 = vweird.f32 %v2466_v23 }
0x1317   :  { %v1551_v28 = vmul.f32 %v2468_v27, %v1534_v47  ;;  %vm1542_vm6 = vmor %vm1540_vm5, %vm1541_vm4  ;;  %vm1556_vm10 = vweird.f32 %v2468_v27 }
0x1318   :  { %v1537_v24 = vsub.f32 1.0, %v1536_v1  ;;  %vm1557_vm0 = vmor %vm1555_vm11, %vm1556_vm10 }
0x1319   :  { %v1552_v32 = vsub.f32 1.0, %v1551_v28 }
0x131a   :  { %v1538_v56 = vmul.f32 %v2466_v23, %v1537_v24 }
0x131b   :  { %v1553_v61 = vmul.f32 %v2468_v27, %v1552_v32 }
0x131c   :  { %v1539_v30 = vadd.f32 %v2466_v23, %v1538_v56 }
0x131d   :  { %v1554_v37 = vadd.f32 %v2468_v27, %v1553_v61 }
0x131e   :  { %v1543_v34 = vsel %vm1542_vm6, %v2466_v23, %v1539_v30 }
0x131f   :  { %v1548_v36 = vsel %vm1545_vm8, %v1547_v5, %v1543_v34  ;;  %v1558_v39 = vsel %vm1557_vm0, %v2468_v27, %v1554_v37 }
0x1320   :  { %v1563_v58 = vsel %vm1560_vm12, %v1562_v44, %v1558_v39  ;;  %v1567_v49 = vmul.f32 %v1548_v36, %v2942_v40 }
0x1321   :  { %v1568_v0 = vmul.f32 %v1563_v58, %v2949_v45 }
0x1376   :  { %v1572_v35 = vpop.permute.xlu0 %1571 }
0x1377   :  { %v1577_v18 = vmul.f32 %v1572_v35, %v1548_v36 }
0x1379   :  { %1581 = vrot.lane.b32.xlu2 %v1577_v18, %s2573_s13 }
0x137e   :  { %v1574_v62 = vpop.permute.xlu1 %1573 }
0x137f   :  { %v1578_v46 = vmul.f32 %v1574_v62, %v1563_v58 }
0x1381   :  { %1583 = vrot.lane.b32.xlu0 %v1578_v46, %s2573_s13 }
0x1389   :  { %645 = vrot.lane.b32.xlu0 %v2760_v8, %s2574_s16 }
0x13d3   :  { %v1582_v51 = vpop.permute.xlu2 %1581 }
0x13d4   :  { %v2969_v54 = vadd.f32 %v1582_v51, %v1567_v49 }
0x13d6   :  { %2469 = vtanh.f32 %v2969_v54 }
0x13dc   :  { %v2470_v52 = vpop.eup %2469 }
0x13dd   :  { %1593 = vrot.lane.b32.xlu1 %v2470_v52, %s2573_s13 }
0x13e5   :  { %647 = vrot.lane.b32.xlu1 %v2762_v9, %s2574_s16 }
0x13f3   :  { %v1584_v22 = vpop.permute.xlu0 %1583 }
0x13f4   :  { %v2976_v53 = vadd.f32 %v1584_v22, %v1568_v0 }
0x13f6   :  { %2471 = vtanh.f32 %v2976_v53 }
0x13fb   :  { %v646_v8 = vpop.permute.xlu0 %645 }
0x13fc   :  { %v2472_v40 = vpop.eup %2471  ;;  %652 = vst.msk [vmem:[#allocation2 + $0x18] sm:$0xf] %vm309_vm7, %v646_v8 }
0x13fd   :  { %1595 = vrot.lane.b32.xlu2 %v2472_v40, %s2573_s13 }
0x144f   :  { %v1594_v57 = vpop.permute.xlu1 %1593 }
0x1450   :  { %v1599_v2 = vmul.f32 %v1594_v57, %v1548_v36 }
0x1457   :  { %v1596_v48 = vpop.permute.xlu2 %1595  ;;  %v648_v50 = vpop.permute.xlu1 %647 }
0x1458   :  { %v1600_v6 = vmul.f32 %v1596_v48, %v1563_v58  ;;  %653 = vst.msk [vmem:[#allocation2 + $0x1c] sm:$0xf] %vm309_vm7, %v648_v50 }
0x145a   :  { %v1603_v9 = vpack.c.bf16 %v1600_v6, %v1599_v2 }
0x145c   :  { %1605 = vrot.lane.b32.xlu2 %v1603_v9, %s2574_s16 }
0x145f   :  { %v2302_v45 = vld [vmem:[#allocation2 + $0x18] sm:$0xff] }
0x1460   :  { %2244 = vmatmul.msk.bf16.gmra.mxu3 %vm205_vm9, %v2302_v45 }
0x14b6   :  { %v1606_v55 = vpop.permute.xlu2 %1605 }
0x14b7   :  { %2265 = vmatmul.msk.bf16.vlgmr.msrb.gmra.mxu2 %vm205_vm9, %v1606_v55 }
0x14b8   :  { %2012 = vmatpush.bf16.msrb.mxu2 %v2841_v25 }
0x14bc   :  { %2013 = vmatpush.bf16.msrb.mxu2 %v2847_v26 }
0x14e3   :  { %v1258_v10 = vpop.f32.mrf.mxu3 }
0x14e4   :  { %v1259_v11 = vadd.f32 %v2865_v4, %v1258_v10 }
0x14eb   :  { %v1260_v7 = vpop.f32.mrf.mxu3 }
0x14ec   :  { %v1261_v16 = vadd.f32 %v2865_v4, %v1260_v7 }
0x153a   :  { %v1619_v12 = vpop.f32.mrf.mxu2 }
0x153b   :  { %v1624_v63 = vadd.f32 %v1619_v12, %v1259_v11 }
0x153d   :  { %2473 = vtanh.f32 %v1624_v63  ;;  %v2266_v25 = vmul.f32 -1.442695, %v1624_v63 }
0x1542   :  { %v1621_v17 = vpop.f32.mrf.mxu2 }
0x1543   :  { %v2474_v60 = vpop.eup %2473  ;;  %v1625_v20 = vadd.f32 %v1621_v17, %v1261_v16 }
0x1544   :  { %1670 = vrot.lane.b32.xlu0 %v2474_v60, %s2573_s13 }
0x1545   :  { %2475 = vtanh.f32 %v1625_v20  ;;  %v2267_v26 = vmul.f32 -1.442695, %v1625_v20 }
0x1546   :  { %2477 = vpow2.f32 %v2266_v25 }
0x1547   :  { %2479 = vpow2.f32 %v2267_v26 }
0x154b   :  { %v2476_v47 = vpop.eup %2475 }
0x154c   :  { %1672 = vrot.lane.b32.xlu1 %v2476_v47, %s2573_s13  ;;  %v2478_v23 = vpop.eup %2477 }
0x154d   :  { %v1632_v1 = vadd.f32 1.0, %v2478_v23  ;;  %v2480_v24 = vpop.eup %2479 }
0x154e   :  { %v1633_v27 = vadd.f32 1.0, %v2480_v24 }
0x154f   :  { %2481 = vrcp.f32 %v1632_v1  ;;  %v1645_v5 = vand.u32 2147483648, %v1632_v1  ;;  %vm1639_vm14 = vweird.f32 %v1632_v1  ;;  %v1643_v35 = vand.u32 2147483647, %v1632_v1 }
0x1550   :  { %2483 = vrcp.f32 %v1633_v27  ;;  %v1660_v62 = vand.u32 2147483648, %v1633_v27  ;;  %vm1654_vm3 = vweird.f32 %v1633_v27  ;;  %v1658_v58 = vand.u32 2147483647, %v1633_v27 }
0x1551   :  { %v1646_v37 = vor.u32 1.1754944e-38, %v1645_v5  ;;  %vm1644_vm1 = vcmp.eq.f32.partialorder %v1643_v35, 8.507059e+37 }
0x1552   :  { %v1661_v49 = vor.u32 1.1754944e-38, %v1660_v62  ;;  %vm1659_vm5 = vcmp.eq.f32.partialorder %v1658_v58, 8.507059e+37 }
0x1555   :  { %v2482_v56 = vpop.eup %2481 }
0x1556   :  { %v1635_v28 = vmul.f32 %v2482_v56, %v1632_v1  ;;  %v2484_v32 = vpop.eup %2483  ;;  %vm1640_vm13 = vweird.f32 %v2482_v56 }
0x1557   :  { %v1650_v33 = vmul.f32 %v2484_v32, %v1633_v27  ;;  %vm1641_vm15 = vmor %vm1639_vm14, %vm1640_vm13  ;;  %vm1655_vm2 = vweird.f32 %v2484_v32 }
0x1558   :  { %v1636_v30 = vsub.f32 1.0, %v1635_v28  ;;  %vm1656_vm4 = vmor %vm1654_vm3, %vm1655_vm2 }
0x1559   :  { %v1651_v61 = vsub.f32 1.0, %v1650_v33 }
0x155a   :  { %v1637_v59 = vmul.f32 %v2482_v56, %v1636_v30 }
0x155b   :  { %v1652_v18 = vmul.f32 %v2484_v32, %v1651_v61 }
0x155c   :  { %v1638_v34 = vadd.f32 %v2482_v56, %v1637_v59 }
0x155d   :  { %v1653_v44 = vadd.f32 %v2484_v32, %v1652_v18 }
0x155e   :  { %v1642_v36 = vsel %vm1641_vm15, %v2482_v56, %v1638_v34 }
0x155f   :  { %v1647_v41 = vsel %vm1644_vm1, %v1646_v37, %v1642_v36  ;;  %v1657_v46 = vsel %vm1656_vm4, %v2484_v32, %v1653_v44 }
0x1560   :  { %v1662_v52 = vsel %vm1659_vm5, %v1661_v49, %v1657_v46  ;;  %v1666_v22 = vmul.f32 %v1647_v41, %v2969_v54 }
0x1561   :  { %v1667_v48 = vmul.f32 %v1662_v52, %v2976_v53 }
0x15b6   :  { %v1671_v38 = vpop.permute.xlu0 %1670 }
0x15b7   :  { %v1676_v39 = vmul.f32 %v1671_v38, %v1647_v41 }
0x15b9   :  { %1680 = vrot.lane.b32.xlu2 %v1676_v39, %s2573_s13 }
0x15be   :  { %v1673_v51 = vpop.permute.xlu1 %1672 }
0x15bf   :  { %v1677_v0 = vmul.f32 %v1673_v51, %v1662_v52 }
0x15c1   :  { %1682 = vrot.lane.b32.xlu0 %v1677_v0, %s2573_s13 }
0x15c9   :  { %759 = vrot.lane.b32.xlu0 %v2790_v13, %s2574_s16 }
0x1613   :  { %v1681_v8 = vpop.permute.xlu2 %1680 }
0x1614   :  { %v2996_v40 = vadd.f32 %v1681_v8, %v1666_v22 }
0x1616   :  { %2485 = vtanh.f32 %v2996_v40 }
0x161c   :  { %v2486_v57 = vpop.eup %2485 }
0x161d   :  { %1692 = vrot.lane.b32.xlu1 %v2486_v57, %s2573_s13 }
0x1625   :  { %761 = vrot.lane.b32.xlu1 %v2792_v14, %s2574_s16 }
0x1633   :  { %v1683_v50 = vpop.permute.xlu0 %1682 }
0x1634   :  { %v3003_v2 = vadd.f32 %v1683_v50, %v1667_v48 }
0x1636   :  { %2487 = vtanh.f32 %v3003_v2 }
0x163b   :  { %v760_v13 = vpop.permute.xlu0 %759 }
0x163c   :  { %v2488_v54 = vpop.eup %2487  ;;  %766 = vst.msk [vmem:[#allocation2 + $0x20] sm:$0xf] %vm309_vm7, %v760_v13 }
0x163d   :  { %1694 = vrot.lane.b32.xlu2 %v2488_v54, %s2573_s13 }
0x168f   :  { %v1693_v6 = vpop.permute.xlu1 %1692 }
0x1690   :  { %v1698_v55 = vmul.f32 %v1693_v6, %v1647_v41 }
0x1697   :  { %v1695_v9 = vpop.permute.xlu2 %1694  ;;  %v762_v45 = vpop.permute.xlu1 %761 }
0x1698   :  { %v1699_v10 = vmul.f32 %v1695_v9, %v1662_v52  ;;  %767 = vst.msk [vmem:[#allocation2 + $0x24] sm:$0xf] %vm309_vm7, %v762_v45 }
0x169a   :  { %v1702_v14 = vpack.c.bf16 %v1699_v10, %v1698_v55 }
0x169c   :  { %1704 = vrot.lane.b32.xlu2 %v1702_v14, %s2574_s16 }
0x169f   :  { %v2303_v53 = vld [vmem:[#allocation2 + $0x20] sm:$0xff] }
0x16a0   :  { %2245 = vmatmul.msk.bf16.gmra.mxu3 %vm205_vm9, %v2303_v53 }
0x16f6   :  { %v1705_v11 = vpop.permute.xlu2 %1704 }
0x16f7   :  { %2268 = vmatmul.msk.bf16.vlgmr.msra.gmra.mxu1 %vm205_vm9, %v1705_v11 }
0x1723   :  { %v1263_v12 = vpop.f32.mrf.mxu3 }
0x1724   :  { %v1264_v63 = vadd.f32 %v2865_v4, %v1263_v12  ;;  %v3040_v12 = vld [vmem:[%s3191_s6] ss:$0 sm:$0xff] }
0x172b   :  { %v1265_v17 = vpop.f32.mrf.mxu3 }
0x172c   :  { %v1266_v60 = vadd.f32 %v2865_v4, %v1265_v17 }
0x1774   :  { %v1718_v7 = vpop.f32.mrf.mxu1 }
0x1775   :  { %v1723_v16 = vadd.f32 %v1718_v7, %v1264_v63 }
0x1777   :  { %2489 = vtanh.f32 %v1723_v16  ;;  %v2269_v23 = vmul.f32 -1.442695, %v1723_v16 }
0x177c   :  { %v1720_v20 = vpop.f32.mrf.mxu1 }
0x177d   :  { %v2490_v47 = vpop.eup %2489  ;;  %v1724_v25 = vadd.f32 %v1720_v20, %v1266_v60 }
0x177e   :  { %1769 = vrot.lane.b32.xlu0 %v2490_v47, %s2573_s13 }
0x177f   :  { %2491 = vtanh.f32 %v1724_v25  ;;  %v2270_v1 = vmul.f32 -1.442695, %v1724_v25 }
0x1780   :  { %2493 = vpow2.f32 %v2269_v23 }
0x1781   :  { %2495 = vpow2.f32 %v2270_v1 }
0x1785   :  { %v2492_v26 = vpop.eup %2491 }
0x1786   :  { %1771 = vrot.lane.b32.xlu1 %v2492_v26, %s2573_s13  ;;  %v2494_v24 = vpop.eup %2493 }
0x1787   :  { %v1731_v27 = vadd.f32 1.0, %v2494_v24  ;;  %v2496_v56 = vpop.eup %2495 }
0x1788   :  { %v1732_v28 = vadd.f32 1.0, %v2496_v56 }
0x1789   :  { %2497 = vrcp.f32 %v1731_v27  ;;  %v1744_v35 = vand.u32 2147483648, %v1731_v27  ;;  %vm1738_vm8 = vweird.f32 %v1731_v27  ;;  %v1742_v36 = vand.u32 2147483647, %v1731_v27 }
0x178a   :  { %2499 = vrcp.f32 %v1732_v28  ;;  %v1759_v58 = vand.u32 2147483648, %v1732_v28  ;;  %vm1753_vm12 = vweird.f32 %v1732_v28  ;;  %v1757_v46 = vand.u32 2147483647, %v1732_v28 }
0x178b   :  { %v1745_v38 = vor.u32 1.1754944e-38, %v1744_v35  ;;  %vm1743_vm11 = vcmp.eq.f32.partialorder %v1742_v36, 8.507059e+37 }
0x178c   :  { %v1760_v51 = vor.u32 1.1754944e-38, %v1759_v58  ;;  %vm1758_vm14 = vcmp.eq.f32.partialorder %v1757_v46, 8.507059e+37 }
0x178f   :  { %v2498_v30 = vpop.eup %2497 }
0x1790   :  { %v1734_v4 = vmul.f32 %v2498_v30, %v1731_v27  ;;  %v2500_v59 = vpop.eup %2499  ;;  %vm1739_vm6 = vweird.f32 %v2498_v30 }
0x1791   :  { %v1749_v34 = vmul.f32 %v2500_v59, %v1732_v28  ;;  %vm1740_vm10 = vmor %vm1738_vm8, %vm1739_vm6  ;;  %vm1754_vm0 = vweird.f32 %v2500_v59 }
0x1792   :  { %v1735_v32 = vsub.f32 1.0, %v1734_v4  ;;  %vm1755_vm13 = vmor %vm1753_vm12, %vm1754_vm0 }
0x1793   :  { %v1750_v5 = vsub.f32 1.0, %v1749_v34 }
0x1794   :  { %v1736_v33 = vmul.f32 %v2498_v30, %v1735_v32 }
0x1795   :  { %v1751_v37 = vmul.f32 %v2500_v59, %v1750_v5 }
0x1796   :  { %v1737_v61 = vadd.f32 %v2498_v30, %v1736_v33 }
0x1797   :  { %v1752_v62 = vadd.f32 %v2500_v59, %v1751_v37 }
0x1798   :  { %v1741_v18 = vsel %vm1740_vm10, %v2498_v30, %v1737_v61 }
0x1799   :  { %v1746_v39 = vsel %vm1743_vm11, %v1745_v38, %v1741_v18  ;;  %v1756_v49 = vsel %vm1755_vm13, %v2500_v59, %v1752_v62 }
0x179a   :  { %v1761_v0 = vsel %vm1758_vm14, %v1760_v51, %v1756_v49  ;;  %v1765_v8 = vmul.f32 %v1746_v39, %v2996_v40 }
0x179b   :  { %v1766_v13 = vmul.f32 %v1761_v0, %v3003_v2 }
0x17f0   :  { %v1770_v41 = vpop.permute.xlu0 %1769 }
0x17f1   :  { %v1775_v44 = vmul.f32 %v1770_v41, %v1746_v39 }
0x17f3   :  { %1779 = vrot.lane.b32.xlu2 %v1775_v44, %s2573_s13 }
0x17f8   :  { %v1772_v52 = vpop.permute.xlu1 %1771 }
0x17f9   :  { %v1776_v22 = vmul.f32 %v1772_v52, %v1761_v0 }
0x17fb   :  { %1781 = vrot.lane.b32.xlu0 %v1776_v22, %s2573_s13  ;;  %v170_v22 = vpop.f32.mrf.mxu0 }
0x1803   :  { %873 = vrot.lane.b32.xlu0 %v2828_v19, %s2574_s16 }
0x184d   :  { %v1780_v57 = vpop.permute.xlu2 %1779 }
0x184e   :  { %v3021_v48 = vadd.f32 %v1780_v57, %v1765_v8  ;;  %v2571_v57 = vld [vmem:[%s3189_s3] ss:$0 sm:$0xff]  ;;  %s2575_s3 = smov 96  }
0x1850   :  { %2501 = vtanh.f32 %v3021_v48 }
0x1856   :  { %v2502_v50 = vpop.eup %2501 }
0x1857   :  { %1791 = vrot.lane.b32.xlu1 %v2502_v50, %s2573_s13  ;;  %v171_v50 = vadd.f32 %v2571_v57, %v170_v22 }
0x185f   :  { %875 = vrot.lane.b32.xlu1 %v2831_v21, %s2574_s16 }
0x186d   :  { %v1782_v54 = vpop.permute.xlu0 %1781 }
0x186e   :  { %v3028_v6 = vadd.f32 %v1782_v54, %v1766_v13  ;;  %v1021_v13 = vadd.f32 %v2929_v42, %v171_v50 }
0x1870   :  { %2503 = vtanh.f32 %v3028_v6 }
0x1875   :  { %v874_v19 = vpop.permute.xlu0 %873 }
0x1876   :  { %v2504_v40 = vpop.eup %2503  ;;  %880 = vst.msk [vmem:[#allocation2 + $0x28] sm:$0xf] %vm309_vm7, %v874_v19 }
0x1877   :  { %1793 = vrot.lane.b32.xlu2 %v2504_v40, %s2573_s13 }
0x18c9   :  { %v1792_v9 = vpop.permute.xlu1 %1791 }
0x18ca   :  { %v1797_v10 = vmul.f32 %v1792_v9, %v1746_v39 }
0x18d1   :  { %v1794_v45 = vpop.permute.xlu2 %1793  ;;  %v876_v55 = vpop.permute.xlu1 %875 }
0x18d2   :  { %v1798_v14 = vmul.f32 %v1794_v45, %v1761_v0  ;;  %881 = vst.msk [vmem:[#allocation2 + $0x2c] sm:$0xf] %vm309_vm7, %v876_v55  ;;  %v2199_v45 = vmul.f32 -1.442695, %v1021_v13  ;;  %v172_v55 = vpop.f32.mrf.mxu0 }
0x18d3   :  { %v173_v42 = vadd.f32 %v2571_v57, %v172_v55 }
0x18d4   :  { %v1801_v21 = vpack.c.bf16 %v1798_v14, %v1797_v10 }
0x18d5   :  { %v1022_v14 = vadd.f32 %v2931_v43, %v173_v42 }
0x18d6   :  { %1803 = vrot.lane.b32.xlu2 %v1801_v21, %s2574_s16 }
0x18d9   :  { %v2304_v2 = vld [vmem:[#allocation2 + $0x28] sm:$0xff] }
0x18da   :  { %2246 = vmatmul.msk.bf16.gmra.mxu3 %vm205_vm9, %v2304_v2 }
0x1930   :  { %v1804_v53 = vpop.permute.xlu2 %1803 }
0x1931   :  { %2271 = vmatmul.msk.bf16.vlgmr.msra.gmra.mxu2 %vm205_vm9, %v1804_v53 }
0x195d   :  { %v1268_v11 = vpop.f32.mrf.mxu3 }
0x195e   :  { %v1269_v63 = vadd.f32 %v3040_v12, %v1268_v11 }
0x1965   :  { %v1270_v17 = vpop.f32.mrf.mxu3 }
0x1966   :  { %v1271_v60 = vadd.f32 %v3040_v12, %v1270_v17 }
0x19b4   :  { %v1817_v7 = vpop.f32.mrf.mxu2 }
0x19b5   :  { %v1822_v16 = vadd.f32 %v1817_v7, %v1269_v63 }
0x19b7   :  { %2505 = vtanh.f32 %v1822_v16  ;;  %v2272_v23 = vmul.f32 -1.442695, %v1822_v16 }
0x19bc   :  { %v1819_v20 = vpop.f32.mrf.mxu2 }
0x19bd   :  { %v2506_v47 = vpop.eup %2505  ;;  %v1823_v25 = vadd.f32 %v1819_v20, %v1271_v60 }
0x19be   :  { %1868 = vrot.lane.b32.xlu0 %v2506_v47, %s2573_s13 }
0x19bf   :  { %2507 = vtanh.f32 %v1823_v25  ;;  %v2273_v1 = vmul.f32 -1.442695, %v1823_v25 }
0x19c0   :  { %2509 = vpow2.f32 %v2272_v23 }
0x19c1   :  { %2511 = vpow2.f32 %v2273_v1 }
0x19c5   :  { %v2508_v26 = vpop.eup %2507 }
0x19c6   :  { %1870 = vrot.lane.b32.xlu1 %v2508_v26, %s2573_s13  ;;  %v2510_v24 = vpop.eup %2509 }
0x19c7   :  { %v1830_v27 = vadd.f32 1.0, %v2510_v24  ;;  %v2512_v56 = vpop.eup %2511 }
0x19c8   :  { %v1831_v28 = vadd.f32 1.0, %v2512_v56 }
0x19c9   :  { %2513 = vrcp.f32 %v1830_v27  ;;  %v1843_v35 = vand.u32 2147483648, %v1830_v27  ;;  %vm1837_vm1 = vweird.f32 %v1830_v27  ;;  %v1841_v36 = vand.u32 2147483647, %v1830_v27 }
0x19ca   :  { %2515 = vrcp.f32 %v1831_v28  ;;  %v1858_v58 = vand.u32 2147483648, %v1831_v28  ;;  %vm1852_vm5 = vweird.f32 %v1831_v28  ;;  %v1856_v46 = vand.u32 2147483647, %v1831_v28 }
0x19cb   :  { %v1844_v38 = vor.u32 1.1754944e-38, %v1843_v35  ;;  %vm1842_vm3 = vcmp.eq.f32.partialorder %v1841_v36, 8.507059e+37  ;;  %2517 = vtanh.f32 %v1021_v13 }
0x19cc   :  { %v1859_v51 = vor.u32 1.1754944e-38, %v1858_v58  ;;  %vm1857_vm8 = vcmp.eq.f32.partialorder %v1856_v46, 8.507059e+37 }
0x19cf   :  { %v2514_v30 = vpop.eup %2513 }
0x19d0   :  { %v1833_v4 = vmul.f32 %v2514_v30, %v1830_v27  ;;  %v2516_v59 = vpop.eup %2515  ;;  %vm1838_vm15 = vweird.f32 %v2514_v30 }
0x19d1   :  { %v1848_v34 = vmul.f32 %v2516_v59, %v1831_v28  ;;  %vm1839_vm2 = vmor %vm1837_vm1, %vm1838_vm15  ;;  %vm1853_vm4 = vweird.f32 %v2516_v59  ;;  %v2518_v54 = vpop.eup %2517 }
0x19d2   :  { %v1834_v32 = vsub.f32 1.0, %v1833_v4  ;;  %vm1854_vm6 = vmor %vm1852_vm5, %vm1853_vm4 }
0x19d3   :  { %v1849_v5 = vsub.f32 1.0, %v1848_v34 }
0x19d4   :  { %v1835_v33 = vmul.f32 %v2514_v30, %v1834_v32 }
0x19d5   :  { %v1850_v37 = vmul.f32 %v2516_v59, %v1849_v5 }
0x19d6   :  { %v1836_v61 = vadd.f32 %v2514_v30, %v1835_v33  ;;  %v2200_v33 = vmul.f32 -1.442695, %v1022_v14 }
0x19d7   :  { %v1851_v62 = vadd.f32 %v2516_v59, %v1850_v37 }
0x19d8   :  { %v1840_v18 = vsel %vm1839_vm2, %v2514_v30, %v1836_v61 }
0x19d9   :  { %v3046_v39 = vsel %vm1842_vm3, %v1844_v38, %v1840_v18  ;;  %v1855_v49 = vsel %vm1854_vm6, %v2516_v59, %v1851_v62 }
0x19da   :  { %v1860_v0 = vsel %vm1857_vm8, %v1859_v51, %v1855_v49  ;;  %v1864_v19 = vmul.f32 %v3046_v39, %v3021_v48 }
0x19db   :  { %v1865_v11 = vmul.f32 %v1860_v0, %v3028_v6 }
0x1a30   :  { %v1869_v41 = vpop.permute.xlu0 %1868 }
0x1a31   :  { %v1874_v44 = vmul.f32 %v1869_v41, %v3046_v39 }
0x1a33   :  { %1878 = vrot.lane.b32.xlu2 %v1874_v44, %s2573_s13 }
0x1a38   :  { %v1871_v52 = vpop.permute.xlu1 %1870 }
0x1a39   :  { %v1875_v8 = vmul.f32 %v1871_v52, %v1860_v0 }
0x1a3b   :  { %1880 = vrot.lane.b32.xlu0 %v1875_v8, %s2573_s13 }
0x1a43   :  { %987 = vrot.lane.b32.xlu0 %v2907_v29, %s2574_s16 }
0x1a4b   :  { %1067 = vrot.lane.b32.xlu0 %v2518_v54, %s2573_s13 }
0x1a8d   :  { %v1879_v40 = vpop.permute.xlu2 %1878 }
0x1a8e   :  { %v3060_v9 = vadd.f32 %v1879_v40, %v1864_v19 }
0x1a90   :  { %2519 = vtanh.f32 %v3060_v9 }
0x1a91   :  { %2521 = vpow2.f32 %v2199_v45 }
0x1a92   :  { %2523 = vtanh.f32 %v1022_v14 }
0x1a96   :  { %v2520_v10 = vpop.eup %2519 }
0x1a97   :  { %1890 = vrot.lane.b32.xlu1 %v2520_v10, %s2573_s13  ;;  %v2522_v29 = vpop.eup %2521 }
0x1a98   :  { %v1029_v21 = vadd.f32 1.0, %v2522_v29  ;;  %v2524_v48 = vpop.eup %2523 }
0x1a9a   :  { %2525 = vrcp.f32 %v1029_v21  ;;  %v1042_v20 = vand.u32 2147483648, %v1029_v21  ;;  %vm1036_vm11 = vweird.f32 %v1029_v21  ;;  %v1040_v47 = vand.u32 2147483647, %v1029_v21 }
0x1a9c   :  { %v1043_v25 = vor.u32 1.1754944e-38, %v1042_v20  ;;  %vm1041_vm12 = vcmp.eq.f32.partialorder %v1040_v47, 8.507059e+37 }
0x1a9f   :  { %989 = vrot.lane.b32.xlu1 %v2909_v31, %s2574_s16 }
0x1aa0   :  { %v2526_v2 = vpop.eup %2525 }
0x1aa1   :  { %v1032_v53 = vmul.f32 %v2526_v2, %v1029_v21  ;;  %vm1037_vm10 = vweird.f32 %v2526_v2 }
0x1aa2   :  { %vm1038_vm0 = vmor %vm1036_vm11, %vm1037_vm10 }
0x1aa3   :  { %v1033_v16 = vsub.f32 1.0, %v1032_v53 }
0x1aa5   :  { %v1034_v43 = vmul.f32 %v2526_v2, %v1033_v16 }
0x1aa7   :  { %1069 = vrot.lane.b32.xlu1 %v2524_v48, %s2573_s13  ;;  %v1035_v31 = vadd.f32 %v2526_v2, %v1034_v43 }
0x1aa9   :  { %v1039_v6 = vsel %vm1038_vm0, %v2526_v2, %v1035_v31 }
0x1aaa   :  { %v3074_v26 = vsel %vm1041_vm12, %v1043_v25, %v1039_v6 }
0x1aab   :  { %v1063_v13 = vmul.f32 %v3074_v26, %v2884_v15 }
0x1aad   :  { %v1881_v63 = vpop.permute.xlu0 %1880 }
0x1aae   :  { %v3069_v7 = vadd.f32 %v1881_v63, %v1865_v11 }
0x1ab0   :  { %2527 = vtanh.f32 %v3069_v7 }
0x1ab1   :  { %2529 = vpow2.f32 %v2200_v33 }
0x1ab5   :  { %v988_v17 = vpop.permute.xlu0 %987 }
0x1ab6   :  { %v2528_v60 = vpop.eup %2527  ;;  %994 = vst.msk [vmem:[#allocation2 + $0x30] sm:$0xf] %vm309_vm7, %v988_v17 }
0x1ab7   :  { %1892 = vrot.lane.b32.xlu2 %v2528_v60, %s2573_s13  ;;  %v2530_v34 = vpop.eup %2529 }
0x1ab8   :  { %v1030_v61 = vadd.f32 1.0, %v2530_v34 }
0x1aba   :  { %2531 = vrcp.f32 %v1030_v61  ;;  %v1057_v52 = vand.u32 2147483648, %v1030_v61  ;;  %vm1051_vm14 = vweird.f32 %v1030_v61  ;;  %v1055_v22 = vand.u32 2147483647, %v1030_v61 }
0x1abc   :  { %v1058_v50 = vor.u32 1.1754944e-38, %v1057_v52  ;;  %vm1056_vm1 = vcmp.eq.f32.partialorder %v1055_v22, 8.507059e+37 }
0x1abd   :  { %v1068_v23 = vpop.permute.xlu0 %1067 }
0x1abe   :  { %v1073_v1 = vmul.f32 %v1068_v23, %v3074_v26 }
0x1ac0   :  { %1077 = vrot.lane.b32.xlu1 %v1073_v1, %s2573_s13  ;;  %v2532_v5 = vpop.eup %2531 }
0x1ac1   :  { %v1047_v36 = vmul.f32 %v2532_v5, %v1030_v61  ;;  %vm1052_vm13 = vweird.f32 %v2532_v5 }
0x1ac2   :  { %vm1053_vm15 = vmor %vm1051_vm14, %vm1052_vm13 }
0x1ac3   :  { %v1048_v37 = vsub.f32 1.0, %v1047_v36 }
0x1b09   :  { %v1891_v24 = vpop.permute.xlu1 %1890 }
0x1b0a   :  { %v1896_v28 = vmul.f32 %v1891_v24, %v3046_v39  ;;  %v1049_v39 = vmul.f32 %v2532_v5, %v1048_v37 }
0x1b0c   :  { %v1050_v46 = vadd.f32 %v2532_v5, %v1049_v39 }
0x1b0e   :  { %v1054_v8 = vsel %vm1053_vm15, %v2532_v5, %v1050_v46 }
0x1b0f   :  { %v3088_v54 = vsel %vm1056_vm1, %v1058_v50, %v1054_v8 }
0x1b10   :  { %v1064_v6 = vmul.f32 %v3088_v54, %v2897_v3 }
0x1b11   :  { %v1893_v27 = vpop.permute.xlu2 %1892  ;;  %v990_v56 = vpop.permute.xlu1 %989 }
0x1b12   :  { %v1897_v30 = vmul.f32 %v1893_v27, %v1860_v0  ;;  %995 = vst.msk [vmem:[#allocation2 + $0x34] sm:$0xf] %vm309_vm7, %v990_v56 }
0x1b14   :  { %v1900_v4 = vpack.c.bf16 %v1897_v30, %v1896_v28 }
0x1b16   :  { %1902 = vrot.lane.b32.xlu2 %v1900_v4, %s2574_s16 }
0x1b19   :  { %v2305_v32 = vld [vmem:[#allocation2 + $0x30] sm:$0xff]  ;;  %v1070_v44 = vpop.permute.xlu1 %1069 }
0x1b1a   :  { %2247 = vmatmul.msk.bf16.gmra.mxu3 %vm205_vm9, %v2305_v32  ;;  %v1074_v40 = vmul.f32 %v1070_v44, %v3088_v54 }
0x1b32   :  { %v1078_v57 = vpop.permute.xlu1 %1077 }
0x1b33   :  { %v3090_v19 = vadd.f32 %v1078_v57, %v1063_v13 }
0x1b70   :  { %v1903_v59 = vpop.permute.xlu2 %1902 }
0x1b71   :  { %2274 = vmatmul.msk.bf16.vlgmr.msrb.gmra.mxu1 %vm205_vm9, %v1903_v59 }
0x1b9d   :  { %v1273_v35 = vpop.f32.mrf.mxu3 }
0x1b9e   :  { %v1274_v18 = vadd.f32 %v3040_v12, %v1273_v35 }
0x1ba5   :  { %v1275_v62 = vpop.f32.mrf.mxu3 }
0x1ba6   :  { %v1276_v58 = vadd.f32 %v3040_v12, %v1275_v62 }
0x1bee   :  { %v1916_v38 = vpop.f32.mrf.mxu1 }
0x1bef   :  { %v1921_v41 = vadd.f32 %v1916_v38, %v1274_v18 }
0x1bf1   :  { %2533 = vtanh.f32 %v1921_v41  ;;  %v2275_v10 = vmul.f32 -1.442695, %v1921_v41 }
0x1bf6   :  { %v1918_v49 = vpop.f32.mrf.mxu1 }
0x1bf7   :  { %v2534_v51 = vpop.eup %2533  ;;  %v1922_v0 = vadd.f32 %v1918_v49, %v1276_v58 }
0x1bf8   :  { %1967 = vrot.lane.b32.xlu2 %v2534_v51, %s2573_s13 }
0x1bf9   :  { %2535 = vtanh.f32 %v1922_v0  ;;  %v2276_v48 = vmul.f32 -1.442695, %v1922_v0 }
0x1bfa   :  { %2537 = vtanh.f32 %v3090_v19 }
0x1bfb   :  { %2539 = vpow2.f32 %v2275_v10 }
0x1bff   :  { %v2536_v45 = vpop.eup %2535 }
0x1c00   :  { %1969 = vrot.lane.b32.xlu0 %v2536_v45, %s2573_s13  ;;  %1079 = vrot.lane.b32.xlu2 %v1074_v40, %s2573_s13  ;;  %v2538_v55 = vpop.eup %2537 }
0x1c01   :  { %v2540_v15 = vpop.eup %2539 }
0x1c02   :  { %v1929_v42 = vadd.f32 1.0, %v2540_v15 }
0x1c04   :  { %2541 = vrcp.f32 %v1929_v42  ;;  %v1942_v11 = vand.u32 2147483648, %v1929_v42  ;;  %vm1936_vm3 = vweird.f32 %v1929_v42  ;;  %v1940_v63 = vand.u32 2147483647, %v1929_v42 }
0x1c05   :  { %2543 = vpow2.f32 %v2276_v48 }
0x1c06   :  { %v1943_v17 = vor.u32 1.1754944e-38, %v1942_v11  ;;  %vm1941_vm5 = vcmp.eq.f32.partialorder %v1940_v63, 8.507059e+37 }
0x1c08   :  { %1089 = vrot.lane.b32.xlu2 %v2538_v55, %s2573_s13 }
0x1c0a   :  { %v2542_v29 = vpop.eup %2541 }
0x1c0b   :  { %v1932_v14 = vmul.f32 %v2542_v29, %v1929_v42  ;;  %vm1937_vm2 = vweird.f32 %v2542_v29  ;;  %v2544_v16 = vpop.eup %2543 }
0x1c0c   :  { %vm1938_vm4 = vmor %vm1936_vm3, %vm1937_vm2  ;;  %v1930_v60 = vadd.f32 1.0, %v2544_v16 }
0x1c0d   :  { %v1933_v21 = vsub.f32 1.0, %v1932_v14 }
0x1c0e   :  { %2545 = vrcp.f32 %v1930_v60  ;;  %v1957_v59 = vand.u32 2147483648, %v1930_v60  ;;  %vm1951_vm8 = vweird.f32 %v1930_v60  ;;  %v1955_v33 = vand.u32 2147483647, %v1930_v60 }
0x1c0f   :  { %v1934_v2 = vmul.f32 %v2542_v29, %v1933_v21 }
0x1c10   :  { %v1958_v61 = vor.u32 1.1754944e-38, %v1957_v59  ;;  %vm1956_vm11 = vcmp.eq.f32.partialorder %v1955_v33, 8.507059e+37 }
0x1c11   :  { %v1935_v53 = vadd.f32 %v2542_v29, %v1934_v2 }
0x1c13   :  { %v1939_v43 = vsel %vm1938_vm4, %v2542_v29, %v1935_v53 }
0x1c14   :  { %v1944_v20 = vsel %vm1941_vm5, %v1943_v17, %v1939_v43  ;;  %v2546_v1 = vpop.eup %2545 }
0x1c15   :  { %v1947_v24 = vmul.f32 %v2546_v1, %v1930_v60  ;;  %vm1952_vm6 = vweird.f32 %v2546_v1 }
0x1c16   :  { %vm1953_vm10 = vmor %vm1951_vm8, %vm1952_vm6 }
0x1c17   :  { %v1948_v28 = vsub.f32 1.0, %v1947_v24 }
0x1c19   :  { %v1949_v4 = vmul.f32 %v2546_v1, %v1948_v28 }
0x1c1b   :  { %v1950_v3 = vadd.f32 %v2546_v1, %v1949_v4 }
0x1c1d   :  { %v1954_v34 = vsel %vm1953_vm10, %v2546_v1, %v1950_v3 }
0x1c1e   :  { %v1959_v35 = vsel %vm1956_vm11, %v1958_v61, %v1954_v34 }
0x1c52   :  { %v1968_v31 = vpop.permute.xlu2 %1967 }
0x1c53   :  { %v1973_v47 = vmul.f32 %v1968_v31, %v1944_v20 }
0x1c55   :  { %1977 = vrot.lane.b32.xlu0 %v1973_v47, %s2573_s13 }
0x1c5a   :  { %v1080_v25 = vpop.permute.xlu2 %1079 }
0x1c5b   :  { %v3100_v23 = vadd.f32 %v1080_v25, %v1064_v6 }
0x1c5d   :  { %2547 = vtanh.f32 %v3100_v23 }
0x1c62   :  { %v1090_v56 = vpop.permute.xlu2 %1089 }
0x1c63   :  { %v2548_v27 = vpop.eup %2547  ;;  %v3105_v30 = vmul.f32 %v1090_v56, %v3074_v26  ;;  %v1963_v26 = vmul.f32 %v1944_v20, %v3060_v9  ;;  %v1964_v9 = vmul.f32 %v1959_v35, %v3069_v7 }
0x1c64   :  { %1091 = vrot.lane.b32.xlu0 %v2548_v27, %s2573_s13 }
0x1c65   :  { %v1097_v32 = vpack.c.bf16 %v3105_v30, %v3105_v30 }
0x1c6c   :  { %1101 = vrot.lane.b32.xlu0 %v1097_v32, %s2574_s16 }
0x1c72   :  { %v1970_v5 = vpop.permute.xlu0 %1969 }
0x1c73   :  { %v1974_v36 = vmul.f32 %v1970_v5, %v1959_v35 }
0x1c75   :  { %1979 = vrot.lane.b32.xlu1 %v1974_v36, %s2573_s13 }
0x1cc7   :  { %v1978_v18 = vpop.permute.xlu0 %1977 }
0x1cc8   :  { %v3112_v37 = vadd.f32 %v1978_v18, %v1963_v26 }
0x1cca   :  { %2549 = vtanh.f32 %v3112_v37 }
0x1cd0   :  { %v2550_v38 = vpop.eup %2549 }
0x1cd1   :  { %1989 = vrot.lane.b32.xlu1 %v2550_v38, %s2573_s13 }
0x1cd6   :  { %v1092_v41 = vpop.permute.xlu0 %1091 }
0x1cd7   :  { %v3117_v39 = vmul.f32 %v1092_v41, %v3088_v54 }
0x1cd9   :  { %v1098_v44 = vpack.c.bf16 %v3117_v39, %v3117_v39 }
0x1cdb   :  { %1103 = vrot.lane.b32.xlu1 %v1098_v44, %s2574_s16 }
0x1cde   :  { %v1102_v62 = vpop.permute.xlu0 %1101 }
0x1cdf   :  { %1108 = vst.msk [vmem:[#allocation2 + $0x38] sm:$0xf] %vm309_vm7, %v1102_v62 }
0x1ce7   :  { %v1980_v58 = vpop.permute.xlu1 %1979 }
0x1ce8   :  { %v3124_v46 = vadd.f32 %v1980_v58, %v1964_v9 }
0x1cea   :  { %2551 = vtanh.f32 %v3124_v46 }
0x1cf0   :  { %v2552_v49 = vpop.eup %2551 }
0x1cf1   :  { %1991 = vrot.lane.b32.xlu2 %v2552_v49, %s2573_s13 }
0x1d43   :  { %v1990_v51 = vpop.permute.xlu1 %1989 }
0x1d44   :  { %v1995_v0 = vmul.f32 %v1990_v51, %v1944_v20 }
0x1d4b   :  { %v1992_v52 = vpop.permute.xlu2 %1991 }
0x1d4c   :  { %v1996_v22 = vmul.f32 %v1992_v52, %v1959_v35 }
0x1d4d   :  { %v1104_v8 = vpop.permute.xlu1 %1103 }
0x1d4e   :  { %v1999_v57 = vpack.c.bf16 %v1996_v22, %v1995_v0  ;;  %1109 = vst.msk [vmem:[#allocation2 + $0x3c] sm:$0xf] %vm309_vm7, %v1104_v8 }
0x1d50   :  { %2001 = vrot.lane.b32.xlu2 %v1999_v57, %s2574_s16 }
0x1d55   :  { %v2306_v50 = vld [vmem:[#allocation2 + $0x38] sm:$0xff] }
0x1d56   :  { %2248 = vmatmul.msk.bf16.gmra.mxu3 %vm205_vm9, %v2306_v50 }
0x1daa   :  { %v2002_v7 = vpop.permute.xlu2 %2001 }
0x1dab   :  { %2277 = vmatmul.msk.bf16.vlgmr.msrb.gmra.mxu2 %vm205_vm9, %v2002_v7 }
0x1dd9   :  { %v1278_v13 = vpop.f32.mrf.mxu3 }
0x1dda   :  { %v1279_v54 = vadd.f32 %v3040_v12, %v1278_v13 }
0x1de1   :  { %v1280_v55 = vpop.f32.mrf.mxu3 }
0x1de2   :  { %v1281_v10 = vadd.f32 %v3040_v12, %v1280_v55 }
0x1e2e   :  { %v2015_v40 = vpop.f32.mrf.mxu2 }
0x1e2f   :  { %v2020_v45 = vadd.f32 %v2015_v40, %v1279_v54 }
0x1e31   :  { %2553 = vtanh.f32 %v2020_v45  ;;  %v2278_v21 = vmul.f32 -1.442695, %v2020_v45 }
0x1e36   :  { %v2017_v15 = vpop.f32.mrf.mxu2 }
0x1e37   :  { %v2554_v42 = vpop.eup %2553  ;;  %v2021_v29 = vadd.f32 %v2017_v15, %v1281_v10 }
0x1e38   :  { %2066 = vrot.lane.b32.xlu0 %v2554_v42, %s2573_s13 }
0x1e39   :  { %2555 = vtanh.f32 %v2021_v29  ;;  %v2279_v48 = vmul.f32 -1.442695, %v2021_v29 }
0x1e3a   :  { %2557 = vpow2.f32 %v2278_v21 }
0x1e3b   :  { %2559 = vpow2.f32 %v2279_v48 }
0x1e3f   :  { %v2556_v14 = vpop.eup %2555 }
0x1e40   :  { %2068 = vrot.lane.b32.xlu1 %v2556_v14, %s2573_s13  ;;  %v2558_v2 = vpop.eup %2557 }
0x1e41   :  { %v2028_v53 = vadd.f32 1.0, %v2558_v2  ;;  %v2560_v11 = vpop.eup %2559 }
0x1e42   :  { %v2029_v63 = vadd.f32 1.0, %v2560_v11 }
0x1e43   :  { %2561 = vrcp.f32 %v2028_v53  ;;  %v2041_v6 = vand.u32 2147483648, %v2028_v53  ;;  %vm2035_vm0 = vweird.f32 %v2028_v53  ;;  %v2039_v25 = vand.u32 2147483647, %v2028_v53 }
0x1e44   :  { %2563 = vrcp.f32 %v2029_v63  ;;  %v2056_v3 = vand.u32 2147483648, %v2029_v63  ;;  %vm2050_vm15 = vweird.f32 %v2029_v63  ;;  %v2054_v59 = vand.u32 2147483647, %v2029_v63 }
0x1e45   :  { %v2042_v27 = vor.u32 1.1754944e-38, %v2041_v6  ;;  %vm2040_vm13 = vcmp.eq.f32.partialorder %v2039_v25, 8.507059e+37 }
0x1e46   :  { %v2057_v34 = vor.u32 1.1754944e-38, %v2056_v3  ;;  %vm2055_vm2 = vcmp.eq.f32.partialorder %v2054_v59, 8.507059e+37 }
0x1e49   :  { %v2562_v16 = vpop.eup %2561 }
0x1e4a   :  { %v2031_v12 = vmul.f32 %v2562_v16, %v2028_v53  ;;  %v2564_v17 = vpop.eup %2563  ;;  %vm2036_vm7 = vweird.f32 %v2562_v16 }
0x1e4b   :  { %v2046_v31 = vmul.f32 %v2564_v17, %v2029_v63  ;;  %vm2037_vm12 = vmor %vm2035_vm0, %vm2036_vm7  ;;  %vm2051_vm14 = vweird.f32 %v2564_v17 }
0x1e4c   :  { %v2032_v43 = vsub.f32 1.0, %v2031_v12  ;;  %vm2052_vm1 = vmor %vm2050_vm15, %vm2051_vm14 }
0x1e4d   :  { %v2047_v47 = vsub.f32 1.0, %v2046_v31 }
0x1e4e   :  { %v2033_v60 = vmul.f32 %v2562_v16, %v2032_v43 }
0x1e4f   :  { %v2048_v24 = vmul.f32 %v2564_v17, %v2047_v47 }
0x1e50   :  { %v2034_v20 = vadd.f32 %v2562_v16, %v2033_v60 }
0x1e51   :  { %v2049_v32 = vadd.f32 %v2564_v17, %v2048_v24 }
0x1e52   :  { %v2038_v1 = vsel %vm2037_vm12, %v2562_v16, %v2034_v20 }
0x1e53   :  { %v2043_v28 = vsel %vm2040_vm13, %v2042_v27, %v2038_v1  ;;  %v2053_v33 = vsel %vm2052_vm1, %v2564_v17, %v2049_v32 }
0x1e54   :  { %v2058_v5 = vsel %vm2055_vm2, %v2057_v34, %v2053_v33  ;;  %v2062_v36 = vmul.f32 %v2043_v28, %v3112_v37 }
0x1e55   :  { %v2063_v41 = vmul.f32 %v2058_v5, %v3124_v46 }
0x1eaa   :  { %v2067_v56 = vpop.permute.xlu0 %2066 }
0x1eab   :  { %v2072_v4 = vmul.f32 %v2067_v56, %v2043_v28 }
0x1ead   :  { %2076 = vrot.lane.b32.xlu2 %v2072_v4, %s2573_s13 }
0x1eb2   :  { %v2069_v61 = vpop.permute.xlu1 %2068 }
0x1eb3   :  { %v2073_v35 = vmul.f32 %v2069_v61, %v2058_v5 }
0x1eb5   :  { %2078 = vrot.lane.b32.xlu0 %v2073_v35, %s2573_s13 }
0x1ebd   :  { %1112 = vrot.lane.b32.xlu0 %v3105_v30, %s2574_s16 }
0x1ec5   :  { %1124 = vrot.lane.b32.xlu0 %v3100_v23, %s2575_s3 }
0x1f07   :  { %v2077_v26 = vpop.permute.xlu2 %2076 }
0x1f08   :  { %v2082_v18 = vadd.f32 %v2077_v26, %v2062_v36 }
0x1f0a   :  { %2565 = vtanh.f32 %v2082_v18  ;;  %2109 = vrot.lane.b32.xlu0 %v2082_v18, %s2575_s3 }
0x1f10   :  { %v2566_v38 = vpop.eup %2565 }
0x1f11   :  { %2088 = vrot.lane.b32.xlu1 %v2566_v38, %s2573_s13 }
0x1f19   :  { %1114 = vrot.lane.b32.xlu1 %v3117_v39, %s2574_s16 }
0x1f27   :  { %v2079_v30 = vpop.permute.xlu0 %2078 }
0x1f28   :  { %v2083_v44 = vadd.f32 %v2079_v30, %v2063_v41 }
0x1f2a   :  { %2567 = vtanh.f32 %v2083_v44 }
0x1f2f   :  { %v1113_v62 = vpop.permute.xlu0 %1112 }
0x1f30   :  { %v2568_v23 = vpop.eup %2567  ;;  %1118 = vst.msk [vmem:[%s3193_s7] sm:$0xff] %vm205_vm9, %v1113_v62 }
0x1f31   :  { %2090 = vrot.lane.b32.xlu2 %v2568_v23, %s2573_s13 }
0x1f37   :  { %v1125_v37 = vpop.permute.xlu0 %1124 }
0x1f38   :  { %1129 = vst.msk [vmem:[%s3194_s8 + $0x8] sm:$0xff] %vm205_vm9, %v1125_v37 }
0x1f39   :  { %1122 = vrot.lane.b32.xlu2 %v3090_v19, %s2575_s3 }
0x1f7c   :  { %v2110_v39 = vpop.permute.xlu0 %2109 }
0x1f7d   :  { %2282 = vst.msk [vmem:[%s3194_s8 + $0x10] sm:$0xff] %vm205_vm9, %v2110_v39 }
0x1f83   :  { %v2089_v9 = vpop.permute.xlu1 %2088 }
0x1f84   :  { %v2094_v58 = vmul.f32 %v2089_v9, %v2043_v28 }
0x1f86   :  { %2098 = vrot.lane.b32.xlu1 %v2094_v58, %s2574_s16 }
0x1f8b   :  { %v2091_v46 = vpop.permute.xlu2 %2090  ;;  %v1115_v49 = vpop.permute.xlu1 %1114 }
0x1f8c   :  { %v2095_v51 = vmul.f32 %v2091_v46, %v2058_v5  ;;  %1119 = vst.msk [vmem:[%s3193_s7 + $0x8] sm:$0xff] %vm205_vm9, %v1115_v49 }
0x1f8e   :  { %2100 = vrot.lane.b32.xlu2 %v2095_v51, %s2574_s16  ;;  %2111 = vrot.lane.b32.xlu1 %v2083_v44, %s2575_s3 }
0x1f93   :  { %v1123_v19 = vpop.permute.xlu2 %1122 }
0x1f94   :  { %1128 = vst.msk [vmem:[%s3194_s8] sm:$0xff] %vm205_vm9, %v1123_v19 }
0x1fe8   :  { %v2101_v52 = vpop.permute.xlu2 %2100 }
0x1fe9   :  { %2281 = vst.msk [vmem:[%s3193_s7 + $0x18] sm:$0xff] %vm205_vm9, %v2101_v52 }
0x1ff8   :  { %v2099_v0 = vpop.permute.xlu1 %2098 }
0x1ff9   :  { %2280 = vst.msk [vmem:[%s3193_s7 + $0x10] sm:$0xff] %vm205_vm9, %v2099_v0 }
0x2000   :  { %v2112_v22 = vpop.permute.xlu1 %2111 }
0x2001   :  { %2283 = vst.msk [vmem:[%s3194_s8 + $0x18] sm:$0xff] %vm205_vm9, %v2112_v22 }

</bundles_post_ra>
